<compile_context>
chip_gen: v7x
topology: tpu7x:2x2x1
jax: 0.10.0
libtpu: 0.0.40
codegen_flags: <defaults>
</compile_context>

<pallas_src>
import functools

import jax
import jax.numpy as jnp
from jax import lax
from jax.experimental import pallas as pl
from jax.experimental.pallas import tpu as pltpu


def _round_up(x, m):
    return (x + m - 1) // m * m


def _pick_tile_rows(ho, wo, target_rows):
    """Largest divisor th of ho such that th*wo <= target_rows (>=1)."""
    best = 1
    for d in range(1, ho + 1):
        if ho % d == 0 and d * wo <= target_rows:
            best = d
    return best


def _make_kernels(th, wo, kh, kw, cin_p, cp, approx_recip, mm_precision):
    rows = th * wo

    def _gated_tile(win_ref, w_ref, b_ref):
        # win_ref block: (1, th+kh-1, wo+kw-1, cin_p) in the compute dtype.
        x = win_ref[0]
        acc = jnp.zeros((rows, 2 * cp), jnp.float32)
        # kh*kw accumulated MXU matmuls over taps sliced out of the halo'd tile.
        # Equivalent to one (rows, kh*kw*cin) x (kh*kw*cin, 2*cp) im2col matmul,
        # without ever materializing the 9x-inflated patch matrix.
        t = 0
        for di in range(kh):
            for dj in range(kw):
                tap = x[di:di + th, dj:dj + wo, :].reshape(rows, cin_p)
                acc += jnp.dot(tap, w_ref[t],
                               preferred_element_type=jnp.float32,
                               precision=mm_precision)
                t += 1
        acc = acc + b_ref[...]                          # fused (conv ++ mask) bias
        conv = acc[:, :cp]
        gate_logit = acc[:, cp:]
        act = jnp.where(conv >= 0.0, conv, 0.2 * conv)  # LeakyReLU(0.2)
        one_plus_e = 1.0 + jnp.exp(-gate_logit)         # exp on the EUP
        if approx_recip:
            gate = pl.reciprocal(one_plus_e, approx=True)   # sigmoid (EUP recip)
        else:
            gate = 1.0 / one_plus_e
        return act * gate                               # (rows, cp) f32

    def stats_kernel(win_ref, w_ref, b_ref, sum_ref, sq_ref):
        y = _gated_tile(win_ref, w_ref, b_ref)
        sum_ref[0] = jnp.sum(y, axis=0, keepdims=True)
        sq_ref[0] = jnp.sum(y * y, axis=0, keepdims=True)

    def apply_kernel(win_ref, w_ref, b_ref, scale_ref, shift_ref, out_ref):
        y = _gated_tile(win_ref, w_ref, b_ref)
        out_ref[0] = y * scale_ref[...] + shift_ref[...]   # folded BatchNorm FMA

    return stats_kernel, apply_kernel


def gated_conv2d_with_activation(x_nchw, wx, bx, wm, bm, gamma, beta,
                                 stride=1, padding=1,
                                 compute_dtype=jnp.bfloat16,
                                 approx_recip=True,
                                 target_rows=512):
    """Forward of GatedConv2dWithActivation (stride=1, groups=1, dilation=1, BN on)."""
    assert stride == 1, "kernel specialized to stride=1 (as used in DOAM)"
    N, Cin, H, W = x_nchw.shape
    Cout, Cin_w, kh, kw = wx.shape
    assert Cin_w == Cin and wm.shape == wx.shape

    Ho = H + 2 * padding - kh + 1
    Wo = W + 2 * padding - kw + 1
    Cp = _round_up(Cout, 128)            # lane-dense (padded) output channels
    Cin_p = _round_up(Cin, 8)            # sublane-aligned contraction dim
    th = _pick_tile_rows(Ho, Wo, target_rows)
    hb_n = Ho // th
    MB = N * hb_n                        # grid size (row blocks)
    rows = th * Wo
    win_h = th + kh - 1
    win_w = Wo + kw - 1                  # == W + 2*padding

    mm_precision = (None if jnp.dtype(compute_dtype) == jnp.dtype(jnp.bfloat16)
                    else lax.Precision.HIGHEST)

    # ------------- wrapper-side layout work (cheap; no 9x HBM im2col) -------------
    x_nhwc = jnp.transpose(x_nchw, (0, 2, 3, 1)).astype(jnp.float32)
    x_pad = jnp.pad(x_nhwc, ((0, 0), (padding, padding), (padding, padding),
                             (0, Cin_p - Cin)))
    # Overlapping row windows so every grid step owns a disjoint HBM block ->
    # plain Blocked BlockSpecs + automatic double-buffered pipelining.
    wins = jnp.stack([x_pad[:, hb * th: hb * th + win_h] for hb in range(hb_n)],
                     axis=1)
    wins = wins.reshape(MB, win_h, win_w, Cin_p).astype(compute_dtype)

    # Fused conv ++ mask-conv weight: (kh*kw, Cin_p, 2*Cp), zero padded.
    wx_t = jnp.transpose(wx, (2, 3, 1, 0)).reshape(kh * kw, Cin, Cout)
    wm_t = jnp.transpose(wm, (2, 3, 1, 0)).reshape(kh * kw, Cin, Cout)
    w_f = jnp.zeros((kh * kw, Cin_p, 2 * Cp), jnp.float32)
    w_f = w_f.at[:, :Cin, :Cout].set(wx_t).at[:, :Cin, Cp:Cp + Cout].set(wm_t)
    w_f = w_f.astype(compute_dtype)
    b_f = jnp.zeros((1, 2 * Cp), jnp.float32)
    b_f = b_f.at[0, :Cout].set(bx).at[0, Cp:Cp + Cout].set(bm)

    stats_kernel, apply_kernel = _make_kernels(
        th, Wo, kh, kw, Cin_p, Cp, approx_recip, mm_precision)

    win_spec = pl.BlockSpec((1, win_h, win_w, Cin_p), lambda i: (i, 0, 0, 0))
    w_spec = pl.BlockSpec((kh * kw, Cin_p, 2 * Cp), lambda i: (0, 0, 0))  # resident
    b_spec = pl.BlockSpec((1, 2 * Cp), lambda i: (0, 0))
    cparams = pltpu.CompilerParams(
        dimension_semantics=("parallel",),       # shard row blocks over v7x's 2 TCs
        vmem_limit_bytes=32 * 1024 * 1024,       # tiles sized well under v7x budget
    )

    # ------ pass 1: per-block channel sums / sums-of-squares (BN statistics) ------
    psum, psq = pl.pallas_call(
        stats_kernel,
        grid=(MB,),
        in_specs=[win_spec, w_spec, b_spec],
        out_specs=[pl.BlockSpec((1, 1, Cp), lambda i: (i, 0, 0)),
                   pl.BlockSpec((1, 1, Cp), lambda i: (i, 0, 0))],
        out_shape=[jax.ShapeDtypeStruct((MB, 1, Cp), jnp.float32),
                   jax.ShapeDtypeStruct((MB, 1, Cp), jnp.float32)],
        compiler_params=cparams,
    )(wins, w_f, b_f)

    count = float(MB * rows)                     # == N * Ho * Wo
    mean = jnp.sum(psum, axis=0) / count         # (1, Cp)
    var = jnp.maximum(jnp.sum(psq, axis=0) / count - mean * mean, 0.0)
    gamma_p = jnp.zeros((1, Cp), jnp.float32).at[0, :Cout].set(gamma)
    beta_p = jnp.zeros((1, Cp), jnp.float32).at[0, :Cout].set(beta)
    scale = gamma_p * lax.rsqrt(var + 1e-5)      # BN folded into one scale/shift
    shift = beta_p - mean * scale
    # TODO(synk): BatchNorm2d's running_mean/running_var buffer update (training-time
    # side effect) is not reproduced; only the forward output tensor is.

    s_spec = pl.BlockSpec((1, Cp), lambda i: (0, 0))

    # ---- pass 2: recompute gated conv, apply folded BN, lane-dense store ----
    out = pl.pallas_call(
        apply_kernel,
        grid=(MB,),
        in_specs=[win_spec, w_spec, b_spec, s_spec, s_spec],
        out_specs=pl.BlockSpec((1, rows, Cp), lambda i: (i, 0, 0)),
        out_shape=jax.ShapeDtypeStruct((MB, rows, Cp), jnp.float32),
        compiler_params=cparams,
    )(wins, w_f, b_f, scale, shift)

    # (MB, rows, Cp) -> (N, Ho, Wo, Cp) -> NCHW, then drop the channel padding.
    out = out.reshape(N, hb_n, th, Wo, Cp).reshape(N, Ho, Wo, Cp)
    return jnp.transpose(out, (0, 3, 1, 2))[:, :Cout]


# ---------------------------------------------------------------------------
# Pure-JAX reference (f32, HIGHEST precision convs)
# ---------------------------------------------------------------------------
def reference(x_nchw, wx, bx, wm, bm, gamma, beta, stride=1, padding=1):
    dn = lax.conv_dimension_numbers(x_nchw.shape, wx.shape, ('NCHW', 'OIHW', 'NCHW'))

    def conv(w, b):
        return lax.conv_general_dilated(
            x_nchw, w, (stride, stride), [(padding, padding)] * 2,
            dimension_numbers=dn, precision=lax.Precision.HIGHEST
        ) + b.reshape(1, -1, 1, 1)

    x = conv(wx, bx)
    m = conv(wm, bm)
    y = jnp.where(x >= 0, x, 0.2 * x) * jax.nn.sigmoid(m)
    mean = jnp.mean(y, axis=(0, 2, 3), keepdims=True)
    var = jnp.mean((y - mean) ** 2, axis=(0, 2, 3), keepdims=True)
    y_hat = (y - mean) * lax.rsqrt(var + 1e-5)
    return y_hat * gamma.reshape(1, -1, 1, 1) + beta.reshape(1, -1, 1, 1)


if __name__ == "__main__":
    key = jax.random.PRNGKey(0)
    N, Cin, H, W = 2, 4, 16, 16
    Cout, K = 8, 3
    stride, padding = 1, 1

    k_in, k_wx, k_bx, k_wm, k_bm = jax.random.split(key, 5)
    x = jax.random.normal(k_in, (N, Cin, H, W), jnp.float32)

    # kaiming_normal-style init: std = sqrt(2 / fan_in)
    fan_in = Cin * K * K
    std = (2.0 / fan_in) ** 0.5
    wx = jax.random.normal(k_wx, (Cout, Cin, K, K), jnp.float32) * std
    wm = jax.random.normal(k_wm, (Cout, Cin, K, K), jnp.float32) * std
    bound = 1.0 / (fan_in ** 0.5)
    bx = jax.random.uniform(k_bx, (Cout,), jnp.float32, -bound, bound)
    bm = jax.random.uniform(k_bm, (Cout,), jnp.float32, -bound, bound)
    gamma = jnp.ones((Cout,), jnp.float32)     # BatchNorm2d default affine params
    beta = jnp.zeros((Cout,), jnp.float32)

    ref = reference(x, wx, bx, wm, bm, gamma, beta, stride=stride, padding=padding)

    # Fast path: bf16 MXU matmuls + approx-reciprocal sigmoid.  Loose tolerance:
    # bf16 operands vs an f32 reference, on a unit-variance (BatchNorm'd) output.
    run_bf16 = jax.jit(functools.partial(
        gated_conv2d_with_activation, stride=stride, padding=padding,
        compute_dtype=jnp.bfloat16, approx_recip=True))
    out = jax.block_until_ready(run_bf16(x, wx, bx, wm, bm, gamma, beta))
    assert out.shape == (N, Cout, H, W), out.shape
    err = jnp.abs(out - ref)
    assert float(jnp.max(err)) < 0.15 and float(jnp.mean(err)) < 0.02, (
        float(jnp.max(err)), float(jnp.mean(err)))

    # f32 path (exact reciprocal, HIGHEST-precision matmuls): structural check.
    run_f32 = jax.jit(functools.partial(
        gated_conv2d_with_activation, stride=stride, padding=padding,
        compute_dtype=jnp.float32, approx_recip=False))
    out32 = jax.block_until_ready(run_f32(x, wx, bx, wm, bm, gamma, beta))
    assert jnp.allclose(out32, ref, atol=2e-2, rtol=2e-2), \
        float(jnp.max(jnp.abs(out32 - ref)))

    print("KERNEL_OK")
</pallas_src>

<mosaic_0001>
module attributes {stable_mosaic.version = 11 : i64} {
  func.func @stats_kernel(%arg0: i32, %arg1: memref<1x18x18x8xbf16, #tpu.memory_space<vmem>>, %arg2: memref<9x8x256xbf16, #tpu.memory_space<vmem>>, %arg3: memref<1x256xf32, #tpu.memory_space<vmem>>, %arg4: memref<1x1x128xf32, #tpu.memory_space<vmem>>, %arg5: memref<1x1x128xf32, #tpu.memory_space<vmem>>) attributes {dimension_semantics = [#tpu.dimension_semantics<parallel>], iteration_bounds = array<i64: 2>, scalar_prefetch = 0 : i64, scratch_operands = 0 : i64, tpu.core_type = #tpu.core_type<tc>, window_params = [{transform_indices = @transform_0, window_bounds = array<i64: 1, 18, 18, 8>}, {pipeline_mode = #tpu.pipeline_mode<synchronous>, transform_indices = @transform_1, window_bounds = array<i64: 9, 8, 256>}, {pipeline_mode = #tpu.pipeline_mode<synchronous>, transform_indices = @transform_2, window_bounds = array<i64: 1, 256>}, {transform_indices = @transform_3, window_bounds = array<i64: 1, 1, 128>}, {transform_indices = @transform_4, window_bounds = array<i64: 1, 1, 128>}]} {
    %c0 = arith.constant 0 : index
    %c0_0 = arith.constant 0 : index
    %c0_1 = arith.constant 0 : index
    %c0_2 = arith.constant 0 : index
    %0 = vector.load %arg1[%c0, %c0_0, %c0_1, %c0_2] : memref<1x18x18x8xbf16, #tpu.memory_space<vmem>>, vector<1x18x18x8xbf16>
    %1 = vector.shape_cast %0 : vector<1x18x18x8xbf16> to vector<18x18x8xbf16>
    %cst = arith.constant 0.000000e+00 : f32
    %2 = vector.broadcast %cst : f32 to vector<256x256xf32>
    %3 = vector.extract_strided_slice %1 {offsets = [0, 0, 0], sizes = [16, 16, 8], strides = [1, 1, 1]} : vector<18x18x8xbf16> to vector<16x16x8xbf16>
    %4 = vector.shape_cast %3 : vector<16x16x8xbf16> to vector<256x8xbf16>
    %c0_3 = arith.constant 0 : index
    %c0_4 = arith.constant 0 : index
    %c0_5 = arith.constant 0 : index
    %5 = vector.load %arg2[%c0_3, %c0_4, %c0_5] : memref<9x8x256xbf16, #tpu.memory_space<vmem>>, vector<1x8x256xbf16>
    %6 = vector.shape_cast %5 : vector<1x8x256xbf16> to vector<8x256xbf16>
    %cst_6 = arith.constant dense<0.000000e+00> : vector<256x256xf32>
    %7 = tpu.matmul %4, %6, %cst_6 {dimension_numbers = #tpu.dot_dimension_numbers<[1], [0], [0], [1], [0, 0, 1, 1], [], []>} : vector<256x8xbf16>, vector<8x256xbf16>, vector<256x256xf32> -> vector<256x256xf32>
    %8 = arith.addf %2, %7 : vector<256x256xf32>
    %9 = vector.extract_strided_slice %1 {offsets = [0, 1, 0], sizes = [16, 16, 8], strides = [1, 1, 1]} : vector<18x18x8xbf16> to vector<16x16x8xbf16>
    %10 = vector.shape_cast %9 : vector<16x16x8xbf16> to vector<256x8xbf16>
    %c1 = arith.constant 1 : index
    %c0_7 = arith.constant 0 : index
    %c0_8 = arith.constant 0 : index
    %11 = vector.load %arg2[%c1, %c0_7, %c0_8] : memref<9x8x256xbf16, #tpu.memory_space<vmem>>, vector<1x8x256xbf16>
    %12 = vector.shape_cast %11 : vector<1x8x256xbf16> to vector<8x256xbf16>
    %cst_9 = arith.constant dense<0.000000e+00> : vector<256x256xf32>
    %13 = tpu.matmul %10, %12, %cst_9 {dimension_numbers = #tpu.dot_dimension_numbers<[1], [0], [0], [1], [0, 0, 1, 1], [], []>} : vector<256x8xbf16>, vector<8x256xbf16>, vector<256x256xf32> -> vector<256x256xf32>
    %14 = arith.addf %8, %13 : vector<256x256xf32>
    %15 = vector.extract_strided_slice %1 {offsets = [0, 2, 0], sizes = [16, 16, 8], strides = [1, 1, 1]} : vector<18x18x8xbf16> to vector<16x16x8xbf16>
    %16 = vector.shape_cast %15 : vector<16x16x8xbf16> to vector<256x8xbf16>
    %c2 = arith.constant 2 : index
    %c0_10 = arith.constant 0 : index
    %c0_11 = arith.constant 0 : index
    %17 = vector.load %arg2[%c2, %c0_10, %c0_11] : memref<9x8x256xbf16, #tpu.memory_space<vmem>>, vector<1x8x256xbf16>
    %18 = vector.shape_cast %17 : vector<1x8x256xbf16> to vector<8x256xbf16>
    %cst_12 = arith.constant dense<0.000000e+00> : vector<256x256xf32>
    %19 = tpu.matmul %16, %18, %cst_12 {dimension_numbers = #tpu.dot_dimension_numbers<[1], [0], [0], [1], [0, 0, 1, 1], [], []>} : vector<256x8xbf16>, vector<8x256xbf16>, vector<256x256xf32> -> vector<256x256xf32>
    %20 = arith.addf %14, %19 : vector<256x256xf32>
    %21 = vector.extract_strided_slice %1 {offsets = [1, 0, 0], sizes = [16, 16, 8], strides = [1, 1, 1]} : vector<18x18x8xbf16> to vector<16x16x8xbf16>
    %22 = vector.shape_cast %21 : vector<16x16x8xbf16> to vector<256x8xbf16>
    %c3 = arith.constant 3 : index
    %c0_13 = arith.constant 0 : index
    %c0_14 = arith.constant 0 : index
    %23 = vector.load %arg2[%c3, %c0_13, %c0_14] : memref<9x8x256xbf16, #tpu.memory_space<vmem>>, vector<1x8x256xbf16>
    %24 = vector.shape_cast %23 : vector<1x8x256xbf16> to vector<8x256xbf16>
    %cst_15 = arith.constant dense<0.000000e+00> : vector<256x256xf32>
    %25 = tpu.matmul %22, %24, %cst_15 {dimension_numbers = #tpu.dot_dimension_numbers<[1], [0], [0], [1], [0, 0, 1, 1], [], []>} : vector<256x8xbf16>, vector<8x256xbf16>, vector<256x256xf32> -> vector<256x256xf32>
    %26 = arith.addf %20, %25 : vector<256x256xf32>
    %27 = vector.extract_strided_slice %1 {offsets = [1, 1, 0], sizes = [16, 16, 8], strides = [1, 1, 1]} : vector<18x18x8xbf16> to vector<16x16x8xbf16>
    %28 = vector.shape_cast %27 : vector<16x16x8xbf16> to vector<256x8xbf16>
    %c4 = arith.constant 4 : index
    %c0_16 = arith.constant 0 : index
    %c0_17 = arith.constant 0 : index
    %29 = vector.load %arg2[%c4, %c0_16, %c0_17] : memref<9x8x256xbf16, #tpu.memory_space<vmem>>, vector<1x8x256xbf16>
    %30 = vector.shape_cast %29 : vector<1x8x256xbf16> to vector<8x256xbf16>
    %cst_18 = arith.constant dense<0.000000e+00> : vector<256x256xf32>
    %31 = tpu.matmul %28, %30, %cst_18 {dimension_numbers = #tpu.dot_dimension_numbers<[1], [0], [0], [1], [0, 0, 1, 1], [], []>} : vector<256x8xbf16>, vector<8x256xbf16>, vector<256x256xf32> -> vector<256x256xf32>
    %32 = arith.addf %26, %31 : vector<256x256xf32>
    %33 = vector.extract_strided_slice %1 {offsets = [1, 2, 0], sizes = [16, 16, 8], strides = [1, 1, 1]} : vector<18x18x8xbf16> to vector<16x16x8xbf16>
    %34 = vector.shape_cast %33 : vector<16x16x8xbf16> to vector<256x8xbf16>
    %c5 = arith.constant 5 : index
    %c0_19 = arith.constant 0 : index
    %c0_20 = arith.constant 0 : index
    %35 = vector.load %arg2[%c5, %c0_19, %c0_20] : memref<9x8x256xbf16, #tpu.memory_space<vmem>>, vector<1x8x256xbf16>
    %36 = vector.shape_cast %35 : vector<1x8x256xbf16> to vector<8x256xbf16>
    %cst_21 = arith.constant dense<0.000000e+00> : vector<256x256xf32>
    %37 = tpu.matmul %34, %36, %cst_21 {dimension_numbers = #tpu.dot_dimension_numbers<[1], [0], [0], [1], [0, 0, 1, 1], [], []>} : vector<256x8xbf16>, vector<8x256xbf16>, vector<256x256xf32> -> vector<256x256xf32>
    %38 = arith.addf %32, %37 : vector<256x256xf32>
    %39 = vector.extract_strided_slice %1 {offsets = [2, 0, 0], sizes = [16, 16, 8], strides = [1, 1, 1]} : vector<18x18x8xbf16> to vector<16x16x8xbf16>
    %40 = vector.shape_cast %39 : vector<16x16x8xbf16> to vector<256x8xbf16>
    %c6 = arith.constant 6 : index
    %c0_22 = arith.constant 0 : index
    %c0_23 = arith.constant 0 : index
    %41 = vector.load %arg2[%c6, %c0_22, %c0_23] : memref<9x8x256xbf16, #tpu.memory_space<vmem>>, vector<1x8x256xbf16>
    %42 = vector.shape_cast %41 : vector<1x8x256xbf16> to vector<8x256xbf16>
    %cst_24 = arith.constant dense<0.000000e+00> : vector<256x256xf32>
    %43 = tpu.matmul %40, %42, %cst_24 {dimension_numbers = #tpu.dot_dimension_numbers<[1], [0], [0], [1], [0, 0, 1, 1], [], []>} : vector<256x8xbf16>, vector<8x256xbf16>, vector<256x256xf32> -> vector<256x256xf32>
    %44 = arith.addf %38, %43 : vector<256x256xf32>
    %45 = vector.extract_strided_slice %1 {offsets = [2, 1, 0], sizes = [16, 16, 8], strides = [1, 1, 1]} : vector<18x18x8xbf16> to vector<16x16x8xbf16>
    %46 = vector.shape_cast %45 : vector<16x16x8xbf16> to vector<256x8xbf16>
    %c7 = arith.constant 7 : index
    %c0_25 = arith.constant 0 : index
    %c0_26 = arith.constant 0 : index
    %47 = vector.load %arg2[%c7, %c0_25, %c0_26] : memref<9x8x256xbf16, #tpu.memory_space<vmem>>, vector<1x8x256xbf16>
    %48 = vector.shape_cast %47 : vector<1x8x256xbf16> to vector<8x256xbf16>
    %cst_27 = arith.constant dense<0.000000e+00> : vector<256x256xf32>
    %49 = tpu.matmul %46, %48, %cst_27 {dimension_numbers = #tpu.dot_dimension_numbers<[1], [0], [0], [1], [0, 0, 1, 1], [], []>} : vector<256x8xbf16>, vector<8x256xbf16>, vector<256x256xf32> -> vector<256x256xf32>
    %50 = arith.addf %44, %49 : vector<256x256xf32>
    %51 = vector.extract_strided_slice %1 {offsets = [2, 2, 0], sizes = [16, 16, 8], strides = [1, 1, 1]} : vector<18x18x8xbf16> to vector<16x16x8xbf16>
    %52 = vector.shape_cast %51 : vector<16x16x8xbf16> to vector<256x8xbf16>
    %c8 = arith.constant 8 : index
    %c0_28 = arith.constant 0 : index
    %c0_29 = arith.constant 0 : index
    %53 = vector.load %arg2[%c8, %c0_28, %c0_29] : memref<9x8x256xbf16, #tpu.memory_space<vmem>>, vector<1x8x256xbf16>
    %54 = vector.shape_cast %53 : vector<1x8x256xbf16> to vector<8x256xbf16>
    %cst_30 = arith.constant dense<0.000000e+00> : vector<256x256xf32>
    %55 = tpu.matmul %52, %54, %cst_30 {dimension_numbers = #tpu.dot_dimension_numbers<[1], [0], [0], [1], [0, 0, 1, 1], [], []>} : vector<256x8xbf16>, vector<8x256xbf16>, vector<256x256xf32> -> vector<256x256xf32>
    %56 = arith.addf %50, %55 : vector<256x256xf32>
    %c0_31 = arith.constant 0 : index
    %c0_32 = arith.constant 0 : index
    %57 = vector.load %arg3[%c0_31, %c0_32] : memref<1x256xf32, #tpu.memory_space<vmem>>, vector<1x256xf32>
    %58 = vector.broadcast %57 : vector<1x256xf32> to vector<256x256xf32>
    %59 = arith.addf %56, %58 : vector<256x256xf32>
    %60 = vector.extract_strided_slice %59 {offsets = [0, 0], sizes = [256, 128], strides = [1, 1]} : vector<256x256xf32> to vector<256x128xf32>
    %61 = vector.extract_strided_slice %59 {offsets = [0, 128], sizes = [256, 128], strides = [1, 1]} : vector<256x256xf32> to vector<256x128xf32>
    %cst_33 = arith.constant 0.000000e+00 : f32
    %62 = vector.broadcast %cst_33 : f32 to vector<256x128xf32>
    %63 = arith.cmpf oge, %60, %62 : vector<256x128xf32>
    %cst_34 = arith.constant 2.000000e-01 : f32
    %64 = vector.broadcast %cst_34 : f32 to vector<256x128xf32>
    %65 = arith.mulf %64, %60 : vector<256x128xf32>
    %66 = arith.select %63, %60, %65 : vector<256x128xi1>, vector<256x128xf32>
    %cst_35 = arith.constant 0.000000e+00 : f32
    %67 = vector.broadcast %cst_35 : f32 to vector<256x128xf32>
    %68 = arith.subf %67, %61 : vector<256x128xf32>
    %69 = math.exp %68 : vector<256x128xf32>
    %cst_36 = arith.constant 1.000000e+00 : f32
    %70 = vector.broadcast %cst_36 : f32 to vector<256x128xf32>
    %71 = arith.addf %70, %69 : vector<256x128xf32>
    %72 = tpu.reciprocal %71 {approx = true} : vector<256x128xf32> -> vector<256x128xf32>
    %73 = arith.mulf %66, %72 : vector<256x128xf32>
    %cst_37 = arith.constant dense<0.000000e+00> : vector<128xf32>
    %74 = vector.multi_reduction <add>, %73, %cst_37 [0] : vector<256x128xf32> to vector<128xf32>
    %75 = vector.shape_cast %74 : vector<128xf32> to vector<1x128xf32>
    %c0_38 = arith.constant 0 : index
    %c0_39 = arith.constant 0 : index
    %c0_40 = arith.constant 0 : index
    %76 = vector.load %arg4[%c0_38, %c0_39, %c0_40] : memref<1x1x128xf32, #tpu.memory_space<vmem>>, vector<1x1x128xf32>
    %77 = vector.shape_cast %76 : vector<1x1x128xf32> to vector<1x128xf32>
    %78 = vector.shape_cast %75 : vector<1x128xf32> to vector<1x1x128xf32>
    tpu.vector_store %arg4[%c0_38, %c0_39, %c0_40], %78 {strides = array<i32>} : memref<1x1x128xf32, #tpu.memory_space<vmem>>, vector<1x1x128xf32>,
    %79 = arith.mulf %73, %73 : vector<256x128xf32>
    %cst_41 = arith.constant dense<0.000000e+00> : vector<128xf32>
    %80 = vector.multi_reduction <add>, %79, %cst_41 [0] : vector<256x128xf32> to vector<128xf32>
    %81 = vector.shape_cast %80 : vector<128xf32> to vector<1x128xf32>
    %c0_42 = arith.constant 0 : index
    %c0_43 = arith.constant 0 : index
    %c0_44 = arith.constant 0 : index
    %82 = vector.load %arg5[%c0_42, %c0_43, %c0_44] : memref<1x1x128xf32, #tpu.memory_space<vmem>>, vector<1x1x128xf32>
    %83 = vector.shape_cast %82 : vector<1x1x128xf32> to vector<1x128xf32>
    %84 = vector.shape_cast %81 : vector<1x128xf32> to vector<1x1x128xf32>
    tpu.vector_store %arg5[%c0_42, %c0_43, %c0_44], %84 {strides = array<i32>} : memref<1x1x128xf32, #tpu.memory_space<vmem>>, vector<1x1x128xf32>,
    return
  }
  func.func @transform_0(%arg0: i32) -> (i32, i32, i32, i32) {
    %c0_i32 = arith.constant 0 : i32
    %c0_i32_0 = arith.constant 0 : i32
    %c0_i32_1 = arith.constant 0 : i32
    %c0_i32_2 = arith.constant 0 : i32
    return %arg0, %c0_i32, %c0_i32_0, %c0_i32_1 : i32, i32, i32, i32
  }
  func.func @transform_1(%arg0: i32) -> (i32, i32, i32) {
    %c0_i32 = arith.constant 0 : i32
    %c0_i32_0 = arith.constant 0 : i32
    %c0_i32_1 = arith.constant 0 : i32
    %c0_i32_2 = arith.constant 0 : i32
    return %c0_i32, %c0_i32_0, %c0_i32_1 : i32, i32, i32
  }
  func.func @transform_2(%arg0: i32) -> (i32, i32) {
    %c0_i32 = arith.constant 0 : i32
    %c0_i32_0 = arith.constant 0 : i32
    %c0_i32_1 = arith.constant 0 : i32
    return %c0_i32, %c0_i32_0 : i32, i32
  }
  func.func @transform_3(%arg0: i32) -> (i32, i32, i32) {
    %c0_i32 = arith.constant 0 : i32
    %c0_i32_0 = arith.constant 0 : i32
    %c0_i32_1 = arith.constant 0 : i32
    return %arg0, %c0_i32, %c0_i32_0 : i32, i32, i32
  }
  func.func @transform_4(%arg0: i32) -> (i32, i32, i32) {
    %c0_i32 = arith.constant 0 : i32
    %c0_i32_0 = arith.constant 0 : i32
    %c0_i32_1 = arith.constant 0 : i32
    return %arg0, %c0_i32, %c0_i32_0 : i32, i32, i32
  }
}

module attributes {stable_mosaic.version = 11 : i64} {
  func.func @apply_kernel(%arg0: i32, %arg1: memref<1x18x18x8xbf16, #tpu.memory_space<vmem>>, %arg2: memref<9x8x256xbf16, #tpu.memory_space<vmem>>, %arg3: memref<1x256xf32, #tpu.memory_space<vmem>>, %arg4: memref<1x128xf32, #tpu.memory_space<vmem>>, %arg5: memref<1x128xf32, #tpu.memory_space<vmem>>, %arg6: memref<1x256x128xf32, #tpu.memory_space<vmem>>) attributes {dimension_semantics = [#tpu.dimension_semantics<parallel>], iteration_bounds = array<i64: 2>, scalar_prefetch = 0 : i64, scratch_operands = 0 : i64, tpu.core_type = #tpu.core_type<tc>, window_params = [{transform_indices = @transform_0, window_bounds = array<i64: 1, 18, 18, 8>}, {pipeline_mode = #tpu.pipeline_mode<synchronous>, transform_indices = @transform_1, window_bounds = array<i64: 9, 8, 256>}, {pipeline_mode = #tpu.pipeline_mode<synchronous>, transform_indices = @transform_2, window_bounds = array<i64: 1, 256>}, {pipeline_mode = #tpu.pipeline_mode<synchronous>, transform_indices = @transform_3, window_bounds = array<i64: 1, 128>}, {pipeline_mode = #tpu.pipeline_mode<synchronous>, transform_indices = @transform_4, window_bounds = array<i64: 1, 128>}, {transform_indices = @transform_5, window_bounds = array<i64: 1, 256, 128>}]} {
    %c0 = arith.constant 0 : index
    %c0_0 = arith.constant 0 : index
    %c0_1 = arith.constant 0 : index
    %c0_2 = arith.constant 0 : index
    %0 = vector.load %arg1[%c0, %c0_0, %c0_1, %c0_2] : memref<1x18x18x8xbf16, #tpu.memory_space<vmem>>, vector<1x18x18x8xbf16>
    %1 = vector.shape_cast %0 : vector<1x18x18x8xbf16> to vector<18x18x8xbf16>
    %cst = arith.constant 0.000000e+00 : f32
    %2 = vector.broadcast %cst : f32 to vector<256x256xf32>
    %3 = vector.extract_strided_slice %1 {offsets = [0, 0, 0], sizes = [16, 16, 8], strides = [1, 1, 1]} : vector<18x18x8xbf16> to vector<16x16x8xbf16>
    %4 = vector.shape_cast %3 : vector<16x16x8xbf16> to vector<256x8xbf16>
    %c0_3 = arith.constant 0 : index
    %c0_4 = arith.constant 0 : index
    %c0_5 = arith.constant 0 : index
    %5 = vector.load %arg2[%c0_3, %c0_4, %c0_5] : memref<9x8x256xbf16, #tpu.memory_space<vmem>>, vector<1x8x256xbf16>
    %6 = vector.shape_cast %5 : vector<1x8x256xbf16> to vector<8x256xbf16>
    %cst_6 = arith.constant dense<0.000000e+00> : vector<256x256xf32>
    %7 = tpu.matmul %4, %6, %cst_6 {dimension_numbers = #tpu.dot_dimension_numbers<[1], [0], [0], [1], [0, 0, 1, 1], [], []>} : vector<256x8xbf16>, vector<8x256xbf16>, vector<256x256xf32> -> vector<256x256xf32>
    %8 = arith.addf %2, %7 : vector<256x256xf32>
    %9 = vector.extract_strided_slice %1 {offsets = [0, 1, 0], sizes = [16, 16, 8], strides = [1, 1, 1]} : vector<18x18x8xbf16> to vector<16x16x8xbf16>
    %10 = vector.shape_cast %9 : vector<16x16x8xbf16> to vector<256x8xbf16>
    %c1 = arith.constant 1 : index
    %c0_7 = arith.constant 0 : index
    %c0_8 = arith.constant 0 : index
    %11 = vector.load %arg2[%c1, %c0_7, %c0_8] : memref<9x8x256xbf16, #tpu.memory_space<vmem>>, vector<1x8x256xbf16>
    %12 = vector.shape_cast %11 : vector<1x8x256xbf16> to vector<8x256xbf16>
    %cst_9 = arith.constant dense<0.000000e+00> : vector<256x256xf32>
    %13 = tpu.matmul %10, %12, %cst_9 {dimension_numbers = #tpu.dot_dimension_numbers<[1], [0], [0], [1], [0, 0, 1, 1], [], []>} : vector<256x8xbf16>, vector<8x256xbf16>, vector<256x256xf32> -> vector<256x256xf32>
    %14 = arith.addf %8, %13 : vector<256x256xf32>
    %15 = vector.extract_strided_slice %1 {offsets = [0, 2, 0], sizes = [16, 16, 8], strides = [1, 1, 1]} : vector<18x18x8xbf16> to vector<16x16x8xbf16>
    %16 = vector.shape_cast %15 : vector<16x16x8xbf16> to vector<256x8xbf16>
    %c2 = arith.constant 2 : index
    %c0_10 = arith.constant 0 : index
    %c0_11 = arith.constant 0 : index
    %17 = vector.load %arg2[%c2, %c0_10, %c0_11] : memref<9x8x256xbf16, #tpu.memory_space<vmem>>, vector<1x8x256xbf16>
    %18 = vector.shape_cast %17 : vector<1x8x256xbf16> to vector<8x256xbf16>
    %cst_12 = arith.constant dense<0.000000e+00> : vector<256x256xf32>
    %19 = tpu.matmul %16, %18, %cst_12 {dimension_numbers = #tpu.dot_dimension_numbers<[1], [0], [0], [1], [0, 0, 1, 1], [], []>} : vector<256x8xbf16>, vector<8x256xbf16>, vector<256x256xf32> -> vector<256x256xf32>
    %20 = arith.addf %14, %19 : vector<256x256xf32>
    %21 = vector.extract_strided_slice %1 {offsets = [1, 0, 0], sizes = [16, 16, 8], strides = [1, 1, 1]} : vector<18x18x8xbf16> to vector<16x16x8xbf16>
    %22 = vector.shape_cast %21 : vector<16x16x8xbf16> to vector<256x8xbf16>
    %c3 = arith.constant 3 : index
    %c0_13 = arith.constant 0 : index
    %c0_14 = arith.constant 0 : index
    %23 = vector.load %arg2[%c3, %c0_13, %c0_14] : memref<9x8x256xbf16, #tpu.memory_space<vmem>>, vector<1x8x256xbf16>
    %24 = vector.shape_cast %23 : vector<1x8x256xbf16> to vector<8x256xbf16>
    %cst_15 = arith.constant dense<0.000000e+00> : vector<256x256xf32>
    %25 = tpu.matmul %22, %24, %cst_15 {dimension_numbers = #tpu.dot_dimension_numbers<[1], [0], [0], [1], [0, 0, 1, 1], [], []>} : vector<256x8xbf16>, vector<8x256xbf16>, vector<256x256xf32> -> vector<256x256xf32>
    %26 = arith.addf %20, %25 : vector<256x256xf32>
    %27 = vector.extract_strided_slice %1 {offsets = [1, 1, 0], sizes = [16, 16, 8], strides = [1, 1, 1]} : vector<18x18x8xbf16> to vector<16x16x8xbf16>
    %28 = vector.shape_cast %27 : vector<16x16x8xbf16> to vector<256x8xbf16>
    %c4 = arith.constant 4 : index
    %c0_16 = arith.constant 0 : index
    %c0_17 = arith.constant 0 : index
    %29 = vector.load %arg2[%c4, %c0_16, %c0_17] : memref<9x8x256xbf16, #tpu.memory_space<vmem>>, vector<1x8x256xbf16>
    %30 = vector.shape_cast %29 : vector<1x8x256xbf16> to vector<8x256xbf16>
    %cst_18 = arith.constant dense<0.000000e+00> : vector<256x256xf32>
    %31 = tpu.matmul %28, %30, %cst_18 {dimension_numbers = #tpu.dot_dimension_numbers<[1], [0], [0], [1], [0, 0, 1, 1], [], []>} : vector<256x8xbf16>, vector<8x256xbf16>, vector<256x256xf32> -> vector<256x256xf32>
    %32 = arith.addf %26, %31 : vector<256x256xf32>
    %33 = vector.extract_strided_slice %1 {offsets = [1, 2, 0], sizes = [16, 16, 8], strides = [1, 1, 1]} : vector<18x18x8xbf16> to vector<16x16x8xbf16>
    %34 = vector.shape_cast %33 : vector<16x16x8xbf16> to vector<256x8xbf16>
    %c5 = arith.constant 5 : index
    %c0_19 = arith.constant 0 : index
    %c0_20 = arith.constant 0 : index
    %35 = vector.load %arg2[%c5, %c0_19, %c0_20] : memref<9x8x256xbf16, #tpu.memory_space<vmem>>, vector<1x8x256xbf16>
    %36 = vector.shape_cast %35 : vector<1x8x256xbf16> to vector<8x256xbf16>
    %cst_21 = arith.constant dense<0.000000e+00> : vector<256x256xf32>
    %37 = tpu.matmul %34, %36, %cst_21 {dimension_numbers = #tpu.dot_dimension_numbers<[1], [0], [0], [1], [0, 0, 1, 1], [], []>} : vector<256x8xbf16>, vector<8x256xbf16>, vector<256x256xf32> -> vector<256x256xf32>
    %38 = arith.addf %32, %37 : vector<256x256xf32>
    %39 = vector.extract_strided_slice %1 {offsets = [2, 0, 0], sizes = [16, 16, 8], strides = [1, 1, 1]} : vector<18x18x8xbf16> to vector<16x16x8xbf16>
    %40 = vector.shape_cast %39 : vector<16x16x8xbf16> to vector<256x8xbf16>
    %c6 = arith.constant 6 : index
    %c0_22 = arith.constant 0 : index
    %c0_23 = arith.constant 0 : index
    %41 = vector.load %arg2[%c6, %c0_22, %c0_23] : memref<9x8x256xbf16, #tpu.memory_space<vmem>>, vector<1x8x256xbf16>
    %42 = vector.shape_cast %41 : vector<1x8x256xbf16> to vector<8x256xbf16>
    %cst_24 = arith.constant dense<0.000000e+00> : vector<256x256xf32>
    %43 = tpu.matmul %40, %42, %cst_24 {dimension_numbers = #tpu.dot_dimension_numbers<[1], [0], [0], [1], [0, 0, 1, 1], [], []>} : vector<256x8xbf16>, vector<8x256xbf16>, vector<256x256xf32> -> vector<256x256xf32>
    %44 = arith.addf %38, %43 : vector<256x256xf32>
    %45 = vector.extract_strided_slice %1 {offsets = [2, 1, 0], sizes = [16, 16, 8], strides = [1, 1, 1]} : vector<18x18x8xbf16> to vector<16x16x8xbf16>
    %46 = vector.shape_cast %45 : vector<16x16x8xbf16> to vector<256x8xbf16>
    %c7 = arith.constant 7 : index
    %c0_25 = arith.constant 0 : index
    %c0_26 = arith.constant 0 : index
    %47 = vector.load %arg2[%c7, %c0_25, %c0_26] : memref<9x8x256xbf16, #tpu.memory_space<vmem>>, vector<1x8x256xbf16>
    %48 = vector.shape_cast %47 : vector<1x8x256xbf16> to vector<8x256xbf16>
    %cst_27 = arith.constant dense<0.000000e+00> : vector<256x256xf32>
    %49 = tpu.matmul %46, %48, %cst_27 {dimension_numbers = #tpu.dot_dimension_numbers<[1], [0], [0], [1], [0, 0, 1, 1], [], []>} : vector<256x8xbf16>, vector<8x256xbf16>, vector<256x256xf32> -> vector<256x256xf32>
    %50 = arith.addf %44, %49 : vector<256x256xf32>
    %51 = vector.extract_strided_slice %1 {offsets = [2, 2, 0], sizes = [16, 16, 8], strides = [1, 1, 1]} : vector<18x18x8xbf16> to vector<16x16x8xbf16>
    %52 = vector.shape_cast %51 : vector<16x16x8xbf16> to vector<256x8xbf16>
    %c8 = arith.constant 8 : index
    %c0_28 = arith.constant 0 : index
    %c0_29 = arith.constant 0 : index
    %53 = vector.load %arg2[%c8, %c0_28, %c0_29] : memref<9x8x256xbf16, #tpu.memory_space<vmem>>, vector<1x8x256xbf16>
    %54 = vector.shape_cast %53 : vector<1x8x256xbf16> to vector<8x256xbf16>
    %cst_30 = arith.constant dense<0.000000e+00> : vector<256x256xf32>
    %55 = tpu.matmul %52, %54, %cst_30 {dimension_numbers = #tpu.dot_dimension_numbers<[1], [0], [0], [1], [0, 0, 1, 1], [], []>} : vector<256x8xbf16>, vector<8x256xbf16>, vector<256x256xf32> -> vector<256x256xf32>
    %56 = arith.addf %50, %55 : vector<256x256xf32>
    %c0_31 = arith.constant 0 : index
    %c0_32 = arith.constant 0 : index
    %57 = vector.load %arg3[%c0_31, %c0_32] : memref<1x256xf32, #tpu.memory_space<vmem>>, vector<1x256xf32>
    %58 = vector.broadcast %57 : vector<1x256xf32> to vector<256x256xf32>
    %59 = arith.addf %56, %58 : vector<256x256xf32>
    %60 = vector.extract_strided_slice %59 {offsets = [0, 0], sizes = [256, 128], strides = [1, 1]} : vector<256x256xf32> to vector<256x128xf32>
    %61 = vector.extract_strided_slice %59 {offsets = [0, 128], sizes = [256, 128], strides = [1, 1]} : vector<256x256xf32> to vector<256x128xf32>
    %cst_33 = arith.constant 0.000000e+00 : f32
    %62 = vector.broadcast %cst_33 : f32 to vector<256x128xf32>
    %63 = arith.cmpf oge, %60, %62 : vector<256x128xf32>
    %cst_34 = arith.constant 2.000000e-01 : f32
    %64 = vector.broadcast %cst_34 : f32 to vector<256x128xf32>
    %65 = arith.mulf %64, %60 : vector<256x128xf32>
    %66 = arith.select %63, %60, %65 : vector<256x128xi1>, vector<256x128xf32>
    %cst_35 = arith.constant 0.000000e+00 : f32
    %67 = vector.broadcast %cst_35 : f32 to vector<256x128xf32>
    %68 = arith.subf %67, %61 : vector<256x128xf32>
    %69 = math.exp %68 : vector<256x128xf32>
    %cst_36 = arith.constant 1.000000e+00 : f32
    %70 = vector.broadcast %cst_36 : f32 to vector<256x128xf32>
    %71 = arith.addf %70, %69 : vector<256x128xf32>
    %72 = tpu.reciprocal %71 {approx = true} : vector<256x128xf32> -> vector<256x128xf32>
    %73 = arith.mulf %66, %72 : vector<256x128xf32>
    %c0_37 = arith.constant 0 : index
    %c0_38 = arith.constant 0 : index
    %74 = vector.load %arg4[%c0_37, %c0_38] : memref<1x128xf32, #tpu.memory_space<vmem>>, vector<1x128xf32>
    %75 = vector.broadcast %74 : vector<1x128xf32> to vector<256x128xf32>
    %76 = arith.mulf %73, %75 : vector<256x128xf32>
    %c0_39 = arith.constant 0 : index
    %c0_40 = arith.constant 0 : index
    %77 = vector.load %arg5[%c0_39, %c0_40] : memref<1x128xf32, #tpu.memory_space<vmem>>, vector<1x128xf32>
    %78 = vector.broadcast %77 : vector<1x128xf32> to vector<256x128xf32>
    %79 = arith.addf %76, %78 : vector<256x128xf32>
    %c0_41 = arith.constant 0 : index
    %c0_42 = arith.constant 0 : index
    %c0_43 = arith.constant 0 : index
    %80 = vector.load %arg6[%c0_41, %c0_42, %c0_43] : memref<1x256x128xf32, #tpu.memory_space<vmem>>, vector<1x256x128xf32>
    %81 = vector.shape_cast %80 : vector<1x256x128xf32> to vector<256x128xf32>
    %82 = vector.shape_cast %79 : vector<256x128xf32> to vector<1x256x128xf32>
    tpu.vector_store %arg6[%c0_41, %c0_42, %c0_43], %82 {strides = array<i32>} : memref<1x256x128xf32, #tpu.memory_space<vmem>>, vector<1x256x128xf32>,
    return
  }
  func.func @transform_0(%arg0: i32) -> (i32, i32, i32, i32) {
    %c0_i32 = arith.constant 0 : i32
    %c0_i32_0 = arith.constant 0 : i32
    %c0_i32_1 = arith.constant 0 : i32
    %c0_i32_2 = arith.constant 0 : i32
    return %arg0, %c0_i32, %c0_i32_0, %c0_i32_1 : i32, i32, i32, i32
  }
  func.func @transform_1(%arg0: i32) -> (i32, i32, i32) {
    %c0_i32 = arith.constant 0 : i32
    %c0_i32_0 = arith.constant 0 : i32
    %c0_i32_1 = arith.constant 0 : i32
    %c0_i32_2 = arith.constant 0 : i32
    return %c0_i32, %c0_i32_0, %c0_i32_1 : i32, i32, i32
  }
  func.func @transform_2(%arg0: i32) -> (i32, i32) {
    %c0_i32 = arith.constant 0 : i32
    %c0_i32_0 = arith.constant 0 : i32
    %c0_i32_1 = arith.constant 0 : i32
    return %c0_i32, %c0_i32_0 : i32, i32
  }
  func.func @transform_3(%arg0: i32) -> (i32, i32) {
    %c0_i32 = arith.constant 0 : i32
    %c0_i32_0 = arith.constant 0 : i32
    %c0_i32_1 = arith.constant 0 : i32
    return %c0_i32, %c0_i32_0 : i32, i32
  }
  func.func @transform_4(%arg0: i32) -> (i32, i32) {
    %c0_i32 = arith.constant 0 : i32
    %c0_i32_0 = arith.constant 0 : i32
    %c0_i32_1 = arith.constant 0 : i32
    return %c0_i32, %c0_i32_0 : i32, i32
  }
  func.func @transform_5(%arg0: i32) -> (i32, i32, i32) {
    %c0_i32 = arith.constant 0 : i32
    %c0_i32_0 = arith.constant 0 : i32
    %c0_i32_1 = arith.constant 0 : i32
    return %arg0, %c0_i32, %c0_i32_0 : i32, i32, i32
  }
}

</mosaic_0001>

<bundles_post_ra>
// kernel: gated_conv2d_with_activation.2
= control target key start
LH: loop header
LB: loop body
LE: loop exit
PB: predicated region body
PF: predicated region fallthrough
CT: control target
= control target key end

     0   :  { %s5033_s15 = smov 0   ;;  %s6449_s0 = inlined_call_operand.vmem [shape: bf16[2,18,18,8], index: 0, kind: input, shape index: {}]   ;;  %s6450_s1 = inlined_call_operand.vmem [shape: bf16[9,8,256], index: 1, kind: input, shape index: {}]   ;;  %s6451_s2 = inlined_call_operand.vmem [shape: f32[1,256], index: 2, kind: input, shape index: {}]   ;;  %s6452_s3 = inlined_call_operand.vmem [shape: f32[2,1,128], index: 3, kind: output, shape index: {0}]   ;;  %s6453_s4 = inlined_call_operand.vmem [shape: f32[2,1,128], index: 4, kind: output, shape index: {1}]  }
   0x1 LB: > { %s4047_s16 = sadd.s32 4294967295, %s5005_s15   ;;  %p4051_p0 = scmp.ge.s32.totalorder %s5005_s15, 1  ;;  %s5005_s15 = sphi %s5033_s15, %s15_s15  }
   0x2   : > { %p165_p1 = scmp.lt.s32.totalorder %s5005_s15, 3 }
   0x4   : > { %p166_p2 = pnand %p4051_p0, %p165_p1 }
   0x6   : > { %169 = sbr.rel (%p166_p2) target bundleno = 872 (0x368), region = 32 }
   0xd   : > { %v4053_v0 = vld [vmem:[%s6450_s1 + $0x8] sm:$0xff]  ;;  %vm750_vm0 = vcmask 1043456   ;;  %v4197_v1 = vld [vmem:[%s6450_s1 + $0x20] sm:$0xff]  ;;  %p192_p3 = scmp.lt.s32.totalorder %s4047_s16, 1  ;;  %v6466_v7 = vmov 0   ;;  %v5078_v13 = vld [vmem:[%s6450_s1 + $0x30] sm:$0xff] }
   0xe   : > { %v258_v2 = vld [vmem:[%s6450_s1] sm:$0xff]  ;;  %v4071_v3 = vcombine.high %v4053_v0, %v4053_v0  ;;  %v5050_v4 = vcombine.high %v4197_v1, %v4197_v1  ;;  %v4070_v5 = vcombine.low %v4053_v0, %v4053_v0  ;;  %v4199_v6 = vcombine.low %v4197_v1, %v4197_v1  ;;  %789 = vmatprep.mubr.bf16.mxu1 %v6466_v7  ;;  %v4219_v8 = vld [vmem:[%s6450_s1 + $0x28] sm:$0xff] }
   0xf   : > { %v4106_v9 = vcombine.high %v258_v2, %v258_v2  ;;  %2132 = vmatprep.mubr.bf16.mxu0 %v6466_v7  ;;  %v4222_v10 = vcombine.high %v4219_v8, %v4219_v8  ;;  %s6530_s16 = smov (!%p192_p3, %s4047_s16), 1  ;;  %vm259_vm1 = vsmask.f32 3328  ;;  %vm260_vm2 = vsmask.f32 7440 }
  0x10   : > { %6481 = vst [vmem:[#allocation2_spill] sm:$0xff] %v5050_v4  ;;  %4072 = vmatprep.subr.msk.bf16.mxu1 %vm750_vm0, %v4071_v3  ;;  %4201 = vmatprep.subr.msk.bf16.mxu0 %vm750_vm0, %v5050_v4  ;;  %v752_v11 = vsel %vm750_vm0, %v4070_v5, 0  ;;  %v5064_v12 = vsel %vm750_vm0, %v4199_v6, 0  ;;  %s4820_s25 = smul.u32 216, %s6530_s16  ;;  %v4105_v17 = vcombine.low %v258_v2, %v258_v2  ;;  %vm701_vm3 = vcmask 64512   ;;  %vm5107_vm4 = vmor %vm259_vm1, %vm260_vm2  ;;  %s199_s19 = scalar_lea.vmem %s6452_s3, %s6530_s16 }
  0x11   : > { %6482 = vst [vmem:[#allocation3_spill] sm:$0xff] %v5064_v12  ;;  %758 = vmatpush1.bf16.msra.mxu1 %v752_v11  ;;  %2101 = vmatpush1.bf16.msra.mxu0 %v5064_v12  ;;  %v4221_v26 = vcombine.low %v4219_v8, %v4219_v8  ;;  %v4243_v27 = vcombine.high %v5078_v13, %v5078_v13  ;;  %vm1298_vm5 = vcmask 1042432   ;;  %vm1299_vm6 = vcmask 1046532   ;;  %s202_s22 = scalar_lea.vmem %s6453_s4, %s6530_s16 }
  0x12   : > { %4107 = vmatprep.subr.msk.bf16.mxu1 %vm750_vm0, %v4106_v9  ;;  %4223 = vmatprep.subr.msk.bf16.mxu0 %vm750_vm0, %v4222_v10  ;;  %s5073_s28 = scalar_lea.vmem %s6449_s0, %s4820_s25  ;;  %v1084_v44 = vsel %vm750_vm0, %v4105_v17, 0  ;;  %vm5297_vm7 = vmor %vm1298_vm5, %vm1299_vm6 }
  0x13   : > { %v204_v14 = vld [vmem:[%s5073_s28] sm:$0xf]  ;;  %v205_v15 = vld [vmem:[%s5073_s28 + $0x4] sm:$0xf]  ;;  %v206_v16 = vld [vmem:[%s5073_s28 + $0x8] sm:$0x1] }
  0x14   : > { %v263_v18 = vshrl.u32 %v204_v14, 16  ;;  %v266_v19 = vshll.u32 %v204_v14, 16  ;;  %v272_v20 = vshll.u32 %v205_v15, 16  ;;  %v276_v21 = vshrl.u32 %v205_v15, 16  ;;  %v5084_v22 = vld [vmem:[%s5073_s28 + $0xc] sm:$0xf] }
  0x15   : > { %v282_v23 = vshll.u32 %v206_v16, 16  ;;  %v5087_v24 = vld [vmem:[%s5073_s28 + $0x10] sm:$0xf]  ;;  %v287_v25 = vshrl.u32 %v5084_v22, 16  ;;  %v5093_v32 = vld [vmem:[%s5073_s28 + $0x14] sm:$0x1] }
  0x16   : > { %v265_v28 = vrot.slane %v263_v18, 4  ;;  %v268_v29 = vrot.slane %v266_v19, 5  ;;  %v274_v30 = vrot.slane %v272_v20, 5  ;;  %v278_v31 = vrot.slane %v276_v21, 4  ;;  %v5100_v41 = vld [vmem:[%s5073_s28 + $0x18] sm:$0xf] }
  0x17   : > { %v284_v33 = vrot.slane %v282_v23, 5  ;;  %v289_v34 = vrot.slane %v287_v25, 4  ;;  %v290_v35 = vshll.u32 %v5084_v22, 16  ;;  %v296_v36 = vshll.u32 %v5087_v24, 16  ;;  %6483 = vst [vmem:[#allocation4_spill] sm:$0xff] %v5100_v41 }
  0x18   : > { %v269_v37 = vor.u32 %v268_v29, %v265_v28  ;;  %v279_v38 = vor.u32 %v278_v31, %v274_v30  ;;  %v300_v39 = vshrl.u32 %v5087_v24, 16  ;;  %v306_v40 = vshll.u32 %v5093_v32, 16  ;;  %v5103_v42 = vld [vmem:[%s5073_s28 + $0x1c] sm:$0xf]  ;;  %v5114_v53 = vld [vmem:[%s5073_s28 + $0x20] sm:$0x1] }
  0x19   : > { %v292_v45 = vrot.slane %v290_v35, 5  ;;  %v298_v46 = vrot.slane %v296_v36, 5  ;;  %v2379_v47 = vsel %vm750_vm0, %v4221_v26, 0  ;;  %v311_v54 = vshrl.u32 %v5100_v41, 16  ;;  %v5125_v61 = vld [vmem:[%s5073_s28 + $0x24] sm:$0xf] }
  0x1a   : > { %v270_v48 = vrot.slane %v269_v37, 4  ;;  %v280_v49 = vrot.slane %v279_v38, 4  ;;  %v302_v50 = vrot.slane %v300_v39, 4  ;;  %v308_v51 = vrot.slane %v306_v40, 5  ;;  %6486 = vst [vmem:[#allocation5_spill] sm:$0xff] %v5125_v61 }
  0x1b   : > { %v293_v52 = vor.u32 %v292_v45, %v289_v34  ;;  %v314_v55 = vshll.u32 %v5100_v41, 16  ;;  %v320_v56 = vshll.u32 %v5103_v42, 16  ;;  %v324_v60 = vshrl.u32 %v5103_v42, 16  ;;  %v5128_v2 = vld [vmem:[%s5073_s28 + $0x28] sm:$0xf] }
  0x1c   : > { %v275_v57 = vsel %vm5107_vm4, %v270_v48, %v274_v30  ;;  %v285_v58 = vsel %vm5107_vm4, %v280_v49, %v284_v33  ;;  %v303_v59 = vor.u32 %v302_v50, %v298_v46  ;;  %v313_v0 = vrot.slane %v311_v54, 4  ;;  %6487 = vst [vmem:[#allocation6_spill] sm:$0xff] %v5128_v2  ;;  %v5140_v18 = vld [vmem:[%s5073_s28 + $0x2c] sm:$0x1]  ;;  %v5144_v20 = vld [vmem:[%s5073_s28 + $0x30] sm:$0xf] }
  0x1d   : > { %v4054_v62 = vcombine.low %v275_v57, %v285_v58  ;;  %v294_v63 = vrot.slane %v293_v52, 4  ;;  %v316_v1 = vrot.slane %v314_v55, 5  ;;  %v322_v5 = vrot.slane %v320_v56, 5  ;;  %6488 = vst [vmem:[#allocation7_spill] sm:$0xff] %v5144_v20  ;;  %v5147_v28 = vld [vmem:[%s5073_s28 + $0x34] sm:$0xf] }
  0x1e   : > { %v304_v3 = vrot.slane %v303_v59, 4  ;;  %v326_v6 = vrot.slane %v324_v60, 4  ;;  %v330_v8 = vshll.u32 %v5114_v53, 16  ;;  %v335_v11 = vshrl.u32 %v5125_v61, 16  ;;  %6489 = vst [vmem:[#allocation8_spill] sm:$0xff] %v5147_v28 }
  0x1f   : > { %4073 = vmatmul.mubr.msk.bf16.vlgmr.msra.gmra.mrb[0].mxu1 %vm701_vm3, %v4054_v62  ;;  %v299_v9 = vsel %vm5107_vm4, %v294_v63, %v298_v46  ;;  %v317_v10 = vor.u32 %v316_v1, %v313_v0  ;;  %v338_v14 = vshll.u32 %v5125_v61, 16  ;;  %v344_v19 = vshll.u32 %v5128_v2, 16  ;;  %v5169_v48 = vld [vmem:[%s5073_s28 + $0x38] sm:$0x1]  ;;  %v5173_v56 = vld [vmem:[%s5073_s28 + $0x3c] sm:$0xf] }
  0x20   : > { %1090 = vmatpush1.bf16.msra.mxu1 %v1084_v44  ;;  %v309_v15 = vsel %vm5107_vm4, %v304_v3, %v308_v51  ;;  %799 = vmatprep.mubr.bf16.mxu1 %v6466_v7  ;;  %v327_v16 = vor.u32 %v326_v6, %v322_v5  ;;  %v332_v17 = vrot.slane %v330_v8, 5  ;;  %v337_v25 = vrot.slane %v335_v11, 4  ;;  %v5195_v8 = vld [vmem:[%s5073_s28 + $0x44] sm:$0x1] }
  0x21   : > { %v4055_v21 = vcombine.low %v299_v9, %v309_v15  ;;  %v318_v23 = vrot.slane %v317_v10, 4  ;;  %v340_v26 = vrot.slane %v338_v14, 5  ;;  %v346_v30 = vrot.slane %v344_v19, 5  ;;  %v5202_v19 = vld [vmem:[%s5073_s28 + $0x4c] sm:$0xf] }
  0x22   : > { %v328_v29 = vrot.slane %v327_v16, 4  ;;  %v348_v31 = vshrl.u32 %v5128_v2, 16  ;;  %v354_v34 = vshll.u32 %v5140_v18, 16  ;;  %v359_v35 = vshrl.u32 %v5144_v20, 16 }
  0x23   : > { %4202 = vmatmul.mubr.msk.bf16.vlgmr.msra.gmra.mrb[0].mxu0 %vm701_vm3, %v4055_v21  ;;  %v341_v33 = vor.u32 %v340_v26, %v337_v25  ;;  %v362_v36 = vshll.u32 %v5144_v20, 16  ;;  %v323_v37 = vsel %vm5107_vm4, %v318_v23, %v322_v5  ;;  %v368_v40 = vshll.u32 %v5147_v28, 16 }
  0x24   : > { %2385 = vmatpush1.bf16.msra.mxu0 %v2379_v47  ;;  %2142 = vmatprep.mubr.bf16.mxu0 %v6466_v7  ;;  %v333_v38 = vsel %vm5107_vm4, %v328_v29, %v332_v17  ;;  %v350_v39 = vrot.slane %v348_v31, 4  ;;  %v372_v45 = vshrl.u32 %v5147_v28, 16  ;;  %v361_v49 = vrot.slane %v359_v35, 4  ;;  %v5199_v17 = vld [vmem:[%s5073_s28 + $0x48] sm:$0xf] }
  0x25   : > { %4244 = vmatprep.subr.msk.bf16.mxu0 %vm750_vm0, %v4243_v27  ;;  %v5166_v46 = vcombine.low %v323_v37, %v333_v38  ;;  %v342_v47 = vrot.slane %v341_v33, 4  ;;  %v364_v50 = vrot.slane %v362_v36, 5  ;;  %v356_v52 = vrot.slane %v354_v34, 5  ;;  %v5176_v27 = vld [vmem:[%s5073_s28 + $0x40] sm:$0xf] }
  0x26   : > { %v351_v44 = vor.u32 %v350_v39, %v346_v30  ;;  %v370_v54 = vrot.slane %v368_v40, 5  ;;  %v374_v55 = vrot.slane %v372_v45, 4  ;;  %v378_v57 = vshll.u32 %v5169_v48, 16  ;;  %v5217_v35 = vld [vmem:[%s5073_s28 + $0x50] sm:$0x1] }
  0x27   : > { %4074 = vmatmul.mubr.msk.bf16.gmra.mrb[4].mxu1 %vm701_vm3, %v4055_v21  ;;  %6490 = vst [vmem:[#allocation9_spill] sm:$0xff] %v5166_v46  ;;  %v347_v58 = vsel %vm5107_vm4, %v342_v47, %v346_v30  ;;  %v365_v59 = vor.u32 %v364_v50, %v361_v49  ;;  %v383_v60 = vshrl.u32 %v5173_v56, 16  ;;  %v386_v62 = vshll.u32 %v5173_v56, 16  ;;  %v5224_v40 = vld [vmem:[%s5073_s28 + $0x54] sm:$0xf] }
  0x28   : > { %809 = vmatprep.mubr.bf16.mxu1 %v6466_v7  ;;  %v352_v51 = vrot.slane %v351_v44, 4  ;;  %v375_v0 = vor.u32 %v374_v55, %v370_v54  ;;  %v392_v1 = vshll.u32 %v5176_v27, 16  ;;  %v396_v3 = vshrl.u32 %v5176_v27, 16  ;;  %v5228_v50 = vld [vmem:[%s5073_s28 + $0x58] sm:$0xf] }
  0x29   : > { %v366_v6 = vrot.slane %v365_v59, 4  ;;  %v385_v9 = vrot.slane %v383_v60, 4  ;;  %v388_v10 = vrot.slane %v386_v62, 5  ;;  %v380_v14 = vrot.slane %v378_v57, 5 }
  0x2a   : > { %v357_v63 = vsel %vm5107_vm4, %v352_v51, %v356_v52  ;;  %v376_v11 = vrot.slane %v375_v0, 4  ;;  %v394_v15 = vrot.slane %v392_v1, 5  ;;  %v398_v16 = vrot.slane %v396_v3, 4  ;;  %v5247_v3 = vld [vmem:[%s5073_s28 + $0x5c] sm:$0x1] }
  0x2b   : > { %4203 = vmatmul.mubr.msk.bf16.gmra.mrb[4].mxu0 %vm701_vm3, %v5166_v46  ;;  %v5192_v5 = vcombine.low %v347_v58, %v357_v63  ;;  %v402_v21 = vshll.u32 %v5195_v8, 16  ;;  %v371_v23 = vsel %vm5107_vm4, %v366_v6, %v370_v54  ;;  %v389_v25 = vor.u32 %v388_v10, %v385_v9  ;;  %v5250_v10 = vld [vmem:[%s5073_s28 + $0x60] sm:$0xf] }
  0x2c   : > { %2152 = vmatprep.mubr.bf16.mxu0 %v6466_v7  ;;  %v407_v26 = vshrl.u32 %v5199_v17, 16  ;;  %v410_v29 = vshll.u32 %v5199_v17, 16  ;;  %v381_v30 = vsel %vm5107_vm4, %v376_v11, %v380_v14  ;;  %v399_v31 = vor.u32 %v398_v16, %v394_v15  ;;  %v5254_v16 = vld [vmem:[%s5073_s28 + $0x64] sm:$0xf] }
  0x2d   : > { %6491 = vst [vmem:[#allocation10_spill] sm:$0xff] %v5192_v5  ;;  %v416_v33 = vshll.u32 %v5202_v19, 16  ;;  %v420_v34 = vshrl.u32 %v5202_v19, 16  ;;  %v5221_v36 = vcombine.low %v371_v23, %v381_v30  ;;  %v390_v37 = vrot.slane %v389_v25, 4 }
  0x2e   : > { %v404_v38 = vrot.slane %v402_v21, 5  ;;  %v409_v39 = vrot.slane %v407_v26, 4  ;;  %v400_v44 = vrot.slane %v399_v31, 4  ;;  %v412_v45 = vrot.slane %v410_v29, 5 }
  0x2f   : > { %4075 = vmatmul.mubr.msk.bf16.gmra.mrb[8].mxu1 %vm701_vm3, %v5166_v46  ;;  %6492 = vst [vmem:[#allocation11_spill] sm:$0xff] %v5221_v36  ;;  %v418_v47 = vrot.slane %v416_v33, 5  ;;  %v422_v49 = vrot.slane %v420_v34, 4  ;;  %v431_v51 = vshrl.u32 %v5224_v40, 16  ;;  %v434_v52 = vshll.u32 %v5224_v40, 16 }
  0x30   : > { %819 = vmatprep.mubr.bf16.mxu1 %v6466_v7  ;;  %v426_v54 = vshll.u32 %v5217_v35, 16  ;;  %v440_v55 = vshll.u32 %v5228_v50, 16  ;;  %v444_v57 = vshrl.u32 %v5228_v50, 16  ;;  %v395_v58 = vsel %vm5107_vm4, %v390_v37, %v394_v15 }
  0x31   : > { %v405_v59 = vsel %vm5107_vm4, %v400_v44, %v404_v38  ;;  %v413_v60 = vor.u32 %v412_v45, %v409_v39  ;;  %v423_v62 = vor.u32 %v422_v49, %v418_v47  ;;  %v433_v63 = vrot.slane %v431_v51, 4 }
  0x32   : > { %v436_v0 = vrot.slane %v434_v52, 5  ;;  %v5244_v1 = vcombine.low %v395_v58, %v405_v59  ;;  %v442_v6 = vrot.slane %v440_v55, 5  ;;  %v446_v9 = vrot.slane %v444_v57, 4  ;;  %v5274_v52 = vld [vmem:[%s5073_s28 + $0x68] sm:$0x1] }
  0x33   : > { %4204 = vmatmul.mubr.msk.bf16.gmra.mrb[8].mxu0 %vm701_vm3, %v5192_v5  ;;  %v414_v11 = vrot.slane %v413_v60, 4  ;;  %v424_v14 = vrot.slane %v423_v62, 4  ;;  %v428_v15 = vrot.slane %v426_v54, 5  ;;  %v450_v23 = vshll.u32 %v5247_v3, 16  ;;  %v5280_v55 = vld [vmem:[%s5073_s28 + $0x6c] sm:$0xf] }
  0x34   : > { %2162 = vmatprep.mubr.bf16.mxu0 %v6466_v7  ;;  %6493 = vst [vmem:[#allocation12_spill] sm:$0xff] %v5244_v1  ;;  %v437_v21 = vor.u32 %v436_v0, %v433_v63  ;;  %v455_v25 = vshrl.u32 %v5250_v10, 16  ;;  %v458_v26 = vshll.u32 %v5250_v10, 16  ;;  %v447_v29 = vor.u32 %v446_v9, %v442_v6  ;;  %v5284_v57 = vld [vmem:[%s5073_s28 + $0x70] sm:$0xf] }
  0x35   : > { %v464_v30 = vshll.u32 %v5254_v16, 16  ;;  %v468_v31 = vshrl.u32 %v5254_v16, 16  ;;  %v419_v33 = vsel %vm5107_vm4, %v414_v11, %v418_v47  ;;  %v429_v34 = vsel %vm5107_vm4, %v424_v14, %v428_v15 }
  0x36   : > { %v1310_v37 = vrot.slane %v5087_v24, 5  ;;  %v438_v38 = vrot.slane %v437_v21, 4  ;;  %v452_v39 = vrot.slane %v450_v23, 5  ;;  %v457_v44 = vrot.slane %v455_v25, 4 }
  0x37   : > { %4076 = vmatmul.mubr.msk.bf16.gmra.mrb[12].mxu1 %vm701_vm3, %v5192_v5  ;;  %v460_v45 = vrot.slane %v458_v26, 5  ;;  %v5271_v49 = vcombine.low %v419_v33, %v429_v34  ;;  %v448_v51 = vrot.slane %v447_v29, 4  ;;  %v5276_v54 = vrot.slane %v464_v30, 5  ;;  %v5309_v26 = vld [vmem:[%s5073_s28 + $0x78] sm:$0xf] }
  0x38   : > { %829 = vmatprep.mubr.bf16.mxu1 %v6466_v7  ;;  %v470_v47 = vrot.slane %v468_v31, 4  ;;  %v1313_v24 = vrot.slane %v5093_v32, 5  ;;  %v443_v58 = vsel %vm5107_vm4, %v438_v38, %v442_v6  ;;  %v474_v60 = vshll.u32 %v5274_v52, 16  ;;  %v5312_v29 = vld [vmem:[%s5073_s28 + $0x7c] sm:$0xf] }
  0x39   : > { %6494 = vst [vmem:[#allocation13_spill] sm:$0xff] %v5271_v49  ;;  %v461_v59 = vor.u32 %v460_v45, %v457_v44  ;;  %v4125_v62 = vrot.slane %v5084_v22, 9  ;;  %v453_v32 = vsel %vm5107_vm4, %v448_v51, %v452_v39  ;;  %v1312_v0 = vrot.slane %v1310_v37, 4  ;;  %v5321_v38 = vld [vmem:[%s5073_s28 + $0x84] sm:$0xf] }
  0x3a   : > { %v471_v63 = vor.u32 %v470_v47, %v5276_v54  ;;  %v479_v9 = vshrl.u32 %v5280_v55, 16  ;;  %v482_v22 = vshll.u32 %v5280_v55, 16  ;;  %v488_v11 = vshll.u32 %v5284_v57, 16  ;;  %v5324_v39 = vld [vmem:[%s5073_s28 + $0x88] sm:$0xf] }
  0x3b   : > { %4205 = vmatmul.mubr.msk.bf16.gmra.mrb[12].mxu0 %vm701_vm3, %v5221_v36  ;;  %v492_v14 = vshrl.u32 %v5284_v57, 16  ;;  %v5304_v15 = vcombine.low %v443_v58, %v453_v32  ;;  %v462_v21 = vrot.slane %v461_v59, 4  ;;  %v476_v23 = vrot.slane %v474_v60, 5 }
  0x3c   : > { %2172 = vmatprep.mubr.bf16.mxu0 %v6466_v7  ;;  %v4242_v25 = vcombine.low %v5078_v13, %v5078_v13  ;;  %v472_v30 = vrot.slane %v471_v63, 4  ;;  %v1311_v31 = vsel %vm5297_vm7, %v4125_v62, %v1310_v37  ;;  %v1314_v33 = vsel %vm5297_vm7, %v1312_v0, %v1313_v24  ;;  %v5328_v13 = vld [vmem:[%s5073_s28 + $0x74] sm:$0x1] }
  0x3d   : > { %6497 = vst [vmem:[#allocation14_spill] sm:$0xff] %v5304_v15  ;;  %v481_v34 = vrot.slane %v479_v9, 4  ;;  %v484_v44 = vrot.slane %v482_v22, 5  ;;  %v5330_v45 = vrot.slane %v488_v11, 5  ;;  %v494_v51 = vrot.slane %v492_v14, 4 }
  0x3e   : > { %v1317_v47 = vrot.slane %v5103_v42, 5  ;;  %v503_v37 = vshrl.u32 %v5309_v26, 16  ;;  %v506_v58 = vshll.u32 %v5309_v26, 16  ;;  %v512_v24 = vshll.u32 %v5312_v29, 16 }
  0x3f   : > { %4077 = vmatmul.mubr.msk.bf16.gmra.mrb[16].mxu1 %vm701_vm3, %v5221_v36  ;;  %v516_v59 = vshrl.u32 %v5312_v29, 16  ;;  %v527_v60 = vshrl.u32 %v5321_v38, 16  ;;  %v530_v62 = vshll.u32 %v5321_v38, 16  ;;  %v536_v32 = vshll.u32 %v5324_v39, 16  ;;  %v5354_v36 = vld [vmem:[%s5073_s28 + $0x80] sm:$0x1] }
  0x40   : > { %839 = vmatprep.mubr.bf16.mxu1 %v6466_v7  ;;  %v540_v63 = vshrl.u32 %v5324_v39, 16  ;;  %v467_v0 = vsel %vm5107_vm4, %v462_v21, %v5276_v54  ;;  %v477_v9 = vsel %vm5107_vm4, %v472_v30, %v476_v23  ;;  %v498_v22 = vshll.u32 %v5328_v13, 16  ;;  %v5359_v23 = vld [vmem:[%s5073_s28 + $0x8c] sm:$0x1] }
  0x41   : > { %v4126_v11 = vrot.slane %v5100_v41, 9  ;;  %v485_v14 = vor.u32 %v484_v44, %v481_v34  ;;  %v495_v12 = vor.u32 %v494_v51, %v5330_v45  ;;  %v505_v5 = vrot.slane %v503_v37, 4 }
  0x42   : > { %v508_v46 = vrot.slane %v506_v58, 5  ;;  %v5356_v54 = vrot.slane %v512_v24, 5  ;;  %v518_v21 = vrot.slane %v516_v59, 4  ;;  %v529_v30 = vrot.slane %v527_v60, 4 }
  0x43   : > { %4206 = vmatmul.mubr.msk.bf16.gmra.mrb[16].mxu0 %vm701_vm3, %v5244_v1  ;;  %v532_v4 = vrot.slane %v530_v62, 5  ;;  %v5361_v41 = vrot.slane %v536_v32, 5  ;;  %v542_v34 = vrot.slane %v540_v63, 4  ;;  %v5367_v44 = vcombine.low %v1311_v31, %v1314_v33  ;;  %v5376_v62 = vld [vmem:[%s5073_s28 + $0x90] sm:$0xf] }
  0x44   : > { %2182 = vmatprep.mubr.bf16.mxu0 %v6466_v7  ;;  %v2657_v51 = vsel %vm750_vm0, %v4242_v25, 0  ;;  %v522_v37 = vshll.u32 %v5354_v36, 16  ;;  %v486_v58 = vrot.slane %v485_v14, 4  ;;  %v500_v24 = vrot.slane %v498_v22, 5  ;;  %v5383_v63 = vld [vmem:[%s5073_s28 + $0x94] sm:$0xf] }
  0x45   : > { %6499 = vst [vmem:[#allocation16_spill] sm:$0xff] %v5367_v44  ;;  %v1318_v59 = vsel %vm5297_vm7, %v4126_v11, %v1317_v47  ;;  %v1324_v60 = vrot.slane %v5128_v2, 5  ;;  %v509_v31 = vor.u32 %v508_v46, %v505_v5  ;;  %v519_v33 = vor.u32 %v518_v21, %v5356_v54 }
  0x46   : > { %v546_v25 = vshll.u32 %v5359_v23, 16  ;;  %v543_v22 = vor.u32 %v542_v34, %v5361_v41  ;;  %v524_v11 = vrot.slane %v522_v37, 5  ;;  %v4127_v14 = vrot.slane %v5125_v61, 9 }
  0x47   : > { %4078 = vmatmul.mubr.msk.bf16.gmra.mrb[20].mxu1 %vm701_vm3, %v5244_v1  ;;  %v1320_v1 = vrot.slane %v5114_v53, 5  ;;  %v5365_v53 = vcombine.low %v467_v0, %v477_v9  ;;  %v496_v0 = vrot.slane %v495_v12, 4  ;;  %v533_v9 = vor.u32 %v532_v4, %v529_v30 }
  0x48   : > { %849 = vmatprep.mubr.bf16.mxu1 %v6466_v7  ;;  %v551_v46 = vshrl.u32 %v5376_v62, 16  ;;  %v554_v5 = vshll.u32 %v5376_v62, 16  ;;  %v1327_v4 = vrot.slane %v5140_v18, 5  ;;  %v560_v12 = vshll.u32 %v5383_v63, 16 }
  0x49   : > { %6498 = vst [vmem:[#allocation15_spill] sm:$0xff] %v5365_v53  ;;  %v510_v21 = vrot.slane %v509_v31, 4  ;;  %v520_v30 = vrot.slane %v519_v33, 4  ;;  %v548_v34 = vrot.slane %v546_v25, 5  ;;  %v4128_v37 = vrot.slane %v5144_v20, 9 }
  0x4a   : > { %v1334_v2 = vrot.slane %v5169_v48, 5  ;;  %v491_v18 = vsel %vm5107_vm4, %v486_v58, %v5330_v45  ;;  %v5406_v31 = vld [vmem:[%s5073_s28 + $0x98] sm:$0x1]  ;;  %v553_v33 = vrot.slane %v551_v46, 4  ;;  %v556_v25 = vrot.slane %v554_v5, 5 }
  0x4b   : > { %4207 = vmatmul.mubr.msk.bf16.gmra.mrb[20].mxu0 %vm701_vm3, %v5271_v49  ;;  %v1325_v48 = vsel %vm5297_vm7, %v4127_v14, %v1324_v60  ;;  %v515_v58 = vsel %vm5107_vm4, %v510_v21, %v5356_v54  ;;  %v5438_v14 = vld [vmem:[%s5073_s28 + $0x9c] sm:$0xf]  ;;  %v1366_v21 = vrot.slane %v5284_v57, 5 }
  0x4c   : > { %2192 = vmatprep.mubr.bf16.mxu0 %v6466_v7  ;;  %v557_v5 = vor.u32 %v556_v25, %v553_v33 }
  0x4f   : > { %4079 = vmatmul.mubr.msk.bf16.gmra.mrb[24].mxu1 %vm701_vm3, %v5271_v49  ;;  %v1319_v49 = vrot.slane %v1317_v47, 4  ;;  %v1331_v47 = vrot.slane %v5147_v28, 5  ;;  %v544_v28 = vrot.slane %v543_v22, 4 }
  0x50   : > { %859 = vmatprep.mubr.bf16.mxu1 %v6466_v7 }
  0x51   : > { %v1321_v32 = vsel %vm5297_vm7, %v1319_v49, %v1320_v1  ;;  %v1326_v1 = vrot.slane %v1324_v60, 4  ;;  %v564_v49 = vshrl.u32 %v5383_v63, 16  ;;  %v1333_v61 = vrot.slane %v1331_v47, 4  ;;  %v5427_v60 = vld [vmem:[%s6450_s1 + $0x10] sm:$0xff] }
  0x52   : > { %v5415_v45 = vcombine.low %v1318_v59, %v1321_v32  ;;  %v549_v32 = vsel %vm5107_vm4, %v544_v28, %v548_v34 }
  0x53   : > { %4208 = vmatmul.mubr.msk.bf16.gmra.mrb[24].mxu0 %vm701_vm3, %v5304_v15  ;;  %v1328_v22 = vsel %vm5297_vm7, %v1326_v1, %v1327_v4  ;;  %v566_v20 = vrot.slane %v564_v49, 4  ;;  %v1335_v54 = vsel %vm5297_vm7, %v1333_v61, %v1334_v2  ;;  %v4158_v2 = vcombine.high %v5427_v60, %v5427_v60  ;;  %v5459_v4 = vld [vmem:[%s5073_s28 + $0xa0] sm:$0xf] }
  0x54   : > { %2202 = vmatprep.mubr.bf16.mxu0 %v6466_v7  ;;  %6501 = vst [vmem:[#allocation17_spill] sm:$0xff] %v5415_v45  ;;  %v5444_v46 = vcombine.low %v1325_v48, %v1328_v22  ;;  %v578_v49 = vshll.u32 %v5438_v14, 16  ;;  %v584_v25 = vshll.u32 %v5459_v4, 16  ;;  %v1368_v22 = vrot.slane %v1366_v21, 4 }
  0x55   : > { %4159 = vmatprep.subr.msk.bf16.mxu1 %vm750_vm0, %v4158_v2  ;;  %v1383_v2 = vrot.slane %v5359_v23, 5 }
  0x56   : > { %6503 = vst [vmem:[#allocation19_spill] sm:$0xff] %v5444_v46 }
  0x57   : > { %4080 = vmatmul.mubr.msk.bf16.gmra.mrb[28].mxu1 %vm701_vm3, %v5304_v15  ;;  %v534_v15 = vrot.slane %v533_v9, 4  ;;  %v6500_v9 = vmov 0  }
  0x58   : > { %869 = vmatprep.mubr.bf16.mxu1 %v6466_v7 }
  0x59   : > { %v539_v59 = vsel %vm5107_vm4, %v534_v15, %v5361_v41  ;;  %v6470_v41 = vrot.slane %v5176_v27, 5 }
  0x5a   : > { %v5453_v15 = vcombine.low %v539_v59, %v549_v32  ;;  %v1376_v59 = vrot.slane %v5354_v36, 5  ;;  %v5489_v32 = vrot.slane %v578_v49, 5 }
  0x5b   : > { %4209 = vmatmul.mubr.msk.bf16.gmra.mrb[28].mxu0 %vm701_vm3, %v5365_v53  ;;  %v5474_v34 = vrot.slane %v6470_v41, 4 }
  0x5c   : > { %2416 = vmatprep.mubr.bf16.mxu0 %v6466_v7  ;;  %v501_v7 = vsel %vm5107_vm4, %v496_v0, %v500_v24  ;;  %v525_v24 = vsel %vm5107_vm4, %v520_v30, %v524_v11  ;;  %v1332_v0 = vsel %vm5297_vm7, %v4128_v37, %v1331_v47  ;;  %v570_v11 = vshll.u32 %v5406_v31, 16 }
  0x5d   : > { %v5442_v47 = vcombine.low %v491_v18, %v501_v7  ;;  %v5448_v28 = vcombine.low %v515_v58, %v525_v24  ;;  %v5455_v1 = vcombine.low %v1332_v0, %v1335_v54  ;;  %v5470_v30 = vrot.slane %v557_v5, 4 }
  0x5e   : > { %v1369_v18 = vrot.slane %v5328_v13, 5  ;;  %v4134_v24 = vrot.slane %v5309_v26, 9  ;;  %v1373_v0 = vrot.slane %v5312_v29, 5  ;;  %v4135_v54 = vrot.slane %v5321_v38, 9 }
  0x5f   : > { %4081 = vmatmul.mubr.msk.bf16.gmra.mrb[32].mxu1 %vm701_vm3, %v5365_v53  ;;  %v5413_v53 = vrot.slane %v560_v12, 5  ;;  %6502 = vst [vmem:[#allocation18_spill] sm:$0xff] %v5442_v47  ;;  %6504 = vst [vmem:[#allocation20_spill] sm:$0xff] %v5448_v28  ;;  %v575_v12 = vshrl.u32 %v5438_v14, 16 }
  0x60   : > { %879 = vmatprep.mubr.bf16.mxu1 %v6500_v9  ;;  %v1370_v13 = vsel %vm5297_vm7, %v1368_v22, %v1369_v18  ;;  %v1375_v36 = vrot.slane %v1373_v0, 4  ;;  %v1390_v22 = vrot.slane %v5406_v31, 5  ;;  %v5531_v31 = vld [vmem:[%s5073_s28 + $0xb0] sm:$0x1] }
  0x61   : > { %v567_v61 = vor.u32 %v566_v20, %v5413_v53  ;;  %v4133_v20 = vrot.slane %v5280_v55, 9  ;;  %v5484_v58 = vrot.slane %v575_v12, 4  ;;  %v588_v12 = vshrl.u32 %v5459_v4, 16 }
  0x62   : > { %v563_v18 = vsel %vm5107_vm4, %v5470_v30, %v5413_v53  ;;  %v1377_v23 = vsel %vm5297_vm7, %v1375_v36, %v1376_v59  ;;  %v1394_v53 = vrot.slane %v5459_v4, 5  ;;  %v5528_v30 = vld [vmem:[%s5073_s28 + $0xac] sm:$0xf] }
  0x63   : > { %4224 = vmatmul.mubr.msk.bf16.vlgmr.msra.gmra.mrb[0].mxu0 %vm701_vm3, %v5367_v44  ;;  %v5479_v33 = vrot.slane %v567_v61, 4  ;;  %v1367_v48 = vsel %vm5297_vm7, %v4133_v20, %v1366_v21  ;;  %v1374_v61 = vsel %vm5297_vm7, %v4134_v24, %v1373_v0  ;;  %v4136_v21 = vrot.slane %v5376_v62, 9  ;;  %v245_v24 = vld [vmem:[%s5073_s28 + $0xa4] sm:$0x1]  ;;  %v5517_v0 = vld [vmem:[%s5073_s28 + $0xa8] sm:$0xf] }
  0x64   : > { %2663 = vmatpush1.bf16.msra.mxu0 %v2657_v51  ;;  %2426 = vmatprep.mubr.bf16.mxu0 %v6500_v9  ;;  %v5462_v51 = vrot.slane %v570_v11, 5  ;;  %v1380_v11 = vrot.slane %v5324_v39, 5  ;;  %v5497_v5 = vcombine.low %v1367_v48, %v1370_v13  ;;  %v1387_v48 = vrot.slane %v5383_v63, 5 }
  0x65   : > { %v5519_v13 = vcombine.low %v1374_v61, %v1377_v23  ;;  %v5541_v23 = vld [vmem:[%s5073_s28 + $0xb4] sm:$0xf]  ;;  %v1396_v7 = vrot.slane %v1394_v53, 4  ;;  %v4138_v41 = vrot.slane %v5517_v0, 9 }
  0x66   : > { %v1381_v49 = vsel %vm5297_vm7, %v4135_v54, %v1380_v11  ;;  %v1382_v20 = vrot.slane %v1380_v11, 4  ;;  %v4137_v11 = vrot.slane %v5438_v14, 9  ;;  %v1388_v61 = vsel %vm5297_vm7, %v4136_v21, %v1387_v48 }
  0x67   : > { %4082 = vmatmul.mubr.msk.bf16.gmra.mrb[36].mxu1 %vm701_vm3, %v5442_v47  ;;  %v1389_v36 = vrot.slane %v1387_v48, 4  ;;  %v1401_v48 = vrot.slane %v5528_v30, 5 }
  0x68   : > { %889 = vmatprep.mubr.bf16.mxu1 %v6500_v9  ;;  %v1384_v54 = vsel %vm5297_vm7, %v1382_v20, %v1383_v2  ;;  %v1397_v2 = vrot.slane %v245_v24, 5  ;;  %v5538_v20 = vrot.slane %v584_v25, 5  ;;  %v1395_v37 = vsel %vm5297_vm7, %v4137_v11, %v1394_v53  ;;  %v5554_v25 = vld [vmem:[%s5073_s28 + $0xbc] sm:$0x1] }
  0x69   : > { %v5533_v59 = vcombine.low %v1381_v49, %v1384_v54  ;;  %v5547_v49 = vld [vmem:[%s5073_s28 + $0xb8] sm:$0xf]  ;;  %v1391_v21 = vsel %vm5297_vm7, %v1389_v36, %v1390_v22  ;;  %v1404_v54 = vrot.slane %v5531_v31, 5  ;;  %v4139_v53 = vrot.slane %v5541_v23, 9 }
  0x6a   : > { %v5556_v47 = vcombine.low %v1388_v61, %v1391_v21  ;;  %v1398_v11 = vsel %vm5297_vm7, %v1396_v7, %v1397_v2  ;;  %v1402_v61 = vsel %vm5297_vm7, %v4138_v41, %v1401_v48  ;;  %v1403_v36 = vrot.slane %v1401_v48, 4 }
  0x6b   : > { %4225 = vmatmul.mubr.msk.bf16.gmra.mrb[4].mxu0 %vm701_vm3, %v5415_v45  ;;  %v5565_v45 = vld [vmem:[%s6450_s1 + $0x38] sm:$0xff]  ;;  %v5569_v22 = vcombine.low %v1395_v37, %v1398_v11  ;;  %v1411_v7 = vrot.slane %v5554_v25, 5  ;;  %v573_v2 = vsel %vm5107_vm4, %v5479_v33, %v5462_v51  ;;  %v594_v21 = vshll.u32 %v245_v24, 16 }
  0x6c   : > { %2436 = vmatprep.mubr.bf16.mxu0 %v6500_v9  ;;  %v581_v37 = vor.u32 %v5489_v32, %v5484_v58  ;;  %v1405_v48 = vsel %vm5297_vm7, %v1403_v36, %v1404_v54  ;;  %v4264_v11 = vcombine.high %v5565_v45, %v5565_v45  ;;  %v602_v51 = vshll.u32 %v5517_v0, 16 }
  0x6d   : > { %6505 = vst [vmem:[#allocation21_spill] sm:$0xff] %v5569_v22  ;;  %v599_v22 = vshrl.u32 %v5517_v0, 16  ;;  %v5590_v33 = vcombine.low %v1402_v61, %v1405_v48  ;;  %v612_v58 = vshrl.u32 %v5528_v30, 16  ;;  %v5603_v54 = vcombine.low %v5280_v55, %v5284_v57 }
  0x6e   : > { %4265 = vmatprep.subr.msk.bf16.mxu0 %vm750_vm0, %v4264_v11  ;;  %v6507_v61 = vrot.slane %v5173_v56, 9  ;;  %v6508_v57 = vrot.slane %v5195_v8, 5  ;;  %v5633_v8 = vcombine.low %v5376_v62, %v5383_v63 }
  0x6f   : > { %4083 = vmatmul.mubr.msk.bf16.gmra.mrb[40].mxu1 %vm701_vm3, %v5448_v28  ;;  %v590_v28 = vrot.slane %v588_v12, 4  ;;  %v1408_v12 = vrot.slane %v5547_v49, 5  ;;  %v614_v48 = vrot.slane %v612_v58, 4 }
  0x70   : > { %899 = vmatprep.mubr.bf16.mxu1 %v6500_v9 }
  0x71   : > { %v1409_v44 = vsel %vm5297_vm7, %v4139_v53, %v1408_v12  ;;  %v591_v41 = vor.u32 %v590_v28, %v5538_v20  ;;  %v608_v28 = vshll.u32 %v5528_v30, 16  ;;  %v5612_v53 = vcombine.low %v5321_v38, %v5324_v39 }
  0x72   : > { %v1345_v38 = vrot.slane %v5202_v19, 5  ;;  %v601_v39 = vrot.slane %v599_v22, 4  ;;  %v1348_v22 = vrot.slane %v5217_v35, 5  ;;  %v636_v35 = vshrl.u32 %v5547_v49, 16 }
  0x73   : > { %4226 = vmatmul.mubr.msk.bf16.gmra.mrb[8].mxu0 %vm701_vm3, %v5444_v46  ;;  %v1410_v46 = vrot.slane %v1408_v12, 4  ;;  %v5614_v12 = vcombine.low %v563_v18, %v573_v2  ;;  %v592_v36 = vrot.slane %v591_v41, 4  ;;  %v604_v18 = vrot.slane %v602_v51, 5 }
  0x74   : > { %2446 = vmatprep.mubr.bf16.mxu0 %v6500_v9  ;;  %v610_v2 = vrot.slane %v608_v28, 5  ;;  %v618_v41 = vshll.u32 %v5531_v31, 16  ;;  %v626_v28 = vshll.u32 %v5541_v23, 16 }
  0x75   : > { %v1412_v24 = vsel %vm5297_vm7, %v1410_v46, %v1411_v7  ;;  %v5608_v46 = vcombine.low %v5309_v26, %v5312_v29  ;;  %v1342_v26 = vsel %vm5297_vm7, %v5474_v34, %v6508_v57  ;;  %v582_v29 = vrot.slane %v581_v37, 4 }
  0x76   : > { %v5598_v32 = vcombine.low %v1409_v44, %v1412_v24  ;;  %v6506_v44 = vrot.slane %v5176_v27, 5  ;;  %v596_v7 = vrot.slane %v594_v21, 5  ;;  %v4130_v34 = vrot.slane %v5199_v17, 9 }
  0x77   : > { %4084 = vmatmul.mubr.msk.bf16.gmra.mrb[44].mxu1 %vm701_vm3, %v5453_v15  ;;  %v587_v21 = vsel %vm5107_vm4, %v582_v29, %v5538_v20  ;;  %v1347_v37 = vrot.slane %v1345_v38, 4  ;;  %v605_v63 = vor.u32 %v604_v18, %v601_v39  ;;  %v615_v51 = vor.u32 %v614_v48, %v610_v2 }
  0x78   : > { %909 = vmatprep.mubr.bf16.mxu1 %v6500_v9  ;;  %v1339_v55 = vsel %vm5297_vm7, %v6507_v61, %v6506_v44  ;;  %v597_v62 = vsel %vm5107_vm4, %v592_v36, %v596_v7  ;;  %v623_v24 = vshrl.u32 %v5541_v23, 16  ;;  %v632_v20 = vshll.u32 %v5547_v49, 16 }
  0x79   : > { %v5635_v11 = vcombine.low %v1339_v55, %v1342_v26  ;;  %v5652_v58 = vcombine.low %v587_v21, %v597_v62  ;;  %v1346_v31 = vsel %vm5297_vm7, %v4130_v34, %v1345_v38  ;;  %v1349_v44 = vsel %vm5297_vm7, %v1347_v37, %v1348_v22 }
  0x7a   : > { %v620_v61 = vrot.slane %v618_v41, 5  ;;  %v606_v55 = vrot.slane %v605_v63, 4  ;;  %v616_v57 = vrot.slane %v615_v51, 4  ;;  %v1352_v26 = vrot.slane %v5228_v50, 5 }
  0x7b   : > { %4227 = vmatmul.mubr.msk.bf16.gmra.mrb[12].mxu0 %vm701_vm3, %v5455_v1  ;;  %v625_v29 = vrot.slane %v623_v24, 4  ;;  %v628_v36 = vrot.slane %v626_v28, 5  ;;  %v634_v7 = vrot.slane %v632_v20, 5  ;;  %v638_v39 = vrot.slane %v636_v35, 4 }
  0x7c   : > { %2456 = vmatprep.mubr.bf16.mxu0 %v6500_v9  ;;  %v5664_v38 = vcombine.low %v5438_v14, %v5459_v4  ;;  %v5666_v18 = vcombine.low %v1346_v31, %v1349_v44  ;;  %v4131_v48 = vrot.slane %v5224_v40, 9  ;;  %v1354_v34 = vrot.slane %v1352_v26, 4 }
  0x7d   : > { %v1355_v21 = vrot.slane %v5247_v3, 5  ;;  %v642_v37 = vshll.u32 %v5554_v25, 16  ;;  %v611_v22 = vsel %vm5107_vm4, %v606_v55, %v610_v2  ;;  %v621_v14 = vsel %vm5107_vm4, %v616_v57, %v620_v61 }
  0x7e   : > { %v629_v4 = vor.u32 %v628_v36, %v625_v29  ;;  %v639_v41 = vor.u32 %v638_v39, %v634_v7  ;;  %v5680_v62 = vcombine.low %v611_v22, %v621_v14  ;;  %v1353_v3 = vsel %vm5297_vm7, %v4131_v48, %v1352_v26  ;;  %v5726_v36 = vld [vmem:[%s5073_s28] sm:$0xf]  ;;  %v4996_v48 = vld [vmem:[%s5073_s28 + $0xc] sm:$0xf] }
  0x7f   : > { %4085 = vmatmul.mubr.msk.bf16.gmra.mrb[48].mxu1 %vm701_vm3, %v5614_v12  ;;  %v1356_v25 = vsel %vm5297_vm7, %v1354_v34, %v1355_v21  ;;  %v644_v63 = vrot.slane %v642_v37, 5  ;;  %v1359_v24 = vrot.slane %v5254_v16, 5  ;;  %v5690_v28 = vcombine.low %v5517_v0, %v5528_v30  ;;  %v4997_v34 = vld [vmem:[%s5073_s28 + $0x10] sm:$0xf]  ;;  %v6510_v14 = vld [vmem:[#allocation6_spill] sm:$0xff] }
  0x80   : > { %919 = vmatprep.mubr.bf16.mxu1 %v6500_v9  ;;  %v630_v2 = vrot.slane %v629_v4, 4  ;;  %v640_v51 = vrot.slane %v639_v41, 4  ;;  %v5694_v20 = vcombine.low %v1353_v3, %v1356_v25  ;;  %v4132_v35 = vrot.slane %v5250_v10, 9  ;;  %v6509_v37 = vld [vmem:[#allocation4_spill] sm:$0xff]  ;;  %v6511_v4 = vld [vmem:[#allocation5_spill] sm:$0xff]  ;;  %v6513_v3 = vld [vmem:[#allocation7_spill] sm:$0xff] }
  0x81   : > { %v1361_v61 = vrot.slane %v1359_v24, 4  ;;  %v1362_v0 = vrot.slane %v5274_v52, 5  ;;  %v5714_v26 = vcombine.low %v5541_v23, %v5547_v49  ;;  %v4157_v29 = vcombine.low %v5427_v60, %v5427_v60  ;;  %v5736_v49 = vld [vmem:[%s6450_s1 + $0x18] sm:$0xff] }
  0x82   : > { %v635_v31 = vsel %vm5107_vm4, %v630_v2, %v634_v7  ;;  %v645_v44 = vsel %vm5107_vm4, %v640_v51, %v644_v63  ;;  %v1360_v55 = vsel %vm5297_vm7, %v4132_v35, %v1359_v24  ;;  %v5729_v7 = vld [vmem:[%s5073_s28 + $0x4] sm:$0xf]  ;;  %v4179_v60 = vcombine.high %v5736_v49, %v5736_v49  ;;  %v6514_v63 = vld [vmem:[#allocation21_spill] sm:$0xff]  ;;  %v5810_v35 = vld [vmem:[%s5073_s28 + $0xc8] sm:$0x1] }
  0x83   : > { %4228 = vmatmul.mubr.msk.bf16.gmra.mrb[16].mxu0 %vm701_vm3, %v5635_v11  ;;  %v5705_v30 = vcombine.low %v635_v31, %v645_v44  ;;  %v1363_v57 = vsel %vm5297_vm7, %v1361_v61, %v1362_v0  ;;  %v4089_v23 = vcombine.low %v5726_v36, %v5729_v7  ;;  %v1517_v39 = vsel %vm750_vm0, %v4157_v29, 0  ;;  %v5796_v51 = vld [vmem:[%s5073_s28 + $0xc4] sm:$0xf] }
  0x84   : > { %2466 = vmatprep.mubr.bf16.mxu0 %v6500_v9  ;;  %v5718_v52 = vcombine.low %v1360_v55, %v1363_v57  ;;  %v5749_v21 = vcombine.low %v4996_v48, %v4997_v34  ;;  %v5759_v22 = vcombine.low %v6509_v37, %v5103_v42  ;;  %v5769_v41 = vcombine.low %v6511_v4, %v6510_v14  ;;  %v6512_v42 = vld [vmem:[#allocation8_spill] sm:$0xff]  ;;  %v5845_v57 = vld [vmem:[%s6450_s1 + $0x40] sm:$0xff]  ;;  %v6517_v4 = vld [vmem:[#allocation17_spill] sm:$0xff] }
  0x85   : > { %v5779_v25 = vcombine.low %v6513_v3, %v6512_v42  ;;  %v5789_v2 = vcombine.low %v5173_v56, %v5176_v27  ;;  %v5802_v24 = vcombine.low %v5199_v17, %v5202_v19  ;;  %v2360_v56 = vrot.slane %v5796_v51, 5  ;;  %v5807_v27 = vld [vmem:[%s5073_s28 + $0xc0] sm:$0xf]  ;;  %v6518_v42 = vld [vmem:[#allocation19_spill] sm:$0xff] }
  0x86   : > { %v4218_v31 = vrot.slane %v5807_v27, 9  ;;  %v2363_v61 = vrot.slane %v5810_v35, 5  ;;  %v5821_v17 = vcombine.low %v5224_v40, %v5228_v50  ;;  %v5837_v40 = vcombine.low %v5250_v10, %v5254_v16  ;;  %v6515_v14 = vld [vmem:[#allocation2_spill] sm:$0xff] }
  0x87   : > { %4086 = vmatmul.mubr.msk.bf16.gmra.mrb[52].mxu1 %vm701_vm3, %v5652_v58  ;;  %v2362_v44 = vrot.slane %v2360_v56, 4  ;;  %v4263_v50 = vcombine.low %v5565_v45, %v5565_v45  ;;  %v4286_v10 = vcombine.high %v5845_v57, %v5845_v57  ;;  %v1303_v16 = vrot.slane %v5729_v7, 5  ;;  %v4998_v45 = vld [vmem:[%s5073_s28 + $0x8] sm:$0x1] }
  0x88   : > { %929 = vmatprep.mubr.bf16.mxu1 %v6500_v9  ;;  %v2361_v19 = vsel %vm5297_vm7, %v4218_v31, %v2360_v56  ;;  %v4178_v34 = vcombine.low %v5736_v49, %v5736_v49  ;;  %v6516_v49 = vld [vmem:[#allocation16_spill] sm:$0xff]  ;;  %v5950_v3 = vcombine.low %v5807_v27, %v5796_v51  ;;  %v5957_v56 = vld [vmem:[%s5073_s28 + $0xcc] sm:$0xf] }
  0x89   : > { %v2364_v0 = vsel %vm5297_vm7, %v2362_v44, %v2363_v61  ;;  %v2957_v29 = vsel %vm750_vm0, %v4263_v50, 0  ;;  %v5960_v31 = vld [vmem:[%s5073_s28 + $0xd0] sm:$0xf]  ;;  %v4285_v61 = vcombine.low %v5845_v57, %v5845_v57  ;;  %v6520_v50 = vld [vmem:[#allocation10_spill] sm:$0xff]  ;;  %v6521_v57 = vld [vmem:[#allocation11_spill] sm:$0xff] }
  0x8a   : > { %v5830_v55 = vcombine.low %v2361_v19, %v2364_v0  ;;  %v4241_v44 = vcombine.low %v5957_v56, %v5960_v31  ;;  %v6519_v0 = vld [vmem:[#allocation9_spill] sm:$0xff]  ;;  %v3222_v43 = vrot.slane %v5960_v31, 5 }
  0x8b   : > { %4229 = vmatmul.mubr.msk.bf16.gmra.mrb[20].mxu0 %vm701_vm3, %v5666_v18  ;;  %v3241_v19 = vsel %vm750_vm0, %v4285_v61, 0 }
  0x8c   : > { %2476 = vmatprep.mubr.bf16.mxu0 %v6500_v9 }
  0x8f   : > { %4087 = vmatmul.mubr.msk.bf16.gmra.mrb[56].mxu1 %vm701_vm3, %v5680_v62 }
  0x90   : > { %939 = vmatprep.mubr.bf16.mxu1 %v6500_v9 }
  0x93   : > { %4230 = vmatmul.mubr.msk.bf16.gmra.mrb[24].mxu0 %vm701_vm3, %v5694_v20 }
  0x94   : > { %2486 = vmatprep.mubr.bf16.mxu0 %v6500_v9 }
  0x97   : > { %4088 = vmatmul.mubr.msk.bf16.gmra.mrb[60].mxu1 %vm701_vm3, %v5705_v30 }
  0x98   : > { %1121 = vmatprep.mubr.bf16.mxu1 %v6500_v9 }
  0x9b   : > { %4231 = vmatmul.mubr.msk.bf16.gmra.mrb[28].mxu0 %vm701_vm3, %v5718_v52 }
  0x9c   : > { %2496 = vmatprep.mubr.bf16.mxu0 %v6500_v9 }
  0x9f   : > { %4108 = vmatmul.mubr.msk.bf16.vlgmr.msra.gmra.mrb[0].mxu1 %vm701_vm3, %v4089_v23  ;;  %v1306_v23 = vrot.slane %v4998_v45, 5  ;;  %v6525_v45 = vld [vmem:[#allocation15_spill] sm:$0xff] }
  0xa0   : > { %1523 = vmatpush1.bf16.msra.mxu1 %v1517_v39  ;;  %1131 = vmatprep.mubr.bf16.mxu1 %v6500_v9  ;;  %v4124_v39 = vrot.slane %v5726_v36, 9  ;;  %v1795_v36 = vsel %vm750_vm0, %v4178_v34, 0 }
  0xa1   : > { %4180 = vmatprep.subr.msk.bf16.mxu1 %vm750_vm0, %v4179_v60  ;;  %v1305_v60 = vrot.slane %v1303_v16, 4 }
  0xa2   : > { %v1304_v7 = vsel %vm5297_vm7, %v4124_v39, %v1303_v16  ;;  %v6524_v16 = vld [vmem:[#allocation14_spill] sm:$0xff]  ;;  %v6527_v39 = vld [vmem:[#allocation3_spill] sm:$0xff] }
  0xa3   : > { %4232 = vmatmul.mubr.msk.bf16.gmra.mrb[32].mxu0 %vm701_vm3, %v5497_v5  ;;  %v1307_v48 = vsel %vm5297_vm7, %v1305_v60, %v1306_v23  ;;  %v6526_v23 = vld [vmem:[#allocation18_spill] sm:$0xff]  ;;  %v6528_v60 = vld [vmem:[#allocation20_spill] sm:$0xff] }
  0xa4   : > { %2506 = vmatprep.mubr.bf16.mxu0 %v6500_v9  ;;  %v4141_v37 = vcombine.low %v1304_v7, %v1307_v48  ;;  %v2071_v7 = vshrl.u32 %v5796_v51, 16 }
  0xa7   : > { %4109 = vmatmul.mubr.msk.bf16.gmra.mrb[4].mxu1 %vm701_vm3, %v5749_v21 }
  0xa8   : > { %1141 = vmatprep.mubr.bf16.mxu1 %v6500_v9 }
  0xab   : > { %4233 = vmatmul.mubr.msk.bf16.gmra.mrb[36].mxu0 %vm701_vm3, %v5519_v13 }
  0xac   : > { %2516 = vmatprep.mubr.bf16.mxu0 %v6500_v9 }
  0xaf   : > { %4110 = vmatmul.mubr.msk.bf16.gmra.mrb[8].mxu1 %vm701_vm3, %v5759_v22 }
  0xb0   : > { %1151 = vmatprep.mubr.bf16.mxu1 %v6500_v9 }
  0xb3   : > { %4234 = vmatmul.mubr.msk.bf16.gmra.mrb[40].mxu0 %vm701_vm3, %v5533_v59 }
  0xb4   : > { %2526 = vmatprep.mubr.bf16.mxu0 %v6500_v9 }
  0xb7   : > { %4111 = vmatmul.mubr.msk.bf16.gmra.mrb[12].mxu1 %vm701_vm3, %v5769_v41 }
  0xb8   : > { %1161 = vmatprep.mubr.bf16.mxu1 %v6500_v9 }
  0xbb   : > { %4235 = vmatmul.mubr.msk.bf16.gmra.mrb[44].mxu0 %vm701_vm3, %v5556_v47 }
  0xbc   : > { %2536 = vmatprep.mubr.bf16.mxu0 %v6500_v9 }
  0xbf   : > { %4112 = vmatmul.mubr.msk.bf16.gmra.mrb[16].mxu1 %vm701_vm3, %v5779_v25 }
  0xc0   : > { %1171 = vmatprep.mubr.bf16.mxu1 %v6500_v9 }
  0xc3   : > { %4236 = vmatmul.mubr.msk.bf16.gmra.mrb[48].mxu0 %vm701_vm3, %v6514_v63 }
  0xc4   : > { %2546 = vmatprep.mubr.bf16.mxu0 %v6500_v9 }
  0xc7   : > { %4113 = vmatmul.mubr.msk.bf16.gmra.mrb[20].mxu1 %vm701_vm3, %v5789_v2 }
  0xc8   : > { %1181 = vmatprep.mubr.bf16.mxu1 %v6500_v9 }
  0xcb   : > { %4237 = vmatmul.mubr.msk.bf16.gmra.mrb[52].mxu0 %vm701_vm3, %v5590_v33 }
  0xcc   : > { %2556 = vmatprep.mubr.bf16.mxu0 %v6500_v9 }
  0xcf   : > { %4114 = vmatmul.mubr.msk.bf16.gmra.mrb[24].mxu1 %vm701_vm3, %v5802_v24 }
  0xd0   : > { %1191 = vmatprep.mubr.bf16.mxu1 %v6500_v9 }
  0xd3   : > { %4238 = vmatmul.mubr.msk.bf16.gmra.mrb[56].mxu0 %vm701_vm3, %v5598_v32 }
  0xd4   : > { %2566 = vmatprep.mubr.bf16.mxu0 %v6500_v9 }
  0xd7   : > { %4115 = vmatmul.mubr.msk.bf16.gmra.mrb[28].mxu1 %vm701_vm3, %v5821_v17 }
  0xd8   : > { %1201 = vmatprep.mubr.bf16.mxu1 %v6500_v9 }
  0xdb   : > { %4239 = vmatmul.mubr.msk.bf16.gmra.mrb[60].mxu0 %vm701_vm3, %v5830_v55 }
  0xdc   : > { %2694 = vmatprep.mubr.bf16.mxu0 %v6500_v9 }
  0xdf   : > { %4116 = vmatmul.mubr.msk.bf16.gmra.mrb[32].mxu1 %vm701_vm3, %v5837_v40 }
  0xe0   : > { %1211 = vmatprep.mubr.bf16.mxu1 %v6500_v9 }
  0xe3   : > { %4245 = vmatmul.mubr.msk.bf16.vlgmr.msra.gmra.mrb[0].mxu0 %vm701_vm3, %v5759_v22 }
  0xe4   : > { %2963 = vmatpush1.bf16.msra.mxu0 %v2957_v29  ;;  %2704 = vmatprep.mubr.bf16.mxu0 %v6500_v9  ;;  %v6522_v29 = vld [vmem:[#allocation12_spill] sm:$0xff] }
  0xe5   : > { %4287 = vmatprep.subr.msk.bf16.mxu0 %vm750_vm0, %v4286_v10  ;;  %v6523_v10 = vld [vmem:[#allocation13_spill] sm:$0xff] }
  0xe7   : > { %4117 = vmatmul.mubr.msk.bf16.gmra.mrb[36].mxu1 %vm701_vm3, %v5603_v54 }
  0xe8   : > { %1221 = vmatprep.mubr.bf16.mxu1 %v6500_v9 }
  0xeb   : > { %4246 = vmatmul.mubr.msk.bf16.gmra.mrb[4].mxu0 %vm701_vm3, %v5769_v41 }
  0xec   : > { %2714 = vmatprep.mubr.bf16.mxu0 %v6500_v9 }
  0xef   : > { %4118 = vmatmul.mubr.msk.bf16.gmra.mrb[40].mxu1 %vm701_vm3, %v5608_v46 }
  0xf0   : > { %1231 = vmatprep.mubr.bf16.mxu1 %v6500_v9 }
  0xf3   : > { %4247 = vmatmul.mubr.msk.bf16.gmra.mrb[8].mxu0 %vm701_vm3, %v5779_v25 }
  0xf4   : > { %2724 = vmatprep.mubr.bf16.mxu0 %v6500_v9 }
  0xf7   : > { %4119 = vmatmul.mubr.msk.bf16.gmra.mrb[44].mxu1 %vm701_vm3, %v5612_v53 }
  0xf8   : > { %1241 = vmatprep.mubr.bf16.mxu1 %v6500_v9 }
  0xfb   : > { %4248 = vmatmul.mubr.msk.bf16.gmra.mrb[12].mxu0 %vm701_vm3, %v5789_v2 }
  0xfc   : > { %2734 = vmatprep.mubr.bf16.mxu0 %v6500_v9 }
  0xff   : > { %4120 = vmatmul.mubr.msk.bf16.gmra.mrb[48].mxu1 %vm701_vm3, %v5633_v8 }
 0x100   : > { %1251 = vmatprep.mubr.bf16.mxu1 %v6500_v9 }
 0x103   : > { %4249 = vmatmul.mubr.msk.bf16.gmra.mrb[16].mxu0 %vm701_vm3, %v5802_v24 }
 0x104   : > { %2744 = vmatprep.mubr.bf16.mxu0 %v6500_v9 }
 0x107   : > { %4121 = vmatmul.mubr.msk.bf16.gmra.mrb[52].mxu1 %vm701_vm3, %v5664_v38 }
 0x108   : > { %1261 = vmatprep.mubr.bf16.mxu1 %v6500_v9 }
 0x10b   : > { %4250 = vmatmul.mubr.msk.bf16.gmra.mrb[20].mxu0 %vm701_vm3, %v5821_v17 }
 0x10c   : > { %2754 = vmatprep.mubr.bf16.mxu0 %v6500_v9 }
 0x10f   : > { %4122 = vmatmul.mubr.msk.bf16.gmra.mrb[56].mxu1 %vm701_vm3, %v5690_v28 }
 0x110   : > { %1271 = vmatprep.mubr.bf16.mxu1 %v6500_v9 }
 0x113   : > { %4251 = vmatmul.mubr.msk.bf16.gmra.mrb[24].mxu0 %vm701_vm3, %v5837_v40 }
 0x114   : > { %2764 = vmatprep.mubr.bf16.mxu0 %v6500_v9 }
 0x117   : > { %4123 = vmatmul.mubr.msk.bf16.gmra.mrb[60].mxu1 %vm701_vm3, %v5714_v26 }
 0x118   : > { %1554 = vmatprep.mubr.bf16.mxu1 %v6500_v9 }
 0x11b   : > { %4252 = vmatmul.mubr.msk.bf16.gmra.mrb[28].mxu0 %vm701_vm3, %v5603_v54 }
 0x11c   : > { %2774 = vmatprep.mubr.bf16.mxu0 %v6500_v9 }
 0x11f   : > { %4160 = vmatmul.mubr.msk.bf16.vlgmr.msra.gmra.mrb[0].mxu1 %vm701_vm3, %v4141_v37  ;;  %v2073_v37 = vrot.slane %v2071_v7, 4 }
 0x120   : > { %1801 = vmatpush1.bf16.msra.mxu1 %v1795_v36  ;;  %1564 = vmatprep.mubr.bf16.mxu1 %v6500_v9 }
 0x121   : > { %4306 = vmatprep.subr.msk.bf16.mxu1 %vm750_vm0, %v6515_v14  ;;  %v2077_v14 = vshll.u32 %v5810_v35, 16 }
 0x123   : > { %4253 = vmatmul.mubr.msk.bf16.gmra.mrb[32].mxu0 %vm701_vm3, %v5608_v46 }
 0x124   : > { %2784 = vmatprep.mubr.bf16.mxu0 %v6500_v9 }
 0x127   : > { %4161 = vmatmul.mubr.msk.bf16.gmra.mrb[4].mxu1 %vm701_vm3, %v6516_v49  ;;  %v2923_v49 = vshll.u32 %v5957_v56, 16 }
 0x128   : > { %1574 = vmatprep.mubr.bf16.mxu1 %v6500_v9 }
 0x129   : > { %v2925_v35 = vrot.slane %v2923_v49, 5 }
 0x12b   : > { %4254 = vmatmul.mubr.msk.bf16.gmra.mrb[36].mxu0 %vm701_vm3, %v5612_v53 }
 0x12c   : > { %2794 = vmatprep.mubr.bf16.mxu0 %v6500_v9 }
 0x12f   : > { %4162 = vmatmul.mubr.msk.bf16.gmra.mrb[8].mxu1 %vm701_vm3, %v6517_v4 }
 0x130   : > { %1584 = vmatprep.mubr.bf16.mxu1 %v6500_v9 }
 0x133   : > { %4255 = vmatmul.mubr.msk.bf16.gmra.mrb[40].mxu0 %vm701_vm3, %v5633_v8 }
 0x134   : > { %2804 = vmatprep.mubr.bf16.mxu0 %v6500_v9 }
 0x137   : > { %4163 = vmatmul.mubr.msk.bf16.gmra.mrb[12].mxu1 %vm701_vm3, %v6518_v42 }
 0x138   : > { %1594 = vmatprep.mubr.bf16.mxu1 %v6500_v9 }
 0x13b   : > { %4256 = vmatmul.mubr.msk.bf16.gmra.mrb[44].mxu0 %vm701_vm3, %v5664_v38 }
 0x13c   : > { %2814 = vmatprep.mubr.bf16.mxu0 %v6500_v9 }
 0x13f   : > { %4164 = vmatmul.mubr.msk.bf16.gmra.mrb[16].mxu1 %vm701_vm3, %v5455_v1 }
 0x140   : > { %1604 = vmatprep.mubr.bf16.mxu1 %v6500_v9 }
 0x143   : > { %4257 = vmatmul.mubr.msk.bf16.gmra.mrb[48].mxu0 %vm701_vm3, %v5690_v28 }
 0x144   : > { %2824 = vmatprep.mubr.bf16.mxu0 %v6500_v9 }
 0x147   : > { %4165 = vmatmul.mubr.msk.bf16.gmra.mrb[20].mxu1 %vm701_vm3, %v5635_v11 }
 0x148   : > { %1614 = vmatprep.mubr.bf16.mxu1 %v6500_v9 }
 0x14b   : > { %4258 = vmatmul.mubr.msk.bf16.gmra.mrb[52].mxu0 %vm701_vm3, %v5714_v26 }
 0x14c   : > { %2834 = vmatprep.mubr.bf16.mxu0 %v6500_v9 }
 0x14f   : > { %4166 = vmatmul.mubr.msk.bf16.gmra.mrb[24].mxu1 %vm701_vm3, %v5666_v18 }
 0x150   : > { %1624 = vmatprep.mubr.bf16.mxu1 %v6500_v9 }
 0x153   : > { %4259 = vmatmul.mubr.msk.bf16.gmra.mrb[56].mxu0 %vm701_vm3, %v5950_v3 }
 0x154   : > { %2844 = vmatprep.mubr.bf16.mxu0 %v6500_v9 }
 0x157   : > { %4167 = vmatmul.mubr.msk.bf16.gmra.mrb[28].mxu1 %vm701_vm3, %v5694_v20 }
 0x158   : > { %1634 = vmatprep.mubr.bf16.mxu1 %v6500_v9 }
 0x15b   : > { %4260 = vmatmul.mubr.msk.bf16.gmra.mrb[60].mxu0 %vm701_vm3, %v4241_v44  ;;  %v2929_v44 = vshll.u32 %v5960_v31, 16 }
 0x15c   : > { %2994 = vmatprep.mubr.bf16.mxu0 %v6500_v9 }
 0x15f   : > { %4168 = vmatmul.mubr.msk.bf16.gmra.mrb[32].mxu1 %vm701_vm3, %v5718_v52 }
 0x160   : > { %1644 = vmatprep.mubr.bf16.mxu1 %v6500_v9 }
 0x163   : > { %4266 = vmatmul.mubr.msk.bf16.vlgmr.msra.gmra.mrb[0].mxu0 %vm701_vm3, %v6519_v0  ;;  %v2079_v0 = vrot.slane %v2077_v14, 5 }
 0x164   : > { %3247 = vmatpush1.bf16.msra.mxu0 %v3241_v19  ;;  %3004 = vmatprep.mubr.bf16.mxu0 %v6500_v9 }
 0x167   : > { %4169 = vmatmul.mubr.msk.bf16.gmra.mrb[36].mxu1 %vm701_vm3, %v5497_v5 }
 0x168   : > { %1654 = vmatprep.mubr.bf16.mxu1 %v6500_v9 }
 0x16b   : > { %4267 = vmatmul.mubr.msk.bf16.gmra.mrb[4].mxu0 %vm701_vm3, %v6520_v50 }
 0x16c   : > { %3014 = vmatprep.mubr.bf16.mxu0 %v6500_v9 }
 0x16f   : > { %4170 = vmatmul.mubr.msk.bf16.gmra.mrb[40].mxu1 %vm701_vm3, %v5519_v13 }
 0x170   : > { %1664 = vmatprep.mubr.bf16.mxu1 %v6500_v9 }
 0x173   : > { %4268 = vmatmul.mubr.msk.bf16.gmra.mrb[8].mxu0 %vm701_vm3, %v6521_v57  ;;  %v2931_v57 = vrot.slane %v2929_v44, 5 }
 0x174   : > { %3024 = vmatprep.mubr.bf16.mxu0 %v6500_v9 }
 0x177   : > { %4171 = vmatmul.mubr.msk.bf16.gmra.mrb[44].mxu1 %vm701_vm3, %v5533_v59 }
 0x178   : > { %1674 = vmatprep.mubr.bf16.mxu1 %v6500_v9 }
 0x17b   : > { %4269 = vmatmul.mubr.msk.bf16.gmra.mrb[12].mxu0 %vm701_vm3, %v6522_v29 }
 0x17c   : > { %3034 = vmatprep.mubr.bf16.mxu0 %v6500_v9 }
 0x17f   : > { %4172 = vmatmul.mubr.msk.bf16.gmra.mrb[48].mxu1 %vm701_vm3, %v5556_v47 }
 0x180   : > { %1684 = vmatprep.mubr.bf16.mxu1 %v6500_v9 }
 0x183   : > { %4270 = vmatmul.mubr.msk.bf16.gmra.mrb[16].mxu0 %vm701_vm3, %v6523_v10  ;;  %v6064_v10 = vld [vmem:[%s5073_s28 + $0xd4] sm:$0x1] }
 0x184   : > { %3044 = vmatprep.mubr.bf16.mxu0 %v6500_v9 }
 0x187   : > { %4173 = vmatmul.mubr.msk.bf16.gmra.mrb[52].mxu1 %vm701_vm3, %v6514_v63 }
 0x188   : > { %1694 = vmatprep.mubr.bf16.mxu1 %v6500_v9 }
 0x18b   : > { %4271 = vmatmul.mubr.msk.bf16.gmra.mrb[20].mxu0 %vm701_vm3, %v6524_v16 }
 0x18c   : > { %3054 = vmatprep.mubr.bf16.mxu0 %v6500_v9 }
 0x18f   : > { %4174 = vmatmul.mubr.msk.bf16.gmra.mrb[56].mxu1 %vm701_vm3, %v5590_v33 }
 0x190   : > { %1704 = vmatprep.mubr.bf16.mxu1 %v6500_v9 }
 0x193   : > { %4272 = vmatmul.mubr.msk.bf16.gmra.mrb[24].mxu0 %vm701_vm3, %v6525_v45 }
 0x194   : > { %3064 = vmatprep.mubr.bf16.mxu0 %v6500_v9 }
 0x197   : > { %4175 = vmatmul.mubr.msk.bf16.gmra.mrb[60].mxu1 %vm701_vm3, %v5598_v32 }
 0x198   : > { %1832 = vmatprep.mubr.bf16.mxu1 %v6500_v9 }
 0x19b   : > { %4273 = vmatmul.mubr.msk.bf16.gmra.mrb[28].mxu0 %vm701_vm3, %v6526_v23 }
 0x19c   : > { %3074 = vmatprep.mubr.bf16.mxu0 %v6500_v9 }
 0x19f   : > { %4181 = vmatmul.mubr.msk.bf16.vlgmr.msra.gmra.mrb[0].mxu1 %vm701_vm3, %v5749_v21  ;;  %v2058_v21 = vshrl.u32 %v5807_v27, 16 }
 0x1a0   : > { %4307 = vmatpush1.bf16.msra.mxu1 %v6527_v39  ;;  %1842 = vmatprep.mubr.bf16.mxu1 %v6500_v9 }
 0x1a1   : > { %v2060_v48 = vrot.slane %v2058_v21, 4  ;;  %v2939_v21 = vshll.u32 %v6064_v10, 16 }
 0x1a3   : > { %4274 = vmatmul.mubr.msk.bf16.gmra.mrb[32].mxu0 %vm701_vm3, %v6528_v60 }
 0x1a4   : > { %3084 = vmatprep.mubr.bf16.mxu0 %v6500_v9 }
 0x1a7   : > { %4182 = vmatmul.mubr.msk.bf16.gmra.mrb[4].mxu1 %vm701_vm3, %v5759_v22  ;;  %v2061_v22 = vshll.u32 %v5807_v27, 16 }
 0x1a8   : > { %1852 = vmatprep.mubr.bf16.mxu1 %v6500_v9 }
 0x1ab   : > { %4275 = vmatmul.mubr.msk.bf16.gmra.mrb[36].mxu0 %vm701_vm3, %v5453_v15 }
 0x1ac   : > { %3094 = vmatprep.mubr.bf16.mxu0 %v6500_v9 }
 0x1af   : > { %4183 = vmatmul.mubr.msk.bf16.gmra.mrb[8].mxu1 %vm701_vm3, %v5769_v41  ;;  %v2067_v41 = vshll.u32 %v5796_v51, 16  ;;  %v2920_v51 = vshrl.u32 %v5957_v56, 16 }
 0x1b0   : > { %1862 = vmatprep.mubr.bf16.mxu1 %v6500_v9 }
 0x1b1   : > { %v2069_v34 = vrot.slane %v2067_v41, 5  ;;  %v2922_v50 = vrot.slane %v2920_v51, 4 }
 0x1b3   : > { %4276 = vmatmul.mubr.msk.bf16.gmra.mrb[40].mxu0 %vm701_vm3, %v5614_v12  ;;  %v2074_v27 = vor.u32 %v2073_v37, %v2069_v34  ;;  %v2926_v45 = vor.u32 %v2925_v35, %v2922_v50  ;;  %v3505_v37 = vlaneseq }
 0x1b4   : > { %3104 = vmatprep.mubr.bf16.mxu0 %v6500_v9 }
 0x1b5   : > { %v2075_v19 = vrot.slane %v2074_v27, 4  ;;  %v2927_v41 = vrot.slane %v2926_v45, 4  ;;  %v3506_v51 = vshrl.u32 %v3505_v37, 7 }
 0x1b7   : > { %4184 = vmatmul.mubr.msk.bf16.gmra.mrb[12].mxu1 %vm701_vm3, %v5779_v25  ;;  %v2063_v25 = vrot.slane %v2061_v22, 5  ;;  %v3511_v49 = vsub.s32 1, %v3506_v51 }
 0x1b8   : > { %1872 = vmatprep.mubr.bf16.mxu1 %v6500_v9 }
 0x1b9   : > { %v2064_v36 = vor.u32 %v2063_v25, %v2060_v48  ;;  %v2941_v48 = vrot.slane %v2939_v21, 5  ;;  %v2932_v25 = vsel %vm5107_vm4, %v2927_v41, %v2931_v57 }
 0x1bb   : > { %4277 = vmatmul.mubr.msk.bf16.gmra.mrb[44].mxu0 %vm701_vm3, %v5652_v58  ;;  %v2065_v61 = vrot.slane %v2064_v36, 4 }
 0x1bc   : > { %3114 = vmatprep.mubr.bf16.mxu0 %v6500_v9 }
 0x1bd   : > { %v2070_v16 = vsel %vm5107_vm4, %v2065_v61, %v2069_v34 }
 0x1bf   : > { %4185 = vmatmul.mubr.msk.bf16.gmra.mrb[16].mxu1 %vm701_vm3, %v5789_v2  ;;  %v2933_v2 = vshrl.u32 %v5960_v31, 16 }
 0x1c0   : > { %1882 = vmatprep.mubr.bf16.mxu1 %v6500_v9 }
 0x1c1   : > { %v2935_v29 = vrot.slane %v2933_v2, 4  ;;  %v3503_v2 = vld [vmem:[%s6451_s2] sm:$0x3] }
 0x1c2   : > { %v6240_v61 = vrot.slane %v3503_v2, %v3511_v49 }
 0x1c3   : > { %4278 = vmatmul.mubr.msk.bf16.gmra.mrb[48].mxu0 %vm701_vm3, %v5680_v62  ;;  %v2936_v39 = vor.u32 %v2935_v29, %v2931_v57 }
 0x1c4   : > { %3124 = vmatprep.mubr.bf16.mxu0 %v6500_v9 }
 0x1c5   : > { %v2937_v7 = vrot.slane %v2936_v39, 4 }
 0x1c7   : > { %4186 = vmatmul.mubr.msk.bf16.gmra.mrb[20].mxu1 %vm701_vm3, %v5802_v24  ;;  %v2080_v24 = vsel %vm5107_vm4, %v2075_v19, %v2079_v0  ;;  %v2942_v34 = vsel %vm5107_vm4, %v2937_v7, %v2941_v48 }
 0x1c8   : > { %1892 = vmatprep.mubr.bf16.mxu1 %v6500_v9  ;;  %v6076_v22 = vcombine.low %v2070_v16, %v2080_v24 }
 0x1cb   : > { %4279 = vmatmul.mubr.msk.bf16.gmra.mrb[52].mxu0 %vm701_vm3, %v5705_v30 }
 0x1cc   : > { %3134 = vmatprep.mubr.bf16.mxu0 %v6500_v9 }
 0x1cf   : > { %4187 = vmatmul.mubr.msk.bf16.gmra.mrb[24].mxu1 %vm701_vm3, %v5821_v17  ;;  %v4262_v17 = vcombine.low %v2932_v25, %v2942_v34 }
 0x1d0   : > { %1902 = vmatprep.mubr.bf16.mxu1 %v6500_v9 }
 0x1d3   : > { %4280 = vmatmul.mubr.msk.bf16.gmra.mrb[56].mxu0 %vm701_vm3, %v6076_v22 }
 0x1d4   : > { %3144 = vmatprep.mubr.bf16.mxu0 %v6500_v9 }
 0x1d7   : > { %4188 = vmatmul.mubr.msk.bf16.gmra.mrb[28].mxu1 %vm701_vm3, %v5837_v40 }
 0x1d8   : > { %1912 = vmatprep.mubr.bf16.mxu1 %v6500_v9 }
 0x1db   : > { %4281 = vmatmul.mubr.msk.bf16.gmra.mrb[60].mxu0 %vm701_vm3, %v4262_v17 }
 0x1dc   : > { %3278 = vmatprep.mubr.bf16.mxu0 %v6500_v9 }
 0x1df   : > { %4189 = vmatmul.mubr.msk.bf16.gmra.mrb[32].mxu1 %vm701_vm3, %v5603_v54 }
 0x1e0   : > { %1922 = vmatprep.mubr.bf16.mxu1 %v6500_v9 }
 0x1e3   : > { %4288 = vmatmul.mubr.msk.bf16.vlgmr.msra.gmra.mrb[0].mxu0 %vm701_vm3, %v6517_v4 }
 0x1e4   : > { %3288 = vmatprep.mubr.bf16.mxu0 %v6500_v9 }
 0x1e7   : > { %4190 = vmatmul.mubr.msk.bf16.gmra.mrb[36].mxu1 %vm701_vm3, %v5608_v46 }
 0x1e8   : > { %1932 = vmatprep.mubr.bf16.mxu1 %v6500_v9 }
 0x1eb   : > { %4289 = vmatmul.mubr.msk.bf16.gmra.mrb[4].mxu0 %vm701_vm3, %v6518_v42 }
 0x1ec   : > { %3298 = vmatprep.mubr.bf16.mxu0 %v6500_v9 }
 0x1ef   : > { %4191 = vmatmul.mubr.msk.bf16.gmra.mrb[40].mxu1 %vm701_vm3, %v5612_v53 }
 0x1f0   : > { %1942 = vmatprep.mubr.bf16.mxu1 %v6500_v9 }
 0x1f3   : > { %4290 = vmatmul.mubr.msk.bf16.gmra.mrb[8].mxu0 %vm701_vm3, %v5455_v1  ;;  %v3225_v1 = vrot.slane %v6064_v10, 5 }
 0x1f4   : > { %3308 = vmatprep.mubr.bf16.mxu0 %v6500_v9 }
 0x1f7   : > { %4192 = vmatmul.mubr.msk.bf16.gmra.mrb[44].mxu1 %vm701_vm3, %v5633_v8 }
 0x1f8   : > { %1952 = vmatprep.mubr.bf16.mxu1 %v6500_v9 }
 0x1fb   : > { %4291 = vmatmul.mubr.msk.bf16.gmra.mrb[12].mxu0 %vm701_vm3, %v5635_v11 }
 0x1fc   : > { %3318 = vmatprep.mubr.bf16.mxu0 %v6500_v9 }
 0x1ff   : > { %4193 = vmatmul.mubr.msk.bf16.gmra.mrb[48].mxu1 %vm701_vm3, %v5664_v38 }
 0x200   : > { %1962 = vmatprep.mubr.bf16.mxu1 %v6500_v9 }
 0x203   : > { %4292 = vmatmul.mubr.msk.bf16.gmra.mrb[16].mxu0 %vm701_vm3, %v5666_v18 }
 0x204   : > { %3328 = vmatprep.mubr.bf16.mxu0 %v6500_v9 }
 0x207   : > { %4194 = vmatmul.mubr.msk.bf16.gmra.mrb[52].mxu1 %vm701_vm3, %v5690_v28 }
 0x208   : > { %1972 = vmatprep.mubr.bf16.mxu1 %v6500_v9 }
 0x20b   : > { %4293 = vmatmul.mubr.msk.bf16.gmra.mrb[20].mxu0 %vm701_vm3, %v5694_v20 }
 0x20c   : > { %3338 = vmatprep.mubr.bf16.mxu0 %v6500_v9 }
 0x20f   : > { %4195 = vmatmul.mubr.msk.bf16.gmra.mrb[56].mxu1 %vm701_vm3, %v5714_v26 }
 0x210   : > { %1982 = vmatprep.mubr.bf16.mxu1 %v6500_v9 }
 0x213   : > { %4294 = vmatmul.mubr.msk.bf16.gmra.mrb[24].mxu0 %vm701_vm3, %v5718_v52 }
 0x214   : > { %3348 = vmatprep.mubr.bf16.mxu0 %v6500_v9 }
 0x217   : > { %4196 = vmatmul.mubr.msk.bf16.gmra.mrb[60].mxu1 %vm701_vm3, %v5950_v3 }
 0x218   : > { %2212 = vmatprep.mubr.bf16.mxu1 %v6500_v9 }
 0x21b   : > { %4295 = vmatmul.mubr.msk.bf16.gmra.mrb[28].mxu0 %vm701_vm3, %v5497_v5 }
 0x21c   : > { %3358 = vmatprep.mubr.bf16.mxu0 %v6500_v9 }
 0x21f   : > { %4210 = vmatmul.mubr.msk.bf16.vlgmr.msra.gmra.mrb[32].mxu1 %vm701_vm3, %v6526_v23 }
 0x220   : > { %2222 = vmatprep.mubr.bf16.mxu1 %v6500_v9 }
 0x223   : > { %4296 = vmatmul.mubr.msk.bf16.gmra.mrb[32].mxu0 %vm701_vm3, %v5519_v13 }
 0x224   : > { %3368 = vmatprep.mubr.bf16.mxu0 %v6500_v9 }
 0x227   : > { %4211 = vmatmul.mubr.msk.bf16.gmra.mrb[36].mxu1 %vm701_vm3, %v6528_v60 }
 0x228   : > { %2232 = vmatprep.mubr.bf16.mxu1 %v6500_v9 }
 0x22b   : > { %4297 = vmatmul.mubr.msk.bf16.gmra.mrb[36].mxu0 %vm701_vm3, %v5533_v59 }
 0x22c   : > { %3378 = vmatprep.mubr.bf16.mxu0 %v6500_v9 }
 0x22f   : > { %4212 = vmatmul.mubr.msk.bf16.gmra.mrb[40].mxu1 %vm701_vm3, %v5453_v15  ;;  %v3224_v15 = vrot.slane %v3222_v43, 4 }
 0x230   : > { %2242 = vmatprep.mubr.bf16.mxu1 %v6500_v9 }
 0x231   : > { %v3226_v13 = vsel %vm5297_vm7, %v3224_v15, %v3225_v1 }
 0x233   : > { %4298 = vmatmul.mubr.msk.bf16.gmra.mrb[40].mxu0 %vm701_vm3, %v5556_v47  ;;  %v4282_v47 = vrot.slane %v5957_v56, 9 }
 0x234   : > { %3388 = vmatprep.mubr.bf16.mxu0 %v6500_v9 }
 0x235   : > { %v3223_v5 = vsel %vm5297_vm7, %v4282_v47, %v3222_v43 }
 0x236   : > { %v4284_v59 = vcombine.low %v3223_v5, %v3226_v13 }
 0x237   : > { %4213 = vmatmul.mubr.msk.bf16.gmra.mrb[44].mxu1 %vm701_vm3, %v5614_v12 }
 0x238   : > { %2252 = vmatprep.mubr.bf16.mxu1 %v6500_v9 }
 0x23b   : > { %4299 = vmatmul.mubr.msk.bf16.gmra.mrb[44].mxu0 %vm701_vm3, %v6514_v63 }
 0x23c   : > { %3398 = vmatprep.mubr.bf16.mxu0 %v6500_v9 }
 0x23f   : > { %4214 = vmatmul.mubr.msk.bf16.gmra.mrb[48].mxu1 %vm701_vm3, %v5652_v58 }
 0x240   : > { %2262 = vmatprep.mubr.bf16.mxu1 %v6500_v9 }
 0x243   : > { %4300 = vmatmul.mubr.msk.bf16.gmra.mrb[48].mxu0 %vm701_vm3, %v5590_v33 }
 0x244   : > { %3408 = vmatprep.mubr.bf16.mxu0 %v6500_v9 }
 0x247   : > { %4215 = vmatmul.mubr.msk.bf16.gmra.mrb[52].mxu1 %vm701_vm3, %v5680_v62 }
 0x248   : > { %2272 = vmatprep.mubr.bf16.mxu1 %v6500_v9 }
 0x24b   : > { %4301 = vmatmul.mubr.msk.bf16.gmra.mrb[52].mxu0 %vm701_vm3, %v5598_v32 }
 0x24c   : > { %3418 = vmatprep.mubr.bf16.mxu0 %v6500_v9 }
 0x24f   : > { %4216 = vmatmul.mubr.msk.bf16.gmra.mrb[56].mxu1 %vm701_vm3, %v5705_v30 }
 0x250   : > { %2282 = vmatprep.mubr.bf16.mxu1 %v6500_v9 }
 0x253   : > { %4302 = vmatmul.mubr.msk.bf16.gmra.mrb[56].mxu0 %vm701_vm3, %v5830_v55 }
 0x254   : > { %3428 = vmatprep.mubr.bf16.mxu0 %v6500_v9 }
 0x257   : > { %4217 = vmatmul.mubr.msk.bf16.gmra.mrb[60].mxu1 %vm701_vm3, %v6076_v22 }
 0x25b   : > { %4303 = vmatmul.mubr.msk.bf16.gmra.mrb[60].mxu0 %vm701_vm3, %v4284_v59 }
 0x272   : > { %v1834_v33 = vpop.f32.mrb[0].mxu1 }
 0x273   : > { %v1836_v32 = vpop.f32.mrb[1].mxu1 }
 0x274   : > { %v1838_v54 = vpop.f32.mrb[2].mxu1 }
 0x275   : > { %v1840_v46 = vpop.f32.mrb[3].mxu1 }
 0x27a   : > { %v1844_v53 = vpop.f32.mrb[4].mxu1 }
 0x27b   : > { %v1846_v12 = vpop.f32.mrb[5].mxu1 }
 0x27c   : > { %v1848_v8 = vpop.f32.mrb[6].mxu1 }
 0x27d   : > { %v1850_v9 = vpop.f32.mrb[7].mxu1 }
 0x282   : > { %v1854_v11 = vpop.f32.mrb[8].mxu1 }
 0x283   : > { %v6191_v58 = vpop.f32.mrb[9].mxu1 }
 0x284   : > { %v6193_v38 = vpop.f32.mrb[10].mxu1 }
 0x285   : > { %v6195_v6 = vpop.f32.mrb[11].mxu1 }
 0x28a   : > { %v6197_v18 = vpop.f32.mrb[12].mxu1 }
 0x28b   : > { %v6199_v62 = vpop.f32.mrb[13].mxu1 }
 0x28c   : > { %v6201_v28 = vpop.f32.mrb[14].mxu1 }
 0x28d   : > { %v6203_v20 = vpop.f32.mrb[15].mxu1 }
 0x292   : > { %v6205_v30 = vpop.f32.mrb[16].mxu1 }
 0x293   : > { %v6207_v26 = vpop.f32.mrb[17].mxu1 }
 0x294   : > { %v6209_v52 = vpop.f32.mrb[18].mxu1 }
 0x295   : > { %v6211_v63 = vpop.f32.mrb[19].mxu1 }
 0x29a   : > { %v6213_v55 = vpop.f32.mrb[20].mxu1 }
 0x29b   : > { %v6215_v40 = vpop.f32.mrb[21].mxu1 }
 0x29c   : > { %v6217_v4 = vpop.f32.mrb[22].mxu1 }
 0x29d   : > { %v6219_v42 = vpop.f32.mrb[23].mxu1 }
 0x2a2   : > { %v6221_v3 = vpop.f32.mrb[24].mxu1 }
 0x2a3   : > { %v6223_v56 = vpop.f32.mrb[25].mxu1 }
 0x2a4   : > { %v6225_v31 = vpop.f32.mrb[26].mxu1 }
 0x2a5   : > { %v6227_v23 = vpop.f32.mrb[27].mxu1 }
 0x2aa   : > { %v6229_v60 = vpop.f32.mrb[28].mxu1 }
 0x2ab   : > { %v6231_v36 = vpop.f32.mrb[29].mxu1 }
 0x2ac   : > { %v6233_v27 = vpop.f32.mrb[30].mxu1 }
 0x2ad   : > { %v6235_v14 = vpop.f32.mrb[31].mxu1 }
 0x2b6   : > { %v3280_v44 = vpop.f32.mrb[0].mxu0 }
 0x2b7   : > { %v4308_v19 = vadd.f32 %v3280_v44, %v1834_v33  ;;  %v3282_v0 = vpop.f32.mrb[1].mxu0 }
 0x2b8   : > { %v4309_v50 = vadd.f32 %v3282_v0, %v1836_v32  ;;  %v3284_v35 = vpop.f32.mrb[2].mxu0  ;;  %v3507_v32 = vsub.s32 0, %v3506_v51 }
 0x2b9   : > { %v4310_v57 = vadd.f32 %v3284_v35, %v1838_v54  ;;  %v3286_v29 = vpop.f32.mrb[3].mxu0 }
 0x2ba   : > { %v3516_v10 = vadd.f32 %v4309_v50, %v6240_v61  ;;  %v4311_v16 = vadd.f32 %v3286_v29, %v1840_v46  ;;  %v6258_v50 = vrot.slane %v3503_v2, %v3507_v32 }
 0x2bc   : > { %v3675_v24 = vsub.f32 0.0, %v3516_v10  ;;  %v3518_v45 = vadd.f32 %v4311_v16, %v6240_v61 }
 0x2be   : > { %v3707_v39 = vmul.f32 1.442695, %v3675_v24  ;;  %v3676_v21 = vsub.f32 0.0, %v3518_v45  ;;  %v3290_v22 = vpop.f32.mrb[4].mxu0  ;;  %v3515_v24 = vadd.f32 %v4308_v19, %v6258_v50 }
 0x2bf   : > { %v6244_v41 = vadd.f32 %v3290_v22, %v1844_v53  ;;  %v3292_v7 = vpop.f32.mrb[5].mxu0  ;;  %v3517_v22 = vadd.f32 %v4310_v57, %v6258_v50 }
 0x2c0   : > { %4866 = vpow2.f32 %v3707_v39  ;;  %v3709_v48 = vmul.f32 1.442695, %v3676_v21  ;;  %v4313_v25 = vadd.f32 %v3292_v7, %v1846_v12  ;;  %v3294_v34 = vpop.f32.mrb[6].mxu0  ;;  %vm3579_vm8 = vcmp.ge.f32.partialorder %v3515_v24, 0.0 }
 0x2c1   : > { %v6246_v17 = vadd.f32 %v3294_v34, %v1848_v8  ;;  %v3296_v43 = vpop.f32.mrb[7].mxu0  ;;  %vm3580_vm9 = vcmp.ge.f32.partialorder %v3517_v22, 0.0 }
 0x2c2   : > { %4868 = vpow2.f32 %v3709_v48  ;;  %v3520_v47 = vadd.f32 %v4313_v25, %v6240_v61  ;;  %v4315_v15 = vadd.f32 %v3296_v43, %v1850_v9 }
 0x2c4   : > { %v3677_v1 = vsub.f32 0.0, %v3520_v47  ;;  %v3522_v5 = vadd.f32 %v4315_v15, %v6240_v61 }
 0x2c6   : > { %v3711_v13 = vmul.f32 1.442695, %v3677_v1  ;;  %v3678_v59 = vsub.f32 0.0, %v3522_v5  ;;  %v3300_v33 = vpop.f32.mrb[8].mxu0  ;;  %v3612_v1 = vmul.f32 0.2, %v3517_v22 }
 0x2c7   : > { %v6250_v54 = vadd.f32 %v3300_v33, %v1854_v11  ;;  %v3302_v46 = vpop.f32.mrb[9].mxu0 }
 0x2c8   : > { %4870 = vpow2.f32 %v3711_v13  ;;  %v3713_v53 = vmul.f32 1.442695, %v3678_v59  ;;  %v4317_v12 = vadd.f32 %v3302_v46, %v6191_v58  ;;  %v3304_v8 = vpop.f32.mrb[10].mxu0 }
 0x2c9   : > { %v6254_v37 = vadd.f32 %v3304_v8, %v6193_v38  ;;  %v3306_v49 = vpop.f32.mrb[11].mxu0 }
 0x2ca   : > { %v4867_v9 = vpop.eup %4866  ;;  %4872 = vpow2.f32 %v3713_v53  ;;  %v3524_v44 = vadd.f32 %v4317_v12, %v6240_v61  ;;  %v4319_v0 = vadd.f32 %v3306_v49, %v6195_v6 }
 0x2cb   : > { %v3771_v11 = vadd.f32 1.0, %v4867_v9 }
 0x2cc   : > { %v4869_v51 = vpop.eup %4868  ;;  %v3679_v35 = vsub.f32 0.0, %v3524_v44  ;;  %v3526_v29 = vadd.f32 %v4319_v0, %v6240_v61 }
 0x2cd   : > { %4874 = vrcp.f32 %v3771_v11  ;;  %v3772_v58 = vadd.f32 1.0, %v4869_v51 }
 0x2ce   : > { %v3715_v10 = vmul.f32 1.442695, %v3679_v35  ;;  %v3680_v16 = vsub.f32 0.0, %v3526_v29  ;;  %v3310_v38 = vpop.f32.mrb[12].mxu0 }
 0x2cf   : > { %4876 = vrcp.f32 %v3772_v58  ;;  %v6263_v45 = vadd.f32 %v3310_v38, %v6197_v18  ;;  %v3312_v39 = vpop.f32.mrb[13].mxu0  ;;  %v3611_v18 = vmul.f32 0.2, %v3515_v24 }
 0x2d0   : > { %4878 = vpow2.f32 %v3715_v10  ;;  %v3717_v6 = vmul.f32 1.442695, %v3680_v16  ;;  %v4321_v2 = vadd.f32 %v3312_v39, %v6199_v62  ;;  %v3314_v21 = vpop.f32.mrb[14].mxu0 }
 0x2d1   : > { %v6268_v7 = vadd.f32 %v3314_v21, %v6201_v28  ;;  %v3316_v48 = vpop.f32.mrb[15].mxu0  ;;  %v3519_v28 = vadd.f32 %v6244_v41, %v6258_v50  ;;  %v3643_v32 = vsel %vm3579_vm8, %v3515_v24, %v3611_v18  ;;  %v3644_v41 = vsel %vm3580_vm9, %v3517_v22, %v3612_v1 }
 0x2d2   : > { %v4871_v25 = vpop.eup %4870  ;;  %4880 = vpow2.f32 %v3717_v6  ;;  %v3528_v19 = vadd.f32 %v4321_v2, %v6240_v61  ;;  %v4323_v34 = vadd.f32 %v3316_v48, %v6203_v20  ;;  %v3521_v20 = vadd.f32 %v6246_v17, %v6258_v50 }
 0x2d3   : > { %v3773_v43 = vadd.f32 1.0, %v4871_v25  ;;  %vm3581_vm10 = vcmp.ge.f32.partialorder %v3519_v28, 0.0  ;;  %v3613_v35 = vmul.f32 0.2, %v3519_v28 }
 0x2d4   : > { %v4873_v47 = vpop.eup %4872  ;;  %v3681_v15 = vsub.f32 0.0, %v3528_v19  ;;  %v3530_v62 = vadd.f32 %v4323_v34, %v6240_v61  ;;  %v3614_v29 = vmul.f32 0.2, %v3521_v20  ;;  %vm3582_vm11 = vcmp.ge.f32.partialorder %v3521_v20, 0.0 }
 0x2d5   : > { %4882 = vrcp.f32 %v3773_v43  ;;  %v3774_v57 = vadd.f32 1.0, %v4873_v47  ;;  %v3645_v25 = vsel %vm3581_vm10, %v3519_v28, %v3613_v35  ;;  %v3529_v35 = vadd.f32 %v6268_v7, %v6258_v50 }
 0x2d6   : > { %v3719_v5 = vmul.f32 1.442695, %v3681_v15  ;;  %v3682_v13 = vsub.f32 0.0, %v3530_v62  ;;  %v3320_v59 = vpop.f32.mrb[16].mxu0 }
 0x2d7   : > { %v4875_v33 = vpop.eup %4874  ;;  %4884 = vrcp.f32 %v3774_v57  ;;  %v6278_v46 = vadd.f32 %v3320_v59, %v6205_v30  ;;  %v3322_v53 = vpop.f32.mrb[17].mxu0  ;;  %v3646_v57 = vsel %vm3582_vm11, %v3521_v20, %v3614_v29  ;;  %vm3586_vm15 = vcmp.ge.f32.partialorder %v3529_v35, 0.0 }
 0x2d8   : > { %v3835_v12 = vmul.f32 %v4875_v33, %v3643_v32  ;;  %4886 = vpow2.f32 %v3719_v5  ;;  %v3721_v8 = vmul.f32 1.442695, %v3682_v13  ;;  %v3324_v49 = vpop.f32.mrb[18].mxu0  ;;  %v4325_v44 = vadd.f32 %v3322_v53, %v6207_v26 }
 0x2d9   : > { %v4877_v9 = vpop.eup %4876  ;;  %v6283_v0 = vadd.f32 %v3324_v49, %v6209_v52  ;;  %v3326_v11 = vpop.f32.mrb[19].mxu0  ;;  %v3523_v52 = vadd.f32 %v6250_v54, %v6258_v50  ;;  %v3525_v54 = vadd.f32 %v6254_v37, %v6258_v50 }
 0x2da   : > { %v4879_v51 = vpop.eup %4878  ;;  %v3836_v17 = vmul.f32 %v4877_v9, %v3644_v41  ;;  %4888 = vpow2.f32 %v3721_v8  ;;  %v4327_v30 = vadd.f32 %v3326_v11, %v6211_v63  ;;  %v3532_v10 = vadd.f32 %v4325_v44, %v6240_v61 }
 0x2db   : > { %v3775_v58 = vadd.f32 1.0, %v4879_v51  ;;  %v3905_v38 = vmul.f32 %v3835_v12, %v3835_v12  ;;  %v3615_v5 = vmul.f32 0.2, %v3523_v52  ;;  %vm3583_vm12 = vcmp.ge.f32.partialorder %v3523_v52, 0.0 }
 0x2dc   : > { %v4881_v16 = vpop.eup %4880  ;;  %v3867_v24 = vadd.f32 %v3836_v17, %v3835_v12  ;;  %v3906_v39 = vmul.f32 %v3836_v17, %v3836_v17  ;;  %v3534_v26 = vadd.f32 %v4327_v30, %v6240_v61  ;;  %v3683_v2 = vsub.f32 0.0, %v3532_v10 }
 0x2dd   : > { %4890 = vrcp.f32 %v3775_v58  ;;  %v3776_v6 = vadd.f32 1.0, %v4881_v16  ;;  %v3616_v20 = vmul.f32 0.2, %v3525_v54  ;;  %v3527_v9 = vadd.f32 %v6263_v45, %v6258_v50 }
 0x2de   : > { %v3937_v21 = vadd.f32 %v3906_v39, %v3905_v38  ;;  %v3684_v63 = vsub.f32 0.0, %v3534_v26  ;;  %v3330_v22 = vpop.f32.mrb[20].mxu0  ;;  %v3723_v19 = vmul.f32 1.442695, %v3683_v2  ;;  %v3647_v11 = vsel %vm3583_vm12, %v3523_v52, %v3615_v5 }
 0x2df   : > { %v4883_v48 = vpop.eup %4882  ;;  %4892 = vrcp.f32 %v3776_v6  ;;  %v6292_v34 = vadd.f32 %v3330_v22, %v6213_v55  ;;  %v3332_v18 = vpop.f32.mrb[21].mxu0  ;;  %vm3584_vm13 = vcmp.ge.f32.partialorder %v3525_v54, 0.0  ;;  %vm3585_vm14 = vcmp.ge.f32.partialorder %v3527_v9, 0.0 }
 0x2e0   : > { %v3837_v43 = vmul.f32 %v4883_v48, %v3645_v25  ;;  %v3725_v47 = vmul.f32 1.442695, %v3684_v63  ;;  %v4329_v15 = vadd.f32 %v3332_v18, %v6215_v40  ;;  %v3334_v62 = vpop.f32.mrb[22].mxu0  ;;  %4894 = vpow2.f32 %v3723_v19 }
 0x2e1   : > { %v4885_v1 = vpop.eup %4884  ;;  %v6298_v28 = vadd.f32 %v3334_v62, %v6217_v4  ;;  %v3336_v13 = vpop.f32.mrb[23].mxu0  ;;  %v3648_v26 = vsel %vm3584_vm13, %v3525_v54, %v3616_v20  ;;  %v3618_v22 = vmul.f32 0.2, %v3529_v35 }
 0x2e2   : > { %v4887_v59 = vpop.eup %4886  ;;  %v3868_v55 = vadd.f32 %v3867_v24, %v3837_v43  ;;  %v3907_v33 = vmul.f32 %v3837_v43, %v3837_v43  ;;  %v3838_v32 = vmul.f32 %v4885_v1, %v3646_v57  ;;  %4896 = vpow2.f32 %v3725_v47 }
 0x2e3   : > { %v3777_v53 = vadd.f32 1.0, %v4887_v59  ;;  %v3536_v37 = vadd.f32 %v4329_v15, %v6240_v61  ;;  %v4331_v51 = vadd.f32 %v3336_v13, %v6219_v42  ;;  %v3617_v42 = vmul.f32 0.2, %v3527_v9 }
 0x2e4   : > { %v4889_v12 = vpop.eup %4888  ;;  %v3938_v40 = vadd.f32 %v3937_v21, %v3907_v33  ;;  %v3869_v8 = vadd.f32 %v3868_v55, %v3838_v32  ;;  %v3908_v49 = vmul.f32 %v3838_v32, %v3838_v32  ;;  %v3533_v57 = vadd.f32 %v6283_v0, %v6258_v50 }
 0x2e5   : > { %4898 = vrcp.f32 %v3777_v53  ;;  %v3778_v4 = vadd.f32 1.0, %v4889_v12  ;;  %v3685_v41 = vsub.f32 0.0, %v3536_v37  ;;  %v3538_v16 = vadd.f32 %v4331_v51, %v6240_v61 }
 0x2e6   : > { %v3939_v44 = vadd.f32 %v3938_v40, %v3908_v49  ;;  %v3340_v17 = vpop.f32.mrb[24].mxu0  ;;  %v3649_v1 = vsel %vm3585_vm14, %v3527_v9, %v3617_v42  ;;  %v3650_v53 = vsel %vm3586_vm15, %v3529_v35, %v3618_v22  ;;  %vm3588_vm1 = vcmp.ge.f32.partialorder %v3533_v57, 0.0 }
 0x2e7   : > { %v4891_v30 = vpop.eup %4890  ;;  %4900 = vrcp.f32 %v3778_v4  ;;  %v3727_v29 = vmul.f32 1.442695, %v3685_v41  ;;  %v6307_v58 = vadd.f32 %v3340_v17, %v6221_v3  ;;  %v3342_v10 = vpop.f32.mrb[25].mxu0  ;;  %v3686_v3 = vsub.f32 0.0, %v3538_v16 }
 0x2e8   : > { %v3839_v45 = vmul.f32 %v4891_v30, %v3647_v11  ;;  %v4333_v38 = vadd.f32 %v3342_v10, %v6223_v56  ;;  %v3344_v24 = vpop.f32.mrb[26].mxu0  ;;  %v3620_v11 = vmul.f32 0.2, %v3533_v57 }
 0x2e9   : > { %v4893_v39 = vpop.eup %4892  ;;  %4902 = vpow2.f32 %v3727_v29  ;;  %v6312_v52 = vadd.f32 %v3344_v24, %v6225_v31  ;;  %v3346_v7 = vpop.f32.mrb[27].mxu0  ;;  %v3531_v31 = vadd.f32 %v6278_v46, %v6258_v50  ;;  %v3729_v47 = vmul.f32 1.442695, %v3686_v3 }
 0x2ea   : > { %v3870_v6 = vadd.f32 %v3869_v8, %v3839_v45  ;;  %v3909_v2 = vmul.f32 %v3839_v45, %v3839_v45  ;;  %v3840_v21 = vmul.f32 %v4893_v39, %v3648_v26  ;;  %v4895_v63 = vpop.eup %4894  ;;  %v3540_v48 = vadd.f32 %v4333_v38, %v6240_v61 }
 0x2eb   : > { %v3779_v43 = vadd.f32 1.0, %v4895_v63  ;;  %v4335_v55 = vadd.f32 %v3346_v7, %v6227_v23  ;;  %vm3587_vm0 = vcmp.ge.f32.partialorder %v3531_v31, 0.0 }
 0x2ec   : > { %v4897_v56 = vpop.eup %4896  ;;  %v3940_v25 = vadd.f32 %v3939_v44, %v3909_v2  ;;  %v3871_v19 = vadd.f32 %v3870_v6, %v3840_v21  ;;  %v3910_v18 = vmul.f32 %v3840_v21, %v3840_v21  ;;  %v3687_v15 = vsub.f32 0.0, %v3540_v48 }
 0x2ed   : > { %v3780_v54 = vadd.f32 1.0, %v4897_v56  ;;  %4904 = vrcp.f32 %v3779_v43  ;;  %v3542_v0 = vadd.f32 %v4335_v55, %v6240_v61  ;;  %v3619_v44 = vmul.f32 0.2, %v3531_v31 }
 0x2ee   : > { %v3941_v62 = vadd.f32 %v3940_v25, %v3910_v18  ;;  %v3350_v5 = vpop.f32.mrb[28].mxu0  ;;  %v3731_v59 = vmul.f32 1.442695, %v3687_v15  ;;  %v3652_v21 = vsel %vm3588_vm1, %v3533_v57, %v3620_v11 }
 0x2ef   : > { %v4899_v13 = vpop.eup %4898  ;;  %4906 = vrcp.f32 %v3780_v54  ;;  %v6321_v33 = vadd.f32 %v3350_v5, %v6229_v60  ;;  %v3352_v32 = vpop.f32.mrb[29].mxu0  ;;  %v3688_v51 = vsub.f32 0.0, %v3542_v0  ;;  %v3651_v42 = vsel %vm3587_vm0, %v3531_v31, %v3619_v44 }
 0x2f0   : > { %v3841_v46 = vmul.f32 %v4899_v13, %v3649_v1  ;;  %4908 = vpow2.f32 %v3729_v47  ;;  %v4337_v37 = vadd.f32 %v3352_v32, %v6231_v36  ;;  %v3354_v12 = vpop.f32.mrb[30].mxu0  ;;  %v3535_v36 = vadd.f32 %v6292_v34, %v6258_v50 }
 0x2f1   : > { %v4901_v40 = vpop.eup %4900  ;;  %4910 = vpow2.f32 %v3731_v59  ;;  %v6327_v8 = vadd.f32 %v3354_v12, %v6233_v27  ;;  %v3356_v23 = vpop.f32.mrb[31].mxu0  ;;  %v3733_v45 = vmul.f32 1.442695, %v3688_v51  ;;  %v3537_v5 = vadd.f32 %v6298_v28, %v6258_v50 }
 0x2f2   : > { %v3872_v49 = vadd.f32 %v3871_v19, %v3841_v46  ;;  %v3911_v60 = vmul.f32 %v3841_v46, %v3841_v46  ;;  %v3842_v20 = vmul.f32 %v4901_v40, %v3650_v53  ;;  %v3544_v9 = vadd.f32 %v4337_v37, %v6240_v61  ;;  %v2214_v4 = vpop.f32.mrb[32].mxu1 }
 0x2f3   : > { %v4903_v41 = vpop.eup %4902  ;;  %v2216_v17 = vpop.f32.mrb[33].mxu1  ;;  %v4339_v39 = vadd.f32 %v3356_v23, %v6235_v14  ;;  %vm3589_vm2 = vcmp.ge.f32.partialorder %v3535_v36, 0.0  ;;  %v3621_v25 = vmul.f32 0.2, %v3535_v36  ;;  %v3539_v32 = vadd.f32 %v6307_v58, %v6258_v50 }
 0x2f4   : > { %v3942_v30 = vadd.f32 %v3941_v62, %v3911_v60  ;;  %v3873_v35 = vadd.f32 %v3872_v49, %v3842_v20  ;;  %v3912_v29 = vmul.f32 %v3842_v20, %v3842_v20  ;;  %v3781_v27 = vadd.f32 1.0, %v4903_v41  ;;  %v2218_v10 = vpop.f32.mrb[34].mxu1 }
 0x2f5   : > { %v3689_v16 = vsub.f32 0.0, %v3544_v9  ;;  %v2220_v38 = vpop.f32.mrb[35].mxu1  ;;  %v3546_v3 = vadd.f32 %v4339_v39, %v6240_v61  ;;  %v3653_v49 = vsel %vm3589_vm2, %v3535_v36, %v3621_v25  ;;  %vm3590_vm3 = vcmp.ge.f32.partialorder %v3537_v5, 0.0 }
 0x2f6   : > { %v3943_v24 = vadd.f32 %v3942_v30, %v3912_v29  ;;  %4912 = vrcp.f32 %v3781_v27  ;;  %v3360_v26 = vpop.f32.mrb[32].mxu0  ;;  %v3622_v44 = vmul.f32 0.2, %v3537_v5  ;;  %v3623_v29 = vmul.f32 0.2, %v3539_v32 }
 0x2f7   : > { %4914 = vpow2.f32 %v3733_v45  ;;  %v3735_v34 = vmul.f32 1.442695, %v3689_v16  ;;  %v6334_v7 = vadd.f32 %v3360_v26, %v2214_v4  ;;  %v3362_v6 = vpop.f32.mrb[33].mxu0  ;;  %v4905_v2 = vpop.eup %4904  ;;  %v3690_v31 = vsub.f32 0.0, %v3546_v3 }
 0x2f8   : > { %v4341_v63 = vadd.f32 %v3362_v6, %v2216_v17  ;;  %v3364_v22 = vpop.f32.mrb[34].mxu0  ;;  %v3843_v56 = vmul.f32 %v4905_v2, %v3651_v42  ;;  %vm3591_vm4 = vcmp.ge.f32.partialorder %v3539_v32, 0.0 }
 0x2f9   : > { %v4907_v48 = vpop.eup %4906  ;;  %4916 = vpow2.f32 %v3735_v34  ;;  %v6337_v14 = vadd.f32 %v3364_v22, %v2218_v10  ;;  %v3366_v19 = vpop.f32.mrb[35].mxu0  ;;  %v3737_v53 = vmul.f32 1.442695, %v3690_v31  ;;  %v3541_v10 = vadd.f32 %v6312_v52, %v6258_v50 }
 0x2fa   : > { %v4909_v18 = vpop.eup %4908  ;;  %v3844_v43 = vmul.f32 %v4907_v48, %v3652_v21  ;;  %v3548_v54 = vadd.f32 %v4341_v63, %v6240_v61  ;;  %v4343_v47 = vadd.f32 %v3366_v19, %v2220_v38  ;;  %v2224_v15 = vpop.f32.mrb[36].mxu1  ;;  %v3874_v1 = vadd.f32 %v3873_v35, %v3843_v56 }
 0x2fb   : > { %v4911_v62 = vpop.eup %4910  ;;  %v3913_v57 = vmul.f32 %v3843_v56, %v3843_v56  ;;  %v3782_v13 = vadd.f32 1.0, %v4909_v18  ;;  %v2226_v59 = vpop.f32.mrb[37].mxu1  ;;  %v3543_v34 = vadd.f32 %v6321_v33, %v6258_v50  ;;  %v3654_v52 = vsel %vm3590_vm3, %v3537_v5, %v3622_v44 }
 0x2fc   : > { %v3914_v55 = vmul.f32 %v3844_v43, %v3844_v43  ;;  %v3783_v46 = vadd.f32 1.0, %v4911_v62  ;;  %v2228_v37 = vpop.f32.mrb[38].mxu1  ;;  %v3875_v40 = vadd.f32 %v3874_v1, %v3844_v43  ;;  %v3691_v0 = vsub.f32 0.0, %v3548_v54 }
 0x2fd   : > { %v3944_v12 = vadd.f32 %v3943_v24, %v3913_v57  ;;  %4918 = vrcp.f32 %v3782_v13  ;;  %v2230_v23 = vpop.f32.mrb[39].mxu1  ;;  %v3550_v60 = vadd.f32 %v4343_v47, %v6240_v61  ;;  %v3655_v56 = vsel %vm3591_vm4, %v3539_v32, %v3623_v29 }
 0x2fe   : > { %4920 = vrcp.f32 %v3783_v46  ;;  %v3370_v28 = vpop.f32.mrb[36].mxu0  ;;  %v3739_v9 = vmul.f32 1.442695, %v3691_v0  ;;  %vm3592_vm5 = vcmp.ge.f32.partialorder %v3541_v10, 0.0  ;;  %v3624_v43 = vmul.f32 0.2, %v3541_v10 }
 0x2ff   : > { %v3945_v20 = vadd.f32 %v3944_v12, %v3914_v55  ;;  %4922 = vpow2.f32 %v3737_v53  ;;  %v6346_v4 = vadd.f32 %v3370_v28, %v2224_v15  ;;  %v3372_v58 = vpop.f32.mrb[37].mxu0  ;;  %v3692_v11 = vsub.f32 0.0, %v3550_v60 }
 0x300   : > { %v4913_v41 = vpop.eup %4912  ;;  %v4345_v51 = vadd.f32 %v3372_v58, %v2226_v59  ;;  %v3374_v17 = vpop.f32.mrb[38].mxu0  ;;  %4924 = vpow2.f32 %v3739_v9  ;;  %vm3593_vm6 = vcmp.ge.f32.partialorder %v3543_v34, 0.0  ;;  %v3625_v62 = vmul.f32 0.2, %v3543_v34 }
 0x301   : > { %v4915_v30 = vpop.eup %4914  ;;  %v3845_v35 = vmul.f32 %v4913_v41, %v3653_v49  ;;  %v6348_v36 = vadd.f32 %v3374_v17, %v2228_v37  ;;  %v3376_v27 = vpop.f32.mrb[39].mxu0  ;;  %v3741_v16 = vmul.f32 1.442695, %v3692_v11  ;;  %v3545_v59 = vadd.f32 %v6327_v8, %v6258_v50 }
 0x302   : > { %v3784_v45 = vadd.f32 1.0, %v4915_v30  ;;  %v3552_v38 = vadd.f32 %v4345_v51, %v6240_v61  ;;  %v2234_v24 = vpop.f32.mrb[40].mxu1  ;;  %v4347_v22 = vadd.f32 %v3376_v27, %v2230_v23  ;;  %v3656_v60 = vsel %vm3592_vm5, %v3541_v10, %v3624_v43 }
 0x303   : > { %v4917_v39 = vpop.eup %4916  ;;  %v3876_v26 = vadd.f32 %v3875_v40, %v3845_v35  ;;  %v3915_v42 = vmul.f32 %v3845_v35, %v3845_v35  ;;  %v2236_v6 = vpop.f32.mrb[41].mxu1  ;;  %v3547_v28 = vadd.f32 %v6334_v7, %v6258_v50  ;;  %v3657_v11 = vsel %vm3593_vm6, %v3543_v34, %v3625_v62 }
 0x304   : > { %4926 = vrcp.f32 %v3784_v45  ;;  %v3785_v2 = vadd.f32 1.0, %v4917_v39  ;;  %v3693_v21 = vsub.f32 0.0, %v3552_v38  ;;  %v2238_v3 = vpop.f32.mrb[42].mxu1  ;;  %v3554_v33 = vadd.f32 %v4347_v22, %v6240_v61 }
 0x305   : > { %v3946_v63 = vadd.f32 %v3945_v20, %v3915_v42  ;;  %4928 = vpow2.f32 %v3741_v16  ;;  %v2240_v48 = vpop.f32.mrb[43].mxu1  ;;  %vm3594_vm7 = vcmp.ge.f32.partialorder %v3545_v59, 0.0  ;;  %v3626_v29 = vmul.f32 0.2, %v3545_v59 }
 0x306   : > { %4930 = vrcp.f32 %v3785_v2  ;;  %v3743_v25 = vmul.f32 1.442695, %v3693_v21  ;;  %v3380_v19 = vpop.f32.mrb[40].mxu0  ;;  %v3694_v55 = vsub.f32 0.0, %v3554_v33  ;;  %vm3595_vm8 = vcmp.ge.f32.partialorder %v3547_v28, 0.0 }
 0x307   : > { %v4919_v18 = vpop.eup %4918  ;;  %v6357_v31 = vadd.f32 %v3380_v19, %v2234_v24  ;;  %v3382_v54 = vpop.f32.mrb[41].mxu0  ;;  %v3627_v16 = vmul.f32 0.2, %v3547_v28 }
 0x308   : > { %v4921_v47 = vpop.eup %4920  ;;  %v3846_v15 = vmul.f32 %v4919_v18, %v3654_v52  ;;  %4932 = vpow2.f32 %v3743_v25  ;;  %v4349_v1 = vadd.f32 %v3382_v54, %v2236_v6  ;;  %v3384_v57 = vpop.f32.mrb[42].mxu0  ;;  %v3745_v20 = vmul.f32 1.442695, %v3694_v55 }
 0x309   : > { %v4923_v5 = vpop.eup %4922  ;;  %v3847_v13 = vmul.f32 %v4921_v47, %v3655_v56  ;;  %v6361_v32 = vadd.f32 %v3384_v57, %v2238_v3  ;;  %v3386_v46 = vpop.f32.mrb[43].mxu0  ;;  %v3551_v56 = vadd.f32 %v6346_v4, %v6258_v50  ;;  %v3659_v62 = vsel %vm3595_vm8, %v3547_v28, %v3627_v16 }
 0x30a   : > { %v3877_v53 = vadd.f32 %v3876_v26, %v3846_v15  ;;  %v3916_v37 = vmul.f32 %v3846_v15, %v3846_v15  ;;  %v3786_v12 = vadd.f32 1.0, %v4923_v5  ;;  %v3556_v40 = vadd.f32 %v4349_v1, %v6240_v61  ;;  %v2244_v0 = vpop.f32.mrb[44].mxu1  ;;  %v4925_v23 = vpop.eup %4924 }
 0x30b   : > { %v3917_v49 = vmul.f32 %v3847_v13, %v3847_v13  ;;  %v2246_v9 = vpop.f32.mrb[45].mxu1  ;;  %v3787_v41 = vadd.f32 1.0, %v4925_v23  ;;  %v4351_v27 = vadd.f32 %v3386_v46, %v2240_v48  ;;  %v3549_v48 = vadd.f32 %v6337_v14, %v6258_v50 }
 0x30c   : > { %v3947_v8 = vadd.f32 %v3946_v63, %v3916_v37  ;;  %v3878_v58 = vadd.f32 %v3877_v53, %v3847_v13  ;;  %4934 = vrcp.f32 %v3786_v12  ;;  %v2248_v44 = vpop.f32.mrb[46].mxu1  ;;  %v3695_v51 = vsub.f32 0.0, %v3556_v40 }
 0x30d   : > { %4936 = vpow2.f32 %v3745_v20  ;;  %v2250_v17 = vpop.f32.mrb[47].mxu1  ;;  %v3558_v42 = vadd.f32 %v4351_v27, %v6240_v61  ;;  %v3658_v15 = vsel %vm3594_vm7, %v3545_v59, %v3626_v29  ;;  %vm3596_vm9 = vcmp.ge.f32.partialorder %v3549_v48, 0.0 }
 0x30e   : > { %v4927_v30 = vpop.eup %4926  ;;  %v3948_v35 = vadd.f32 %v3947_v8, %v3917_v49  ;;  %4938 = vrcp.f32 %v3787_v41  ;;  %v3390_v10 = vpop.f32.mrb[44].mxu0  ;;  %v3747_v38 = vmul.f32 1.442695, %v3695_v51  ;;  %v3628_v53 = vmul.f32 0.2, %v3549_v48 }
 0x30f   : > { %v4929_v7 = vpop.eup %4928  ;;  %v3848_v45 = vmul.f32 %v4927_v30, %v3656_v60  ;;  %v3392_v24 = vpop.f32.mrb[45].mxu0  ;;  %v6369_v34 = vadd.f32 %v3390_v10, %v2244_v0  ;;  %v3696_v25 = vsub.f32 0.0, %v3558_v42  ;;  %vm3597_vm10 = vcmp.ge.f32.partialorder %v3551_v56, 0.0 }
 0x310   : > { %v4931_v39 = vpop.eup %4930  ;;  %v3788_v26 = vadd.f32 1.0, %v4929_v7  ;;  %v4353_v6 = vadd.f32 %v3392_v24, %v2246_v9  ;;  %v3394_v2 = vpop.f32.mrb[46].mxu0  ;;  %4940 = vpow2.f32 %v3747_v38  ;;  %v3629_v28 = vmul.f32 0.2, %v3551_v56 }
 0x311   : > { %v3879_v21 = vadd.f32 %v3878_v58, %v3848_v45  ;;  %v3918_v3 = vmul.f32 %v3848_v45, %v3848_v45  ;;  %v3849_v63 = vmul.f32 %v4931_v39, %v3657_v11  ;;  %v3396_v52 = vpop.f32.mrb[47].mxu0  ;;  %v3749_v1 = vmul.f32 1.442695, %v3696_v25 }
 0x312   : > { %v4933_v22 = vpop.eup %4932  ;;  %4942 = vrcp.f32 %v3788_v26  ;;  %v2254_v19 = vpop.f32.mrb[48].mxu1  ;;  %v3560_v57 = vadd.f32 %v4353_v6, %v6240_v61  ;;  %v6378_v13 = vadd.f32 %v3394_v2, %v2248_v44  ;;  %v4355_v4 = vadd.f32 %v3396_v52, %v2250_v17 }
 0x313   : > { %v3949_v18 = vadd.f32 %v3948_v35, %v3918_v3  ;;  %v3880_v43 = vadd.f32 %v3879_v21, %v3849_v63  ;;  %v3919_v33 = vmul.f32 %v3849_v63, %v3849_v63  ;;  %v3789_v54 = vadd.f32 1.0, %v4933_v22  ;;  %v2256_v47 = vpop.f32.mrb[49].mxu1 }
 0x314   : > { %v2258_v5 = vpop.f32.mrb[50].mxu1  ;;  %v3697_v37 = vsub.f32 0.0, %v3560_v57  ;;  %v3562_v0 = vadd.f32 %v4355_v4, %v6240_v61  ;;  %v3553_v51 = vadd.f32 %v6348_v36, %v6258_v50  ;;  %v3660_v38 = vsel %vm3596_vm9, %v3549_v48, %v3628_v53 }
 0x315   : > { %v3950_v14 = vadd.f32 %v3949_v18, %v3919_v33  ;;  %4944 = vrcp.f32 %v3789_v54  ;;  %v2260_v55 = vpop.f32.mrb[51].mxu1  ;;  %v3661_v24 = vsel %vm3597_vm10, %v3551_v56, %v3629_v28  ;;  %v3555_v56 = vadd.f32 %v6357_v31, %v6258_v50 }
 0x316   : > { %v4935_v46 = vpop.eup %4934  ;;  %4946 = vpow2.f32 %v3749_v1  ;;  %v3400_v12 = vpop.f32.mrb[48].mxu0  ;;  %v3751_v9 = vmul.f32 1.442695, %v3697_v37  ;;  %v3698_v30 = vsub.f32 0.0, %v3562_v0  ;;  %vm3598_vm11 = vcmp.ge.f32.partialorder %v3553_v51, 0.0 }
 0x317   : > { %v4937_v40 = vpop.eup %4936  ;;  %v3850_v59 = vmul.f32 %v4935_v46, %v3658_v15  ;;  %v6381_v23 = vadd.f32 %v3400_v12, %v2254_v19  ;;  %v3402_v49 = vpop.f32.mrb[49].mxu0  ;;  %v3630_v3 = vmul.f32 0.2, %v3553_v51  ;;  %v3557_v54 = vadd.f32 %v6361_v32, %v6258_v50 }
 0x318   : > { %v4939_v60 = vpop.eup %4938  ;;  %v3790_v20 = vadd.f32 1.0, %v4937_v40  ;;  %v4357_v8 = vadd.f32 %v3402_v49, %v2256_v47  ;;  %v3404_v58 = vpop.f32.mrb[50].mxu0  ;;  %v3753_v26 = vmul.f32 1.442695, %v3698_v30  ;;  %v3631_v12 = vmul.f32 0.2, %v3555_v56 }
 0x319   : > { %v3881_v41 = vadd.f32 %v3880_v43, %v3850_v59  ;;  %v3920_v44 = vmul.f32 %v3850_v59, %v3850_v59  ;;  %v3851_v11 = vmul.f32 %v4939_v60, %v3659_v62  ;;  %v3406_v17 = vpop.f32.mrb[51].mxu0  ;;  %v6388_v63 = vadd.f32 %v3404_v58, %v2258_v5 }
 0x31a   : > { %4948 = vrcp.f32 %v3790_v20  ;;  %v2264_v35 = vpop.f32.mrb[52].mxu1  ;;  %v4941_v29 = vpop.eup %4940  ;;  %v3564_v2 = vadd.f32 %v4357_v8, %v6240_v61  ;;  %v4359_v52 = vadd.f32 %v3406_v17, %v2260_v55  ;;  %v3662_v37 = vsel %vm3598_vm11, %v3553_v51, %v3630_v3 }
 0x31b   : > { %v3951_v27 = vadd.f32 %v3950_v14, %v3920_v44  ;;  %v3882_v10 = vadd.f32 %v3881_v41, %v3851_v11  ;;  %v3921_v7 = vmul.f32 %v3851_v11, %v3851_v11  ;;  %4950 = vpow2.f32 %v3751_v9  ;;  %v2266_v45 = vpop.f32.mrb[53].mxu1 }
 0x31c   : > { %v4943_v16 = vpop.eup %4942  ;;  %v3791_v39 = vadd.f32 1.0, %v4941_v29  ;;  %v2268_v42 = vpop.f32.mrb[54].mxu1  ;;  %v3699_v47 = vsub.f32 0.0, %v3564_v2  ;;  %v3566_v15 = vadd.f32 %v4359_v52, %v6240_v61  ;;  %vm3599_vm12 = vcmp.ge.f32.partialorder %v3555_v56, 0.0 }
 0x31d   : > { %v3952_v6 = vadd.f32 %v3951_v27, %v3921_v7  ;;  %v3852_v36 = vmul.f32 %v4943_v16, %v3660_v38  ;;  %v2270_v21 = vpop.f32.mrb[55].mxu1  ;;  %v3632_v8 = vmul.f32 0.2, %v3557_v54  ;;  %vm3600_vm13 = vcmp.ge.f32.partialorder %v3557_v54, 0.0 }
 0x31e   : > { %4952 = vrcp.f32 %v3791_v39  ;;  %v3410_v22 = vpop.f32.mrb[52].mxu0  ;;  %v3755_v31 = vmul.f32 1.442695, %v3699_v47  ;;  %v3700_v40 = vsub.f32 0.0, %v3566_v15  ;;  %v3559_v44 = vadd.f32 %v6369_v34, %v6258_v50 }
 0x31f   : > { %v4945_v25 = vpop.eup %4944  ;;  %v3883_v19 = vadd.f32 %v3882_v10, %v3852_v36  ;;  %v3922_v48 = vmul.f32 %v3852_v36, %v3852_v36  ;;  %4954 = vpow2.f32 %v3753_v26  ;;  %v3412_v18 = vpop.f32.mrb[53].mxu0  ;;  %v6395_v5 = vadd.f32 %v3410_v22, %v2264_v35 }
 0x320   : > { %v4947_v43 = vpop.eup %4946  ;;  %v3853_v33 = vmul.f32 %v4945_v25, %v3661_v24  ;;  %v3414_v62 = vpop.f32.mrb[54].mxu0  ;;  %v4361_v14 = vadd.f32 %v3412_v18, %v2266_v45  ;;  %v3757_v58 = vmul.f32 1.442695, %v3700_v40  ;;  %v3663_v7 = vsel %vm3599_vm12, %v3555_v56, %v3631_v12 }
 0x321   : > { %v3953_v1 = vadd.f32 %v3952_v6, %v3922_v48  ;;  %v3792_v57 = vadd.f32 1.0, %v4947_v43  ;;  %v3416_v4 = vpop.f32.mrb[55].mxu0  ;;  %v6399_v60 = vadd.f32 %v3414_v62, %v2268_v42  ;;  %v3664_v26 = vsel %vm3600_vm13, %v3557_v54, %v3632_v8 }
 0x322   : > { %v3884_v55 = vadd.f32 %v3883_v19, %v3853_v33  ;;  %v3923_v46 = vmul.f32 %v3853_v33, %v3853_v33  ;;  %v2274_v53 = vpop.f32.mrb[56].mxu1  ;;  %v3568_v49 = vadd.f32 %v4361_v14, %v6240_v61  ;;  %v4363_v29 = vadd.f32 %v3416_v4, %v2270_v21 }
 0x323   : > { %4956 = vrcp.f32 %v3792_v57  ;;  %v2276_v32 = vpop.f32.mrb[57].mxu1  ;;  %vm3601_vm14 = vcmp.ge.f32.partialorder %v3559_v44, 0.0  ;;  %v3633_v19 = vmul.f32 0.2, %v3559_v44  ;;  %v3561_v54 = vadd.f32 %v6378_v13, %v6258_v50 }
 0x324   : > { %v4949_v59 = vpop.eup %4948  ;;  %v3954_v0 = vadd.f32 %v3953_v1, %v3923_v46  ;;  %4958 = vpow2.f32 %v3755_v31  ;;  %v2278_v28 = vpop.f32.mrb[58].mxu1  ;;  %v3701_v51 = vsub.f32 0.0, %v3568_v49  ;;  %v3570_v34 = vadd.f32 %v4363_v29, %v6240_v61 }
 0x325   : > { %v4951_v20 = vpop.eup %4950  ;;  %v3854_v9 = vmul.f32 %v4949_v59, %v3662_v37  ;;  %v2280_v41 = vpop.f32.mrb[59].mxu1  ;;  %4960 = vpow2.f32 %v3757_v58  ;;  %v3665_v12 = vsel %vm3601_vm14, %v3559_v44, %v3633_v19  ;;  %v3634_v13 = vmul.f32 0.2, %v3561_v54 }
 0x326   : > { %v3793_v11 = vadd.f32 1.0, %v4951_v20  ;;  %v3420_v17 = vpop.f32.mrb[56].mxu0  ;;  %v3759_v45 = vmul.f32 1.442695, %v3701_v51  ;;  %v3702_v22 = vsub.f32 0.0, %v3570_v34  ;;  %vm3602_vm15 = vcmp.ge.f32.partialorder %v3561_v54, 0.0 }
 0x327   : > { %v3885_v30 = vadd.f32 %v3884_v55, %v3854_v9  ;;  %v3924_v35 = vmul.f32 %v3854_v9, %v3854_v9  ;;  %v3422_v27 = vpop.f32.mrb[57].mxu0  ;;  %v6405_v36 = vadd.f32 %v3420_v17, %v2274_v53  ;;  %v3565_v17 = vadd.f32 %v6388_v63, %v6258_v50 }
 0x328   : > { %v4953_v10 = vpop.eup %4952  ;;  %4962 = vrcp.f32 %v3793_v11  ;;  %v3424_v16 = vpop.f32.mrb[58].mxu0  ;;  %v4365_v2 = vadd.f32 %v3422_v27, %v2276_v32  ;;  %v3761_v47 = vmul.f32 1.442695, %v3702_v22 }
 0x329   : > { %v4955_v38 = vpop.eup %4954  ;;  %v3955_v24 = vadd.f32 %v3954_v0, %v3924_v35  ;;  %v3855_v39 = vmul.f32 %v4953_v10, %v3663_v7  ;;  %v3426_v42 = vpop.f32.mrb[59].mxu0  ;;  %4964 = vpow2.f32 %v3759_v45  ;;  %v6408_v56 = vadd.f32 %v3424_v16, %v2278_v28 }
 0x32a   : > { %v3794_v6 = vadd.f32 1.0, %v4955_v38  ;;  %v2284_v21 = vpop.f32.mrb[60].mxu1  ;;  %v3572_v48 = vadd.f32 %v4365_v2, %v6240_v61  ;;  %v4367_v15 = vadd.f32 %v3426_v42, %v2280_v41  ;;  %v3563_v0 = vadd.f32 %v6381_v23, %v6258_v50 }
 0x32b   : > { %v3886_v3 = vadd.f32 %v3885_v30, %v3855_v39  ;;  %v3925_v52 = vmul.f32 %v3855_v39, %v3855_v39  ;;  %v2286_v25 = vpop.f32.mrb[61].mxu1  ;;  %v3666_v7 = vsel %vm3602_vm15, %v3561_v54, %v3634_v13  ;;  %vm3604_vm1 = vcmp.ge.f32.partialorder %v3565_v17, 0.0 }
 0x32c   : > { %4966 = vrcp.f32 %v3794_v6  ;;  %v2288_v18 = vpop.f32.mrb[62].mxu1  ;;  %v3703_v14 = vsub.f32 0.0, %v3572_v48  ;;  %v3574_v46 = vadd.f32 %v4367_v15, %v6240_v61  ;;  %v3635_v45 = vmul.f32 0.2, %v3563_v0 }
 0x32d   : > { %v4957_v43 = vpop.eup %4956  ;;  %v3956_v33 = vadd.f32 %v3955_v24, %v3925_v52  ;;  %v2290_v62 = vpop.f32.mrb[63].mxu1  ;;  %4968 = vpow2.f32 %v3761_v47  ;;  %vm3603_vm0 = vcmp.ge.f32.partialorder %v3563_v0, 0.0  ;;  %v3636_v63 = vmul.f32 0.2, %v3565_v17 }
 0x32e   : > { %v4959_v1 = vpop.eup %4958  ;;  %v3856_v57 = vmul.f32 %v4957_v43, %v3664_v26  ;;  %v3430_v4 = vpop.f32.mrb[60].mxu0  ;;  %v3763_v40 = vmul.f32 1.442695, %v3703_v14  ;;  %v3704_v49 = vsub.f32 0.0, %v3574_v46  ;;  %v3567_v2 = vadd.f32 %v6395_v5, %v6258_v50 }
 0x32f   : > { %v3795_v55 = vadd.f32 1.0, %v4959_v1  ;;  %v3432_v31 = vpop.f32.mrb[61].mxu0  ;;  %v4961_v59 = vpop.eup %4960  ;;  %v6416_v58 = vadd.f32 %v3430_v4, %v2284_v21  ;;  %v3667_v19 = vsel %vm3603_vm0, %v3563_v0, %v3635_v45  ;;  %v3569_v5 = vadd.f32 %v6399_v60, %v6258_v50 }
 0x330   : > { %v3887_v53 = vadd.f32 %v3886_v3, %v3856_v57  ;;  %v3926_v37 = vmul.f32 %v3856_v57, %v3856_v57  ;;  %v3434_v32 = vpop.f32.mrb[62].mxu0  ;;  %v3796_v8 = vadd.f32 1.0, %v4961_v59  ;;  %v3765_v11 = vmul.f32 1.442695, %v3704_v49 }
 0x331   : > { %4970 = vrcp.f32 %v3795_v55  ;;  %v3436_v28 = vpop.f32.mrb[63].mxu0  ;;  %v4369_v44 = vadd.f32 %v3432_v31, %v2286_v25  ;;  %v6420_v30 = vadd.f32 %v3434_v32, %v2288_v18  ;;  %vm3605_vm2 = vcmp.ge.f32.partialorder %v3567_v2, 0.0 }
 0x332   : > { %v4963_v20 = vpop.eup %4962  ;;  %v3957_v9 = vadd.f32 %v3956_v33, %v3926_v37  ;;  %4972 = vpow2.f32 %v3763_v40  ;;  %v4371_v23 = vadd.f32 %v3436_v28, %v2290_v62  ;;  %v3637_v33 = vmul.f32 0.2, %v3567_v2 }
 0x333   : > { %v3857_v41 = vmul.f32 %v4963_v20, %v3665_v12  ;;  %v4965_v51 = vpop.eup %4964  ;;  %4974 = vrcp.f32 %v3796_v8  ;;  %v3576_v16 = vadd.f32 %v4369_v44, %v6240_v61  ;;  %v3571_v4 = vadd.f32 %v6405_v36, %v6258_v50 }
 0x334   : > { %v3797_v27 = vadd.f32 1.0, %v4965_v51  ;;  %4976 = vpow2.f32 %v3765_v11  ;;  %v3578_v39 = vadd.f32 %v4371_v23, %v6240_v61  ;;  %v3668_v61 = vsel %vm3604_vm1, %v3565_v17, %v3636_v63 }
 0x335   : > { %v3888_v35 = vadd.f32 %v3887_v53, %v3857_v41  ;;  %v3927_v29 = vmul.f32 %v3857_v41, %v3857_v41  ;;  %v3705_v26 = vsub.f32 0.0, %v3576_v16  ;;  %v3669_v37 = vsel %vm3605_vm2, %v3567_v2, %v3637_v33 }
 0x336   : > { %v4967_v10 = vpop.eup %4966  ;;  %4978 = vrcp.f32 %v3797_v27  ;;  %v3706_v21 = vsub.f32 0.0, %v3578_v39  ;;  %v3638_v40 = vmul.f32 0.2, %v3569_v5  ;;  %vm3606_vm3 = vcmp.ge.f32.partialorder %v3569_v5, 0.0 }
 0x337   : > { %v3958_v38 = vadd.f32 %v3957_v9, %v3927_v29  ;;  %v3858_v24 = vmul.f32 %v4967_v10, %v3666_v7  ;;  %v4969_v34 = vpop.eup %4968  ;;  %v3767_v52 = vmul.f32 1.442695, %v3705_v26  ;;  %v3639_v13 = vmul.f32 0.2, %v3571_v4 }
 0x338   : > { %v3798_v3 = vadd.f32 1.0, %v4969_v34  ;;  %v3769_v48 = vmul.f32 1.442695, %v3706_v21  ;;  %v3573_v0 = vadd.f32 %v6408_v56, %v6258_v50  ;;  %vm3607_vm4 = vcmp.ge.f32.partialorder %v3571_v4, 0.0 }
 0x339   : > { %v3889_v42 = vadd.f32 %v3888_v35, %v3858_v24  ;;  %v3928_v6 = vmul.f32 %v3858_v24, %v3858_v24  ;;  %v3670_v28 = vsel %vm3606_vm3, %v3569_v5, %v3638_v40  ;;  %v3671_v41 = vsel %vm3607_vm4, %v3571_v4, %v3639_v13 }
 0x33a   : > { %4980 = vrcp.f32 %v3798_v3  ;;  %v3640_v11 = vmul.f32 0.2, %v3573_v0  ;;  %vm3608_vm5 = vcmp.ge.f32.partialorder %v3573_v0, 0.0  ;;  %v3575_v16 = vadd.f32 %v6416_v58, %v6258_v50 }
 0x33b   : > { %v4971_v22 = vpop.eup %4970  ;;  %v3959_v25 = vadd.f32 %v3958_v38, %v3928_v6  ;;  %4982 = vpow2.f32 %v3767_v52  ;;  %v3577_v24 = vadd.f32 %v6420_v30, %v6258_v50 }
 0x33c   : > { %v4973_v18 = vpop.eup %4972  ;;  %v3859_v43 = vmul.f32 %v4971_v22, %v3667_v19  ;;  %4984 = vpow2.f32 %v3769_v48  ;;  %v3672_v45 = vsel %vm3608_vm5, %v3573_v0, %v3640_v11  ;;  %v3641_v34 = vmul.f32 0.2, %v3575_v16 }
 0x33d   : > { %v3799_v54 = vadd.f32 1.0, %v4973_v18  ;;  %v4975_v47 = vpop.eup %4974  ;;  %vm3609_vm6 = vcmp.ge.f32.partialorder %v3575_v16, 0.0  ;;  %v3642_v6 = vmul.f32 0.2, %v3577_v24  ;;  %vm3610_vm7 = vcmp.ge.f32.partialorder %v3577_v24, 0.0 }
 0x33e   : > { %v3890_v15 = vadd.f32 %v3889_v42, %v3859_v43  ;;  %v3929_v62 = vmul.f32 %v3859_v43, %v3859_v43  ;;  %v4977_v1 = vpop.eup %4976  ;;  %v3860_v57 = vmul.f32 %v4975_v47, %v3668_v61  ;;  %v3673_v21 = vsel %vm3609_vm6, %v3575_v16, %v3641_v34 }
 0x33f   : > { %4986 = vrcp.f32 %v3799_v54  ;;  %v3800_v55 = vadd.f32 1.0, %v4977_v1  ;;  %v3674_v22 = vsel %vm3610_vm7, %v3577_v24, %v3642_v6 }
 0x340   : > { %v3960_v14 = vadd.f32 %v3959_v25, %v3929_v62  ;;  %v4979_v46 = vpop.eup %4978  ;;  %v3891_v31 = vadd.f32 %v3890_v15, %v3860_v57  ;;  %v3930_v53 = vmul.f32 %v3860_v57, %v3860_v57 }
 0x341   : > { %v3861_v12 = vmul.f32 %v4979_v46, %v3669_v37  ;;  %4988 = vrcp.f32 %v3800_v55 }
 0x342   : > { %v3961_v32 = vadd.f32 %v3960_v14, %v3930_v53 }
 0x343   : > { %v3892_v60 = vadd.f32 %v3891_v31, %v3861_v12  ;;  %v3931_v59 = vmul.f32 %v3861_v12, %v3861_v12 }
 0x344   : > { %v4981_v49 = vpop.eup %4980 }
 0x345   : > { %v3962_v36 = vadd.f32 %v3961_v32, %v3931_v59  ;;  %v4983_v20 = vpop.eup %4982  ;;  %v3862_v9 = vmul.f32 %v4981_v49, %v3670_v28 }
 0x346   : > { %v4985_v8 = vpop.eup %4984  ;;  %v3801_v44 = vadd.f32 1.0, %v4983_v20 }
 0x347   : > { %v3893_v17 = vadd.f32 %v3892_v60, %v3862_v9  ;;  %v3932_v23 = vmul.f32 %v3862_v9, %v3862_v9  ;;  %v3802_v35 = vadd.f32 1.0, %v4985_v8 }
 0x348   : > { %4990 = vrcp.f32 %v3801_v44 }
 0x349   : > { %v4987_v51 = vpop.eup %4986  ;;  %v3963_v27 = vadd.f32 %v3962_v36, %v3932_v23  ;;  %4992 = vrcp.f32 %v3802_v35 }
 0x34a   : > { %v3863_v29 = vmul.f32 %v4987_v51, %v3671_v41 }
 0x34b   : > { %v4989_v56 = vpop.eup %4988 }
 0x34c   : > { %v3894_v10 = vadd.f32 %v3893_v17, %v3863_v29  ;;  %v3933_v7 = vmul.f32 %v3863_v29, %v3863_v29  ;;  %v3864_v38 = vmul.f32 %v4989_v56, %v3672_v45 }
 0x34e   : > { %v3964_v39 = vadd.f32 %v3963_v27, %v3933_v7  ;;  %v3895_v63 = vadd.f32 %v3894_v10, %v3864_v38  ;;  %v3934_v26 = vmul.f32 %v3864_v38, %v3864_v38 }
 0x350   : > { %v3965_v42 = vadd.f32 %v3964_v39, %v3934_v26 }
 0x352   : > { %v4991_v2 = vpop.eup %4990 }
 0x353   : > { %v4993_v3 = vpop.eup %4992  ;;  %v3865_v52 = vmul.f32 %v4991_v2, %v3673_v21 }
 0x354   : > { %v3866_v25 = vmul.f32 %v4993_v3, %v3674_v22 }
 0x355   : > { %v3896_v58 = vadd.f32 %v3895_v63, %v3865_v52  ;;  %v3935_v19 = vmul.f32 %v3865_v52, %v3865_v52 }
 0x356   : > { %v3936_v48 = vmul.f32 %v3866_v25, %v3866_v25 }
 0x357   : > { %v3966_v50 = vadd.f32 %v3965_v42, %v3935_v19  ;;  %v3897_v30 = vadd.f32 %v3896_v58, %v3866_v25 }
 0x359   : > { %v3898_v18 = vrot.slane %v3897_v30, 4  ;;  %v3967_v43 = vadd.f32 %v3966_v50, %v3936_v48 }
 0x35b   : > { %v3899_v61 = vadd.f32 %v3898_v18, %v3897_v30  ;;  %v3968_v33 = vrot.slane %v3967_v43, 4 }
 0x35d   : > { %v3900_v54 = vrot.slane %v3899_v61, 2  ;;  %v3969_v47 = vadd.f32 %v3968_v33, %v3967_v43 }
 0x35f   : > { %v3901_v15 = vadd.f32 %v3900_v54, %v3899_v61  ;;  %v3970_v62 = vrot.slane %v3969_v47, 2 }
 0x361   : > { %v3902_v5 = vrot.slane %v3901_v15, 1  ;;  %v3971_v1 = vadd.f32 %v3970_v62, %v3969_v47 }
 0x363   : > { %v3903_v57 = vadd.f32 %v3902_v5, %v3901_v15  ;;  %v3972_v14 = vrot.slane %v3971_v1, 1 }
 0x365   : > { %3904 = vst [vmem:[%s199_s19] sm:$0x1] %v3903_v57  ;;  %v3973_v4 = vadd.f32 %v3972_v14, %v3971_v1 }
 0x367   : > { %3974 = vst [vmem:[%s202_s22] sm:$0x1] %v3973_v4 }
 0x368 PF: > { %s15_s15 = sadd.s32 1, %s5005_s15  }
 0x369   : > { %p12_p4 = scmp.ge.s32.totalorder %s15_s15, 4  }
 0x36b   :  { %14 = sbr.rel (!%p12_p4) target bundleno = 1 (0x1), region = 82 }

// kernel: gated_conv2d_with_activation.3
= control target key start
LH: loop header
LB: loop body
LE: loop exit
PB: predicated region body
PF: predicated region fallthrough
CT: control target
= control target key end

     0   :  { %s5052_s18 = smov 0   ;;  %s6585_s0 = inlined_call_operand.vmem [shape: bf16[2,18,18,8], index: 0, kind: input, shape index: {}]   ;;  %s6586_s1 = inlined_call_operand.vmem [shape: bf16[9,8,256], index: 1, kind: input, shape index: {}]   ;;  %s6587_s2 = inlined_call_operand.vmem [shape: f32[1,256], index: 2, kind: input, shape index: {}]   ;;  %s6588_s3 = inlined_call_operand.vmem [shape: f32[1,128], index: 3, kind: input, shape index: {}]   ;;  %s6589_s4 = inlined_call_operand.vmem [shape: f32[1,128], index: 4, kind: input, shape index: {}]   ;;  %s6590_s5 = inlined_call_operand.vmem [shape: f32[2,256,128], index: 5, kind: output, shape index: {}]  }
   0x1 LB: > { %s4054_s19 = sadd.s32 4294967295, %s5019_s18   ;;  %p4058_p0 = scmp.ge.s32.totalorder %s5019_s18, 1  ;;  %s5019_s18 = sphi %s5052_s18, %s15_s18  }
   0x2   : > { %p187_p1 = scmp.lt.s32.totalorder %s5019_s18, 3 }
   0x4   : > { %p188_p2 = pnand %p4058_p0, %p187_p1 }
   0x6   : > { %191 = sbr.rel (%p188_p2) target bundleno = 858 (0x35a), region = 40 }
   0xd   : > { %v4062_v0 = vld [vmem:[%s6586_s1 + $0x8] sm:$0xff]  ;;  %vm772_vm0 = vcmask 1043456   ;;  %v4206_v1 = vld [vmem:[%s6586_s1 + $0x20] sm:$0xff]  ;;  %p215_p3 = scmp.lt.s32.totalorder %s4054_s19, 1  ;;  %v6603_v7 = vmov 0   ;;  %v5097_v13 = vld [vmem:[%s6586_s1 + $0x30] sm:$0xff] }
   0xe   : > { %v280_v2 = vld [vmem:[%s6586_s1] sm:$0xff]  ;;  %v4080_v3 = vcombine.high %v4062_v0, %v4062_v0  ;;  %v5069_v4 = vcombine.high %v4206_v1, %v4206_v1  ;;  %v4079_v5 = vcombine.low %v4062_v0, %v4062_v0  ;;  %v4208_v6 = vcombine.low %v4206_v1, %v4206_v1  ;;  %811 = vmatprep.mubr.bf16.mxu1 %v6603_v7  ;;  %v4228_v8 = vld [vmem:[%s6586_s1 + $0x28] sm:$0xff] }
   0xf   : > { %v4115_v9 = vcombine.high %v280_v2, %v280_v2  ;;  %2154 = vmatprep.mubr.bf16.mxu0 %v6603_v7  ;;  %v4231_v10 = vcombine.high %v4228_v8, %v4228_v8  ;;  %s6667_s19 = smov (!%p215_p3, %s4054_s19), 1  ;;  %vm281_vm1 = vsmask.f32 3328  ;;  %vm282_vm2 = vsmask.f32 7440 }
  0x10   : > { %6618 = vst [vmem:[#allocation2_spill] sm:$0xff] %v5069_v4  ;;  %4081 = vmatprep.subr.msk.bf16.mxu1 %vm772_vm0, %v4080_v3  ;;  %4210 = vmatprep.subr.msk.bf16.mxu0 %vm772_vm0, %v5069_v4  ;;  %v774_v11 = vsel %vm772_vm0, %v4079_v5, 0  ;;  %v5083_v12 = vsel %vm772_vm0, %v4208_v6, 0  ;;  %s4832_s28 = smul.u32 216, %s6667_s19  ;;  %v4114_v17 = vcombine.low %v280_v2, %v280_v2  ;;  %vm723_vm3 = vcmask 64512   ;;  %vm5126_vm4 = vmor %vm281_vm1, %vm282_vm2  ;;  %s4317_s23 = sshll.u32 %s6667_s19, 8 }
  0x11   : > { %6619 = vst [vmem:[#allocation3_spill] sm:$0xff] %v5083_v12  ;;  %780 = vmatpush1.bf16.msra.mxu1 %v774_v11  ;;  %2123 = vmatpush1.bf16.msra.mxu0 %v5083_v12  ;;  %v4230_v26 = vcombine.low %v4228_v8, %v4228_v8  ;;  %v4252_v27 = vcombine.high %v5097_v13, %v5097_v13  ;;  %vm1320_vm5 = vcmask 1042432   ;;  %vm1321_vm6 = vcmask 1046532   ;;  %s6316_s27 = scalar_lea.vmem %s6590_s5, %s4317_s23 }
  0x12   : > { %4116 = vmatprep.subr.msk.bf16.mxu1 %vm772_vm0, %v4115_v9  ;;  %4232 = vmatprep.subr.msk.bf16.mxu0 %vm772_vm0, %v4231_v10  ;;  %s5092_s6 = scalar_lea.vmem %s6585_s0, %s4832_s28  ;;  %v1106_v44 = vsel %vm772_vm0, %v4114_v17, 0  ;;  %vm5316_vm7 = vmor %vm1320_vm5, %vm1321_vm6 }
  0x13   : > { %v226_v14 = vld [vmem:[%s5092_s6] sm:$0xf]  ;;  %v227_v15 = vld [vmem:[%s5092_s6 + $0x4] sm:$0xf]  ;;  %v228_v16 = vld [vmem:[%s5092_s6 + $0x8] sm:$0x1] }
  0x14   : > { %v285_v18 = vshrl.u32 %v226_v14, 16  ;;  %v288_v19 = vshll.u32 %v226_v14, 16  ;;  %v294_v20 = vshll.u32 %v227_v15, 16  ;;  %v298_v21 = vshrl.u32 %v227_v15, 16  ;;  %v5103_v22 = vld [vmem:[%s5092_s6 + $0xc] sm:$0xf] }
  0x15   : > { %v304_v23 = vshll.u32 %v228_v16, 16  ;;  %v5106_v24 = vld [vmem:[%s5092_s6 + $0x10] sm:$0xf]  ;;  %v309_v25 = vshrl.u32 %v5103_v22, 16  ;;  %v5112_v32 = vld [vmem:[%s5092_s6 + $0x14] sm:$0x1] }
  0x16   : > { %v287_v28 = vrot.slane %v285_v18, 4  ;;  %v290_v29 = vrot.slane %v288_v19, 5  ;;  %v296_v30 = vrot.slane %v294_v20, 5  ;;  %v300_v31 = vrot.slane %v298_v21, 4  ;;  %v5119_v41 = vld [vmem:[%s5092_s6 + $0x18] sm:$0xf] }
  0x17   : > { %v306_v33 = vrot.slane %v304_v23, 5  ;;  %v311_v34 = vrot.slane %v309_v25, 4  ;;  %v312_v35 = vshll.u32 %v5103_v22, 16  ;;  %v318_v36 = vshll.u32 %v5106_v24, 16  ;;  %6620 = vst [vmem:[#allocation4_spill] sm:$0xff] %v5119_v41 }
  0x18   : > { %v291_v37 = vor.u32 %v290_v29, %v287_v28  ;;  %v301_v38 = vor.u32 %v300_v31, %v296_v30  ;;  %v322_v39 = vshrl.u32 %v5106_v24, 16  ;;  %v328_v40 = vshll.u32 %v5112_v32, 16  ;;  %v5122_v42 = vld [vmem:[%s5092_s6 + $0x1c] sm:$0xf]  ;;  %v5133_v53 = vld [vmem:[%s5092_s6 + $0x20] sm:$0x1] }
  0x19   : > { %v314_v45 = vrot.slane %v312_v35, 5  ;;  %v320_v46 = vrot.slane %v318_v36, 5  ;;  %v2401_v47 = vsel %vm772_vm0, %v4230_v26, 0  ;;  %v333_v54 = vshrl.u32 %v5119_v41, 16  ;;  %v5144_v61 = vld [vmem:[%s5092_s6 + $0x24] sm:$0xf] }
  0x1a   : > { %v292_v48 = vrot.slane %v291_v37, 4  ;;  %v302_v49 = vrot.slane %v301_v38, 4  ;;  %v324_v50 = vrot.slane %v322_v39, 4  ;;  %v330_v51 = vrot.slane %v328_v40, 5  ;;  %6623 = vst [vmem:[#allocation5_spill] sm:$0xff] %v5144_v61 }
  0x1b   : > { %v315_v52 = vor.u32 %v314_v45, %v311_v34  ;;  %v336_v55 = vshll.u32 %v5119_v41, 16  ;;  %v342_v56 = vshll.u32 %v5122_v42, 16  ;;  %v346_v60 = vshrl.u32 %v5122_v42, 16  ;;  %v5147_v2 = vld [vmem:[%s5092_s6 + $0x28] sm:$0xf] }
  0x1c   : > { %v297_v57 = vsel %vm5126_vm4, %v292_v48, %v296_v30  ;;  %v307_v58 = vsel %vm5126_vm4, %v302_v49, %v306_v33  ;;  %v325_v59 = vor.u32 %v324_v50, %v320_v46  ;;  %v335_v0 = vrot.slane %v333_v54, 4  ;;  %6624 = vst [vmem:[#allocation6_spill] sm:$0xff] %v5147_v2  ;;  %v5159_v18 = vld [vmem:[%s5092_s6 + $0x2c] sm:$0x1]  ;;  %v5163_v20 = vld [vmem:[%s5092_s6 + $0x30] sm:$0xf] }
  0x1d   : > { %v4063_v62 = vcombine.low %v297_v57, %v307_v58  ;;  %v316_v63 = vrot.slane %v315_v52, 4  ;;  %v338_v1 = vrot.slane %v336_v55, 5  ;;  %v344_v5 = vrot.slane %v342_v56, 5  ;;  %6625 = vst [vmem:[#allocation7_spill] sm:$0xff] %v5163_v20  ;;  %v5166_v28 = vld [vmem:[%s5092_s6 + $0x34] sm:$0xf] }
  0x1e   : > { %v326_v3 = vrot.slane %v325_v59, 4  ;;  %v348_v6 = vrot.slane %v346_v60, 4  ;;  %v352_v8 = vshll.u32 %v5133_v53, 16  ;;  %v357_v11 = vshrl.u32 %v5144_v61, 16  ;;  %6626 = vst [vmem:[#allocation8_spill] sm:$0xff] %v5166_v28 }
  0x1f   : > { %4082 = vmatmul.mubr.msk.bf16.vlgmr.msra.gmra.mrb[0].mxu1 %vm723_vm3, %v4063_v62  ;;  %v321_v9 = vsel %vm5126_vm4, %v316_v63, %v320_v46  ;;  %v339_v10 = vor.u32 %v338_v1, %v335_v0  ;;  %v360_v14 = vshll.u32 %v5144_v61, 16  ;;  %v366_v19 = vshll.u32 %v5147_v2, 16  ;;  %v5188_v48 = vld [vmem:[%s5092_s6 + $0x38] sm:$0x1]  ;;  %v5192_v56 = vld [vmem:[%s5092_s6 + $0x3c] sm:$0xf] }
  0x20   : > { %1112 = vmatpush1.bf16.msra.mxu1 %v1106_v44  ;;  %v331_v15 = vsel %vm5126_vm4, %v326_v3, %v330_v51  ;;  %821 = vmatprep.mubr.bf16.mxu1 %v6603_v7  ;;  %v349_v16 = vor.u32 %v348_v6, %v344_v5  ;;  %v354_v17 = vrot.slane %v352_v8, 5  ;;  %v359_v25 = vrot.slane %v357_v11, 4  ;;  %v5214_v8 = vld [vmem:[%s5092_s6 + $0x44] sm:$0x1] }
  0x21   : > { %v4064_v21 = vcombine.low %v321_v9, %v331_v15  ;;  %v340_v23 = vrot.slane %v339_v10, 4  ;;  %v362_v26 = vrot.slane %v360_v14, 5  ;;  %v368_v30 = vrot.slane %v366_v19, 5  ;;  %v5221_v19 = vld [vmem:[%s5092_s6 + $0x4c] sm:$0xf] }
  0x22   : > { %v350_v29 = vrot.slane %v349_v16, 4  ;;  %v370_v31 = vshrl.u32 %v5147_v2, 16  ;;  %v376_v34 = vshll.u32 %v5159_v18, 16  ;;  %v381_v35 = vshrl.u32 %v5163_v20, 16 }
  0x23   : > { %4211 = vmatmul.mubr.msk.bf16.vlgmr.msra.gmra.mrb[0].mxu0 %vm723_vm3, %v4064_v21  ;;  %v363_v33 = vor.u32 %v362_v26, %v359_v25  ;;  %v384_v36 = vshll.u32 %v5163_v20, 16  ;;  %v345_v37 = vsel %vm5126_vm4, %v340_v23, %v344_v5  ;;  %v390_v40 = vshll.u32 %v5166_v28, 16 }
  0x24   : > { %2407 = vmatpush1.bf16.msra.mxu0 %v2401_v47  ;;  %2164 = vmatprep.mubr.bf16.mxu0 %v6603_v7  ;;  %v355_v38 = vsel %vm5126_vm4, %v350_v29, %v354_v17  ;;  %v372_v39 = vrot.slane %v370_v31, 4  ;;  %v394_v45 = vshrl.u32 %v5166_v28, 16  ;;  %v383_v49 = vrot.slane %v381_v35, 4  ;;  %v5218_v17 = vld [vmem:[%s5092_s6 + $0x48] sm:$0xf] }
  0x25   : > { %4253 = vmatprep.subr.msk.bf16.mxu0 %vm772_vm0, %v4252_v27  ;;  %v5185_v46 = vcombine.low %v345_v37, %v355_v38  ;;  %v364_v47 = vrot.slane %v363_v33, 4  ;;  %v386_v50 = vrot.slane %v384_v36, 5  ;;  %v378_v52 = vrot.slane %v376_v34, 5  ;;  %v5195_v27 = vld [vmem:[%s5092_s6 + $0x40] sm:$0xf] }
  0x26   : > { %v373_v44 = vor.u32 %v372_v39, %v368_v30  ;;  %v392_v54 = vrot.slane %v390_v40, 5  ;;  %v396_v55 = vrot.slane %v394_v45, 4  ;;  %v400_v57 = vshll.u32 %v5188_v48, 16  ;;  %v5236_v35 = vld [vmem:[%s5092_s6 + $0x50] sm:$0x1] }
  0x27   : > { %4083 = vmatmul.mubr.msk.bf16.gmra.mrb[4].mxu1 %vm723_vm3, %v4064_v21  ;;  %6627 = vst [vmem:[#allocation9_spill] sm:$0xff] %v5185_v46  ;;  %v369_v58 = vsel %vm5126_vm4, %v364_v47, %v368_v30  ;;  %v387_v59 = vor.u32 %v386_v50, %v383_v49  ;;  %v405_v60 = vshrl.u32 %v5192_v56, 16  ;;  %v408_v62 = vshll.u32 %v5192_v56, 16  ;;  %v5243_v40 = vld [vmem:[%s5092_s6 + $0x54] sm:$0xf] }
  0x28   : > { %831 = vmatprep.mubr.bf16.mxu1 %v6603_v7  ;;  %v374_v51 = vrot.slane %v373_v44, 4  ;;  %v397_v0 = vor.u32 %v396_v55, %v392_v54  ;;  %v414_v1 = vshll.u32 %v5195_v27, 16  ;;  %v418_v3 = vshrl.u32 %v5195_v27, 16  ;;  %v5247_v50 = vld [vmem:[%s5092_s6 + $0x58] sm:$0xf] }
  0x29   : > { %v388_v6 = vrot.slane %v387_v59, 4  ;;  %v407_v9 = vrot.slane %v405_v60, 4  ;;  %v410_v10 = vrot.slane %v408_v62, 5  ;;  %v402_v14 = vrot.slane %v400_v57, 5 }
  0x2a   : > { %v379_v63 = vsel %vm5126_vm4, %v374_v51, %v378_v52  ;;  %v398_v11 = vrot.slane %v397_v0, 4  ;;  %v416_v15 = vrot.slane %v414_v1, 5  ;;  %v420_v16 = vrot.slane %v418_v3, 4  ;;  %v5266_v3 = vld [vmem:[%s5092_s6 + $0x5c] sm:$0x1] }
  0x2b   : > { %4212 = vmatmul.mubr.msk.bf16.gmra.mrb[4].mxu0 %vm723_vm3, %v5185_v46  ;;  %v5211_v5 = vcombine.low %v369_v58, %v379_v63  ;;  %v424_v21 = vshll.u32 %v5214_v8, 16  ;;  %v393_v23 = vsel %vm5126_vm4, %v388_v6, %v392_v54  ;;  %v411_v25 = vor.u32 %v410_v10, %v407_v9  ;;  %v5269_v10 = vld [vmem:[%s5092_s6 + $0x60] sm:$0xf] }
  0x2c   : > { %2174 = vmatprep.mubr.bf16.mxu0 %v6603_v7  ;;  %v429_v26 = vshrl.u32 %v5218_v17, 16  ;;  %v432_v29 = vshll.u32 %v5218_v17, 16  ;;  %v403_v30 = vsel %vm5126_vm4, %v398_v11, %v402_v14  ;;  %v421_v31 = vor.u32 %v420_v16, %v416_v15  ;;  %v5273_v16 = vld [vmem:[%s5092_s6 + $0x64] sm:$0xf] }
  0x2d   : > { %6628 = vst [vmem:[#allocation10_spill] sm:$0xff] %v5211_v5  ;;  %v438_v33 = vshll.u32 %v5221_v19, 16  ;;  %v442_v34 = vshrl.u32 %v5221_v19, 16  ;;  %v5240_v36 = vcombine.low %v393_v23, %v403_v30  ;;  %v412_v37 = vrot.slane %v411_v25, 4 }
  0x2e   : > { %v426_v38 = vrot.slane %v424_v21, 5  ;;  %v431_v39 = vrot.slane %v429_v26, 4  ;;  %v422_v44 = vrot.slane %v421_v31, 4  ;;  %v434_v45 = vrot.slane %v432_v29, 5 }
  0x2f   : > { %4084 = vmatmul.mubr.msk.bf16.gmra.mrb[8].mxu1 %vm723_vm3, %v5185_v46  ;;  %6629 = vst [vmem:[#allocation11_spill] sm:$0xff] %v5240_v36  ;;  %v440_v47 = vrot.slane %v438_v33, 5  ;;  %v444_v49 = vrot.slane %v442_v34, 4  ;;  %v453_v51 = vshrl.u32 %v5243_v40, 16  ;;  %v456_v52 = vshll.u32 %v5243_v40, 16 }
  0x30   : > { %841 = vmatprep.mubr.bf16.mxu1 %v6603_v7  ;;  %v448_v54 = vshll.u32 %v5236_v35, 16  ;;  %v462_v55 = vshll.u32 %v5247_v50, 16  ;;  %v466_v57 = vshrl.u32 %v5247_v50, 16  ;;  %v417_v58 = vsel %vm5126_vm4, %v412_v37, %v416_v15 }
  0x31   : > { %v427_v59 = vsel %vm5126_vm4, %v422_v44, %v426_v38  ;;  %v435_v60 = vor.u32 %v434_v45, %v431_v39  ;;  %v445_v62 = vor.u32 %v444_v49, %v440_v47  ;;  %v455_v63 = vrot.slane %v453_v51, 4 }
  0x32   : > { %v458_v0 = vrot.slane %v456_v52, 5  ;;  %v5263_v1 = vcombine.low %v417_v58, %v427_v59  ;;  %v464_v6 = vrot.slane %v462_v55, 5  ;;  %v468_v9 = vrot.slane %v466_v57, 4  ;;  %v5293_v52 = vld [vmem:[%s5092_s6 + $0x68] sm:$0x1] }
  0x33   : > { %4213 = vmatmul.mubr.msk.bf16.gmra.mrb[8].mxu0 %vm723_vm3, %v5211_v5  ;;  %v436_v11 = vrot.slane %v435_v60, 4  ;;  %v446_v14 = vrot.slane %v445_v62, 4  ;;  %v450_v15 = vrot.slane %v448_v54, 5  ;;  %v472_v23 = vshll.u32 %v5266_v3, 16  ;;  %v5299_v55 = vld [vmem:[%s5092_s6 + $0x6c] sm:$0xf] }
  0x34   : > { %2184 = vmatprep.mubr.bf16.mxu0 %v6603_v7  ;;  %6630 = vst [vmem:[#allocation12_spill] sm:$0xff] %v5263_v1  ;;  %v459_v21 = vor.u32 %v458_v0, %v455_v63  ;;  %v477_v25 = vshrl.u32 %v5269_v10, 16  ;;  %v480_v26 = vshll.u32 %v5269_v10, 16  ;;  %v469_v29 = vor.u32 %v468_v9, %v464_v6  ;;  %v5303_v57 = vld [vmem:[%s5092_s6 + $0x70] sm:$0xf] }
  0x35   : > { %v486_v30 = vshll.u32 %v5273_v16, 16  ;;  %v490_v31 = vshrl.u32 %v5273_v16, 16  ;;  %v441_v33 = vsel %vm5126_vm4, %v436_v11, %v440_v47  ;;  %v451_v34 = vsel %vm5126_vm4, %v446_v14, %v450_v15 }
  0x36   : > { %v1332_v37 = vrot.slane %v5106_v24, 5  ;;  %v460_v38 = vrot.slane %v459_v21, 4  ;;  %v474_v39 = vrot.slane %v472_v23, 5  ;;  %v479_v44 = vrot.slane %v477_v25, 4 }
  0x37   : > { %4085 = vmatmul.mubr.msk.bf16.gmra.mrb[12].mxu1 %vm723_vm3, %v5211_v5  ;;  %v482_v45 = vrot.slane %v480_v26, 5  ;;  %v5290_v49 = vcombine.low %v441_v33, %v451_v34  ;;  %v470_v51 = vrot.slane %v469_v29, 4  ;;  %v5295_v54 = vrot.slane %v486_v30, 5  ;;  %v5328_v26 = vld [vmem:[%s5092_s6 + $0x78] sm:$0xf] }
  0x38   : > { %851 = vmatprep.mubr.bf16.mxu1 %v6603_v7  ;;  %v492_v47 = vrot.slane %v490_v31, 4  ;;  %v1335_v24 = vrot.slane %v5112_v32, 5  ;;  %v465_v58 = vsel %vm5126_vm4, %v460_v38, %v464_v6  ;;  %v496_v60 = vshll.u32 %v5293_v52, 16  ;;  %v5331_v29 = vld [vmem:[%s5092_s6 + $0x7c] sm:$0xf] }
  0x39   : > { %6631 = vst [vmem:[#allocation13_spill] sm:$0xff] %v5290_v49  ;;  %v483_v59 = vor.u32 %v482_v45, %v479_v44  ;;  %v4134_v62 = vrot.slane %v5103_v22, 9  ;;  %v475_v32 = vsel %vm5126_vm4, %v470_v51, %v474_v39  ;;  %v1334_v0 = vrot.slane %v1332_v37, 4  ;;  %v5340_v38 = vld [vmem:[%s5092_s6 + $0x84] sm:$0xf] }
  0x3a   : > { %v493_v63 = vor.u32 %v492_v47, %v5295_v54  ;;  %v501_v9 = vshrl.u32 %v5299_v55, 16  ;;  %v504_v22 = vshll.u32 %v5299_v55, 16  ;;  %v510_v11 = vshll.u32 %v5303_v57, 16  ;;  %v5343_v39 = vld [vmem:[%s5092_s6 + $0x88] sm:$0xf] }
  0x3b   : > { %4214 = vmatmul.mubr.msk.bf16.gmra.mrb[12].mxu0 %vm723_vm3, %v5240_v36  ;;  %v514_v14 = vshrl.u32 %v5303_v57, 16  ;;  %v5323_v15 = vcombine.low %v465_v58, %v475_v32  ;;  %v484_v21 = vrot.slane %v483_v59, 4  ;;  %v498_v23 = vrot.slane %v496_v60, 5 }
  0x3c   : > { %2194 = vmatprep.mubr.bf16.mxu0 %v6603_v7  ;;  %v4251_v25 = vcombine.low %v5097_v13, %v5097_v13  ;;  %v494_v30 = vrot.slane %v493_v63, 4  ;;  %v1333_v31 = vsel %vm5316_vm7, %v4134_v62, %v1332_v37  ;;  %v1336_v33 = vsel %vm5316_vm7, %v1334_v0, %v1335_v24  ;;  %v5347_v13 = vld [vmem:[%s5092_s6 + $0x74] sm:$0x1] }
  0x3d   : > { %6634 = vst [vmem:[#allocation14_spill] sm:$0xff] %v5323_v15  ;;  %v503_v34 = vrot.slane %v501_v9, 4  ;;  %v506_v44 = vrot.slane %v504_v22, 5  ;;  %v5349_v45 = vrot.slane %v510_v11, 5  ;;  %v516_v51 = vrot.slane %v514_v14, 4 }
  0x3e   : > { %v1339_v47 = vrot.slane %v5122_v42, 5  ;;  %v525_v37 = vshrl.u32 %v5328_v26, 16  ;;  %v528_v58 = vshll.u32 %v5328_v26, 16  ;;  %v534_v24 = vshll.u32 %v5331_v29, 16 }
  0x3f   : > { %4086 = vmatmul.mubr.msk.bf16.gmra.mrb[16].mxu1 %vm723_vm3, %v5240_v36  ;;  %v538_v59 = vshrl.u32 %v5331_v29, 16  ;;  %v549_v60 = vshrl.u32 %v5340_v38, 16  ;;  %v552_v62 = vshll.u32 %v5340_v38, 16  ;;  %v558_v32 = vshll.u32 %v5343_v39, 16  ;;  %v5373_v36 = vld [vmem:[%s5092_s6 + $0x80] sm:$0x1] }
  0x40   : > { %861 = vmatprep.mubr.bf16.mxu1 %v6603_v7  ;;  %v562_v63 = vshrl.u32 %v5343_v39, 16  ;;  %v489_v0 = vsel %vm5126_vm4, %v484_v21, %v5295_v54  ;;  %v499_v9 = vsel %vm5126_vm4, %v494_v30, %v498_v23  ;;  %v520_v22 = vshll.u32 %v5347_v13, 16  ;;  %v5378_v23 = vld [vmem:[%s5092_s6 + $0x8c] sm:$0x1] }
  0x41   : > { %v4135_v11 = vrot.slane %v5119_v41, 9  ;;  %v507_v14 = vor.u32 %v506_v44, %v503_v34  ;;  %v517_v12 = vor.u32 %v516_v51, %v5349_v45  ;;  %v527_v5 = vrot.slane %v525_v37, 4 }
  0x42   : > { %v530_v46 = vrot.slane %v528_v58, 5  ;;  %v5375_v54 = vrot.slane %v534_v24, 5  ;;  %v540_v21 = vrot.slane %v538_v59, 4  ;;  %v551_v30 = vrot.slane %v549_v60, 4 }
  0x43   : > { %4215 = vmatmul.mubr.msk.bf16.gmra.mrb[16].mxu0 %vm723_vm3, %v5263_v1  ;;  %v554_v4 = vrot.slane %v552_v62, 5  ;;  %v5380_v41 = vrot.slane %v558_v32, 5  ;;  %v564_v34 = vrot.slane %v562_v63, 4  ;;  %v5386_v44 = vcombine.low %v1333_v31, %v1336_v33  ;;  %v5395_v62 = vld [vmem:[%s5092_s6 + $0x90] sm:$0xf] }
  0x44   : > { %2204 = vmatprep.mubr.bf16.mxu0 %v6603_v7  ;;  %v2679_v51 = vsel %vm772_vm0, %v4251_v25, 0  ;;  %v544_v37 = vshll.u32 %v5373_v36, 16  ;;  %v508_v58 = vrot.slane %v507_v14, 4  ;;  %v522_v24 = vrot.slane %v520_v22, 5  ;;  %v5402_v63 = vld [vmem:[%s5092_s6 + $0x94] sm:$0xf] }
  0x45   : > { %6636 = vst [vmem:[#allocation16_spill] sm:$0xff] %v5386_v44  ;;  %v1340_v59 = vsel %vm5316_vm7, %v4135_v11, %v1339_v47  ;;  %v1346_v60 = vrot.slane %v5147_v2, 5  ;;  %v531_v31 = vor.u32 %v530_v46, %v527_v5  ;;  %v541_v33 = vor.u32 %v540_v21, %v5375_v54 }
  0x46   : > { %v568_v25 = vshll.u32 %v5378_v23, 16  ;;  %v565_v22 = vor.u32 %v564_v34, %v5380_v41  ;;  %v546_v11 = vrot.slane %v544_v37, 5  ;;  %v4136_v14 = vrot.slane %v5144_v61, 9 }
  0x47   : > { %4087 = vmatmul.mubr.msk.bf16.gmra.mrb[20].mxu1 %vm723_vm3, %v5263_v1  ;;  %v1342_v1 = vrot.slane %v5133_v53, 5  ;;  %v5384_v53 = vcombine.low %v489_v0, %v499_v9  ;;  %v518_v0 = vrot.slane %v517_v12, 4  ;;  %v555_v9 = vor.u32 %v554_v4, %v551_v30 }
  0x48   : > { %871 = vmatprep.mubr.bf16.mxu1 %v6603_v7  ;;  %v573_v46 = vshrl.u32 %v5395_v62, 16  ;;  %v576_v5 = vshll.u32 %v5395_v62, 16  ;;  %v1349_v4 = vrot.slane %v5159_v18, 5  ;;  %v582_v12 = vshll.u32 %v5402_v63, 16 }
  0x49   : > { %6635 = vst [vmem:[#allocation15_spill] sm:$0xff] %v5384_v53  ;;  %v532_v21 = vrot.slane %v531_v31, 4  ;;  %v542_v30 = vrot.slane %v541_v33, 4  ;;  %v570_v34 = vrot.slane %v568_v25, 5  ;;  %v4137_v37 = vrot.slane %v5163_v20, 9 }
  0x4a   : > { %v1356_v2 = vrot.slane %v5188_v48, 5  ;;  %v513_v18 = vsel %vm5126_vm4, %v508_v58, %v5349_v45  ;;  %v5425_v31 = vld [vmem:[%s5092_s6 + $0x98] sm:$0x1]  ;;  %v575_v33 = vrot.slane %v573_v46, 4  ;;  %v578_v25 = vrot.slane %v576_v5, 5 }
  0x4b   : > { %4216 = vmatmul.mubr.msk.bf16.gmra.mrb[20].mxu0 %vm723_vm3, %v5290_v49  ;;  %v1347_v48 = vsel %vm5316_vm7, %v4136_v14, %v1346_v60  ;;  %v537_v58 = vsel %vm5126_vm4, %v532_v21, %v5375_v54  ;;  %v5457_v14 = vld [vmem:[%s5092_s6 + $0x9c] sm:$0xf]  ;;  %v1388_v21 = vrot.slane %v5303_v57, 5 }
  0x4c   : > { %2214 = vmatprep.mubr.bf16.mxu0 %v6603_v7  ;;  %v579_v5 = vor.u32 %v578_v25, %v575_v33 }
  0x4f   : > { %4088 = vmatmul.mubr.msk.bf16.gmra.mrb[24].mxu1 %vm723_vm3, %v5290_v49  ;;  %v1341_v49 = vrot.slane %v1339_v47, 4  ;;  %v1353_v47 = vrot.slane %v5166_v28, 5  ;;  %v566_v28 = vrot.slane %v565_v22, 4 }
  0x50   : > { %881 = vmatprep.mubr.bf16.mxu1 %v6603_v7 }
  0x51   : > { %v1343_v32 = vsel %vm5316_vm7, %v1341_v49, %v1342_v1  ;;  %v1348_v1 = vrot.slane %v1346_v60, 4  ;;  %v586_v49 = vshrl.u32 %v5402_v63, 16  ;;  %v1355_v61 = vrot.slane %v1353_v47, 4  ;;  %v5446_v60 = vld [vmem:[%s6586_s1 + $0x10] sm:$0xff] }
  0x52   : > { %v5434_v45 = vcombine.low %v1340_v59, %v1343_v32  ;;  %v571_v32 = vsel %vm5126_vm4, %v566_v28, %v570_v34 }
  0x53   : > { %4217 = vmatmul.mubr.msk.bf16.gmra.mrb[24].mxu0 %vm723_vm3, %v5323_v15  ;;  %v1350_v22 = vsel %vm5316_vm7, %v1348_v1, %v1349_v4  ;;  %v588_v20 = vrot.slane %v586_v49, 4  ;;  %v1357_v54 = vsel %vm5316_vm7, %v1355_v61, %v1356_v2  ;;  %v4167_v2 = vcombine.high %v5446_v60, %v5446_v60  ;;  %v5478_v4 = vld [vmem:[%s5092_s6 + $0xa0] sm:$0xf] }
  0x54   : > { %2224 = vmatprep.mubr.bf16.mxu0 %v6603_v7  ;;  %6638 = vst [vmem:[#allocation17_spill] sm:$0xff] %v5434_v45  ;;  %v5463_v46 = vcombine.low %v1347_v48, %v1350_v22  ;;  %v600_v49 = vshll.u32 %v5457_v14, 16  ;;  %v606_v25 = vshll.u32 %v5478_v4, 16  ;;  %v1390_v22 = vrot.slane %v1388_v21, 4 }
  0x55   : > { %4168 = vmatprep.subr.msk.bf16.mxu1 %vm772_vm0, %v4167_v2  ;;  %v1405_v2 = vrot.slane %v5378_v23, 5 }
  0x56   : > { %6640 = vst [vmem:[#allocation19_spill] sm:$0xff] %v5463_v46 }
  0x57   : > { %4089 = vmatmul.mubr.msk.bf16.gmra.mrb[28].mxu1 %vm723_vm3, %v5323_v15  ;;  %v556_v15 = vrot.slane %v555_v9, 4  ;;  %v6637_v9 = vmov 0  }
  0x58   : > { %891 = vmatprep.mubr.bf16.mxu1 %v6603_v7 }
  0x59   : > { %v561_v59 = vsel %vm5126_vm4, %v556_v15, %v5380_v41  ;;  %v6607_v41 = vrot.slane %v5195_v27, 5 }
  0x5a   : > { %v5472_v15 = vcombine.low %v561_v59, %v571_v32  ;;  %v1398_v59 = vrot.slane %v5373_v36, 5  ;;  %v5508_v32 = vrot.slane %v600_v49, 5 }
  0x5b   : > { %4218 = vmatmul.mubr.msk.bf16.gmra.mrb[28].mxu0 %vm723_vm3, %v5384_v53  ;;  %v5493_v34 = vrot.slane %v6607_v41, 4 }
  0x5c   : > { %2438 = vmatprep.mubr.bf16.mxu0 %v6603_v7  ;;  %v523_v7 = vsel %vm5126_vm4, %v518_v0, %v522_v24  ;;  %v547_v24 = vsel %vm5126_vm4, %v542_v30, %v546_v11  ;;  %v1354_v0 = vsel %vm5316_vm7, %v4137_v37, %v1353_v47  ;;  %v592_v11 = vshll.u32 %v5425_v31, 16 }
  0x5d   : > { %v5461_v47 = vcombine.low %v513_v18, %v523_v7  ;;  %v5467_v28 = vcombine.low %v537_v58, %v547_v24  ;;  %v5474_v1 = vcombine.low %v1354_v0, %v1357_v54  ;;  %v5489_v30 = vrot.slane %v579_v5, 4 }
  0x5e   : > { %v1391_v18 = vrot.slane %v5347_v13, 5  ;;  %v4143_v24 = vrot.slane %v5328_v26, 9  ;;  %v1395_v0 = vrot.slane %v5331_v29, 5  ;;  %v4144_v54 = vrot.slane %v5340_v38, 9 }
  0x5f   : > { %4090 = vmatmul.mubr.msk.bf16.gmra.mrb[32].mxu1 %vm723_vm3, %v5384_v53  ;;  %v5432_v53 = vrot.slane %v582_v12, 5  ;;  %6639 = vst [vmem:[#allocation18_spill] sm:$0xff] %v5461_v47  ;;  %6641 = vst [vmem:[#allocation20_spill] sm:$0xff] %v5467_v28  ;;  %v597_v12 = vshrl.u32 %v5457_v14, 16 }
  0x60   : > { %901 = vmatprep.mubr.bf16.mxu1 %v6637_v9  ;;  %v1392_v13 = vsel %vm5316_vm7, %v1390_v22, %v1391_v18  ;;  %v1397_v36 = vrot.slane %v1395_v0, 4  ;;  %v1412_v22 = vrot.slane %v5425_v31, 5  ;;  %v5550_v31 = vld [vmem:[%s5092_s6 + $0xb0] sm:$0x1] }
  0x61   : > { %v589_v61 = vor.u32 %v588_v20, %v5432_v53  ;;  %v4142_v20 = vrot.slane %v5299_v55, 9  ;;  %v5503_v58 = vrot.slane %v597_v12, 4  ;;  %v610_v12 = vshrl.u32 %v5478_v4, 16 }
  0x62   : > { %v585_v18 = vsel %vm5126_vm4, %v5489_v30, %v5432_v53  ;;  %v1399_v23 = vsel %vm5316_vm7, %v1397_v36, %v1398_v59  ;;  %v1416_v53 = vrot.slane %v5478_v4, 5  ;;  %v5547_v30 = vld [vmem:[%s5092_s6 + $0xac] sm:$0xf] }
  0x63   : > { %4233 = vmatmul.mubr.msk.bf16.vlgmr.msra.gmra.mrb[0].mxu0 %vm723_vm3, %v5386_v44  ;;  %v5498_v33 = vrot.slane %v589_v61, 4  ;;  %v1389_v48 = vsel %vm5316_vm7, %v4142_v20, %v1388_v21  ;;  %v1396_v61 = vsel %vm5316_vm7, %v4143_v24, %v1395_v0  ;;  %v4145_v21 = vrot.slane %v5395_v62, 9  ;;  %v267_v24 = vld [vmem:[%s5092_s6 + $0xa4] sm:$0x1]  ;;  %v5536_v0 = vld [vmem:[%s5092_s6 + $0xa8] sm:$0xf] }
  0x64   : > { %2685 = vmatpush1.bf16.msra.mxu0 %v2679_v51  ;;  %2448 = vmatprep.mubr.bf16.mxu0 %v6637_v9  ;;  %v5481_v51 = vrot.slane %v592_v11, 5  ;;  %v1402_v11 = vrot.slane %v5343_v39, 5  ;;  %v5516_v5 = vcombine.low %v1389_v48, %v1392_v13  ;;  %v1409_v48 = vrot.slane %v5402_v63, 5 }
  0x65   : > { %v5538_v13 = vcombine.low %v1396_v61, %v1399_v23  ;;  %v5560_v23 = vld [vmem:[%s5092_s6 + $0xb4] sm:$0xf]  ;;  %v1418_v7 = vrot.slane %v1416_v53, 4  ;;  %v4147_v41 = vrot.slane %v5536_v0, 9 }
  0x66   : > { %v1403_v49 = vsel %vm5316_vm7, %v4144_v54, %v1402_v11  ;;  %v1404_v20 = vrot.slane %v1402_v11, 4  ;;  %v4146_v11 = vrot.slane %v5457_v14, 9  ;;  %v1410_v61 = vsel %vm5316_vm7, %v4145_v21, %v1409_v48 }
  0x67   : > { %4091 = vmatmul.mubr.msk.bf16.gmra.mrb[36].mxu1 %vm723_vm3, %v5461_v47  ;;  %v1411_v36 = vrot.slane %v1409_v48, 4  ;;  %v1423_v48 = vrot.slane %v5547_v30, 5 }
  0x68   : > { %911 = vmatprep.mubr.bf16.mxu1 %v6637_v9  ;;  %v1406_v54 = vsel %vm5316_vm7, %v1404_v20, %v1405_v2  ;;  %v1419_v2 = vrot.slane %v267_v24, 5  ;;  %v5557_v20 = vrot.slane %v606_v25, 5  ;;  %v1417_v37 = vsel %vm5316_vm7, %v4146_v11, %v1416_v53  ;;  %v5573_v25 = vld [vmem:[%s5092_s6 + $0xbc] sm:$0x1] }
  0x69   : > { %v5552_v59 = vcombine.low %v1403_v49, %v1406_v54  ;;  %v5566_v49 = vld [vmem:[%s5092_s6 + $0xb8] sm:$0xf]  ;;  %v1413_v21 = vsel %vm5316_vm7, %v1411_v36, %v1412_v22  ;;  %v1426_v54 = vrot.slane %v5550_v31, 5  ;;  %v4148_v53 = vrot.slane %v5560_v23, 9 }
  0x6a   : > { %v5575_v47 = vcombine.low %v1410_v61, %v1413_v21  ;;  %v1420_v11 = vsel %vm5316_vm7, %v1418_v7, %v1419_v2  ;;  %v1424_v61 = vsel %vm5316_vm7, %v4147_v41, %v1423_v48  ;;  %v1425_v36 = vrot.slane %v1423_v48, 4 }
  0x6b   : > { %4234 = vmatmul.mubr.msk.bf16.gmra.mrb[4].mxu0 %vm723_vm3, %v5434_v45  ;;  %v5584_v45 = vld [vmem:[%s6586_s1 + $0x38] sm:$0xff]  ;;  %v5588_v22 = vcombine.low %v1417_v37, %v1420_v11  ;;  %v1433_v7 = vrot.slane %v5573_v25, 5  ;;  %v595_v2 = vsel %vm5126_vm4, %v5498_v33, %v5481_v51  ;;  %v616_v21 = vshll.u32 %v267_v24, 16 }
  0x6c   : > { %2458 = vmatprep.mubr.bf16.mxu0 %v6637_v9  ;;  %v603_v37 = vor.u32 %v5508_v32, %v5503_v58  ;;  %v1427_v48 = vsel %vm5316_vm7, %v1425_v36, %v1426_v54  ;;  %v4273_v11 = vcombine.high %v5584_v45, %v5584_v45  ;;  %v624_v51 = vshll.u32 %v5536_v0, 16 }
  0x6d   : > { %6642 = vst [vmem:[#allocation21_spill] sm:$0xff] %v5588_v22  ;;  %v621_v22 = vshrl.u32 %v5536_v0, 16  ;;  %v5609_v33 = vcombine.low %v1424_v61, %v1427_v48  ;;  %v634_v58 = vshrl.u32 %v5547_v30, 16  ;;  %v5622_v54 = vcombine.low %v5299_v55, %v5303_v57 }
  0x6e   : > { %4274 = vmatprep.subr.msk.bf16.mxu0 %vm772_vm0, %v4273_v11  ;;  %v6644_v61 = vrot.slane %v5192_v56, 9  ;;  %v6645_v57 = vrot.slane %v5214_v8, 5  ;;  %v5652_v8 = vcombine.low %v5395_v62, %v5402_v63 }
  0x6f   : > { %4092 = vmatmul.mubr.msk.bf16.gmra.mrb[40].mxu1 %vm723_vm3, %v5467_v28  ;;  %v612_v28 = vrot.slane %v610_v12, 4  ;;  %v1430_v12 = vrot.slane %v5566_v49, 5  ;;  %v636_v48 = vrot.slane %v634_v58, 4 }
  0x70   : > { %921 = vmatprep.mubr.bf16.mxu1 %v6637_v9 }
  0x71   : > { %v1431_v44 = vsel %vm5316_vm7, %v4148_v53, %v1430_v12  ;;  %v613_v41 = vor.u32 %v612_v28, %v5557_v20  ;;  %v630_v28 = vshll.u32 %v5547_v30, 16  ;;  %v5631_v53 = vcombine.low %v5340_v38, %v5343_v39 }
  0x72   : > { %v1367_v38 = vrot.slane %v5221_v19, 5  ;;  %v623_v39 = vrot.slane %v621_v22, 4  ;;  %v1370_v22 = vrot.slane %v5236_v35, 5  ;;  %v658_v35 = vshrl.u32 %v5566_v49, 16 }
  0x73   : > { %4235 = vmatmul.mubr.msk.bf16.gmra.mrb[8].mxu0 %vm723_vm3, %v5463_v46  ;;  %v1432_v46 = vrot.slane %v1430_v12, 4  ;;  %v5633_v12 = vcombine.low %v585_v18, %v595_v2  ;;  %v614_v36 = vrot.slane %v613_v41, 4  ;;  %v626_v18 = vrot.slane %v624_v51, 5 }
  0x74   : > { %2468 = vmatprep.mubr.bf16.mxu0 %v6637_v9  ;;  %v632_v2 = vrot.slane %v630_v28, 5  ;;  %v640_v41 = vshll.u32 %v5550_v31, 16  ;;  %v648_v28 = vshll.u32 %v5560_v23, 16 }
  0x75   : > { %v1434_v24 = vsel %vm5316_vm7, %v1432_v46, %v1433_v7  ;;  %v5627_v46 = vcombine.low %v5328_v26, %v5331_v29  ;;  %v1364_v26 = vsel %vm5316_vm7, %v5493_v34, %v6645_v57  ;;  %v604_v29 = vrot.slane %v603_v37, 4 }
  0x76   : > { %v5617_v32 = vcombine.low %v1431_v44, %v1434_v24  ;;  %v6643_v44 = vrot.slane %v5195_v27, 5  ;;  %v618_v7 = vrot.slane %v616_v21, 5  ;;  %v4139_v34 = vrot.slane %v5218_v17, 9 }
  0x77   : > { %4093 = vmatmul.mubr.msk.bf16.gmra.mrb[44].mxu1 %vm723_vm3, %v5472_v15  ;;  %v609_v21 = vsel %vm5126_vm4, %v604_v29, %v5557_v20  ;;  %v1369_v37 = vrot.slane %v1367_v38, 4  ;;  %v627_v63 = vor.u32 %v626_v18, %v623_v39  ;;  %v637_v51 = vor.u32 %v636_v48, %v632_v2 }
  0x78   : > { %931 = vmatprep.mubr.bf16.mxu1 %v6637_v9  ;;  %v1361_v55 = vsel %vm5316_vm7, %v6644_v61, %v6643_v44  ;;  %v619_v62 = vsel %vm5126_vm4, %v614_v36, %v618_v7  ;;  %v645_v24 = vshrl.u32 %v5560_v23, 16  ;;  %v654_v20 = vshll.u32 %v5566_v49, 16 }
  0x79   : > { %v5654_v11 = vcombine.low %v1361_v55, %v1364_v26  ;;  %v5671_v58 = vcombine.low %v609_v21, %v619_v62  ;;  %v1368_v31 = vsel %vm5316_vm7, %v4139_v34, %v1367_v38  ;;  %v1371_v44 = vsel %vm5316_vm7, %v1369_v37, %v1370_v22 }
  0x7a   : > { %v642_v61 = vrot.slane %v640_v41, 5  ;;  %v628_v55 = vrot.slane %v627_v63, 4  ;;  %v638_v57 = vrot.slane %v637_v51, 4  ;;  %v1374_v26 = vrot.slane %v5247_v50, 5 }
  0x7b   : > { %4236 = vmatmul.mubr.msk.bf16.gmra.mrb[12].mxu0 %vm723_vm3, %v5474_v1  ;;  %v647_v29 = vrot.slane %v645_v24, 4  ;;  %v650_v36 = vrot.slane %v648_v28, 5  ;;  %v656_v7 = vrot.slane %v654_v20, 5  ;;  %v660_v39 = vrot.slane %v658_v35, 4 }
  0x7c   : > { %2478 = vmatprep.mubr.bf16.mxu0 %v6637_v9  ;;  %v5683_v38 = vcombine.low %v5457_v14, %v5478_v4  ;;  %v5685_v18 = vcombine.low %v1368_v31, %v1371_v44  ;;  %v4140_v48 = vrot.slane %v5243_v40, 9  ;;  %v1376_v34 = vrot.slane %v1374_v26, 4 }
  0x7d   : > { %v1377_v21 = vrot.slane %v5266_v3, 5  ;;  %v664_v37 = vshll.u32 %v5573_v25, 16  ;;  %v633_v22 = vsel %vm5126_vm4, %v628_v55, %v632_v2  ;;  %v643_v14 = vsel %vm5126_vm4, %v638_v57, %v642_v61 }
  0x7e   : > { %v651_v4 = vor.u32 %v650_v36, %v647_v29  ;;  %v661_v41 = vor.u32 %v660_v39, %v656_v7  ;;  %v5699_v62 = vcombine.low %v633_v22, %v643_v14  ;;  %v1375_v3 = vsel %vm5316_vm7, %v4140_v48, %v1374_v26  ;;  %v5745_v36 = vld [vmem:[%s5092_s6] sm:$0xf]  ;;  %v5008_v48 = vld [vmem:[%s5092_s6 + $0xc] sm:$0xf] }
  0x7f   : > { %4094 = vmatmul.mubr.msk.bf16.gmra.mrb[48].mxu1 %vm723_vm3, %v5633_v12  ;;  %v1378_v25 = vsel %vm5316_vm7, %v1376_v34, %v1377_v21  ;;  %v666_v63 = vrot.slane %v664_v37, 5  ;;  %v1381_v24 = vrot.slane %v5273_v16, 5  ;;  %v5709_v28 = vcombine.low %v5536_v0, %v5547_v30  ;;  %v5009_v34 = vld [vmem:[%s5092_s6 + $0x10] sm:$0xf]  ;;  %v6647_v14 = vld [vmem:[#allocation6_spill] sm:$0xff] }
  0x80   : > { %941 = vmatprep.mubr.bf16.mxu1 %v6637_v9  ;;  %v652_v2 = vrot.slane %v651_v4, 4  ;;  %v662_v51 = vrot.slane %v661_v41, 4  ;;  %v5713_v20 = vcombine.low %v1375_v3, %v1378_v25  ;;  %v4141_v35 = vrot.slane %v5269_v10, 9  ;;  %v6646_v37 = vld [vmem:[#allocation4_spill] sm:$0xff]  ;;  %v6648_v4 = vld [vmem:[#allocation5_spill] sm:$0xff]  ;;  %v6650_v3 = vld [vmem:[#allocation7_spill] sm:$0xff] }
  0x81   : > { %v1383_v61 = vrot.slane %v1381_v24, 4  ;;  %v1384_v0 = vrot.slane %v5293_v52, 5  ;;  %v5733_v26 = vcombine.low %v5560_v23, %v5566_v49  ;;  %v4166_v29 = vcombine.low %v5446_v60, %v5446_v60  ;;  %v5755_v49 = vld [vmem:[%s6586_s1 + $0x18] sm:$0xff] }
  0x82   : > { %v657_v31 = vsel %vm5126_vm4, %v652_v2, %v656_v7  ;;  %v667_v44 = vsel %vm5126_vm4, %v662_v51, %v666_v63  ;;  %v1382_v55 = vsel %vm5316_vm7, %v4141_v35, %v1381_v24  ;;  %v5748_v7 = vld [vmem:[%s5092_s6 + $0x4] sm:$0xf]  ;;  %v4188_v60 = vcombine.high %v5755_v49, %v5755_v49  ;;  %v6651_v63 = vld [vmem:[#allocation21_spill] sm:$0xff]  ;;  %v5829_v35 = vld [vmem:[%s5092_s6 + $0xc8] sm:$0x1] }
  0x83   : > { %4237 = vmatmul.mubr.msk.bf16.gmra.mrb[16].mxu0 %vm723_vm3, %v5654_v11  ;;  %v5724_v30 = vcombine.low %v657_v31, %v667_v44  ;;  %v1385_v57 = vsel %vm5316_vm7, %v1383_v61, %v1384_v0  ;;  %v4098_v23 = vcombine.low %v5745_v36, %v5748_v7  ;;  %v1539_v39 = vsel %vm772_vm0, %v4166_v29, 0  ;;  %v5815_v51 = vld [vmem:[%s5092_s6 + $0xc4] sm:$0xf] }
  0x84   : > { %2488 = vmatprep.mubr.bf16.mxu0 %v6637_v9  ;;  %v5737_v52 = vcombine.low %v1382_v55, %v1385_v57  ;;  %v5768_v21 = vcombine.low %v5008_v48, %v5009_v34  ;;  %v5778_v22 = vcombine.low %v6646_v37, %v5122_v42  ;;  %v5788_v41 = vcombine.low %v6648_v4, %v6647_v14  ;;  %v6649_v42 = vld [vmem:[#allocation8_spill] sm:$0xff]  ;;  %v5864_v57 = vld [vmem:[%s6586_s1 + $0x40] sm:$0xff]  ;;  %v6654_v4 = vld [vmem:[#allocation17_spill] sm:$0xff] }
  0x85   : > { %v5798_v25 = vcombine.low %v6650_v3, %v6649_v42  ;;  %v5808_v2 = vcombine.low %v5192_v56, %v5195_v27  ;;  %v5821_v24 = vcombine.low %v5218_v17, %v5221_v19  ;;  %v2382_v56 = vrot.slane %v5815_v51, 5  ;;  %v5826_v27 = vld [vmem:[%s5092_s6 + $0xc0] sm:$0xf]  ;;  %v6655_v42 = vld [vmem:[#allocation19_spill] sm:$0xff] }
  0x86   : > { %v4227_v31 = vrot.slane %v5826_v27, 9  ;;  %v2385_v61 = vrot.slane %v5829_v35, 5  ;;  %v5840_v17 = vcombine.low %v5243_v40, %v5247_v50  ;;  %v5856_v40 = vcombine.low %v5269_v10, %v5273_v16  ;;  %v6652_v14 = vld [vmem:[#allocation2_spill] sm:$0xff] }
  0x87   : > { %4095 = vmatmul.mubr.msk.bf16.gmra.mrb[52].mxu1 %vm723_vm3, %v5671_v58  ;;  %v2384_v44 = vrot.slane %v2382_v56, 4  ;;  %v4272_v50 = vcombine.low %v5584_v45, %v5584_v45  ;;  %v4295_v10 = vcombine.high %v5864_v57, %v5864_v57  ;;  %v1325_v16 = vrot.slane %v5748_v7, 5  ;;  %v5010_v45 = vld [vmem:[%s5092_s6 + $0x8] sm:$0x1] }
  0x88   : > { %951 = vmatprep.mubr.bf16.mxu1 %v6637_v9  ;;  %v2383_v19 = vsel %vm5316_vm7, %v4227_v31, %v2382_v56  ;;  %v4187_v34 = vcombine.low %v5755_v49, %v5755_v49  ;;  %v6653_v49 = vld [vmem:[#allocation16_spill] sm:$0xff]  ;;  %v5969_v3 = vcombine.low %v5826_v27, %v5815_v51  ;;  %v5976_v56 = vld [vmem:[%s5092_s6 + $0xcc] sm:$0xf] }
  0x89   : > { %v2386_v0 = vsel %vm5316_vm7, %v2384_v44, %v2385_v61  ;;  %v2979_v29 = vsel %vm772_vm0, %v4272_v50, 0  ;;  %v5979_v31 = vld [vmem:[%s5092_s6 + $0xd0] sm:$0xf]  ;;  %v4294_v61 = vcombine.low %v5864_v57, %v5864_v57  ;;  %v6657_v50 = vld [vmem:[#allocation10_spill] sm:$0xff]  ;;  %v6658_v57 = vld [vmem:[#allocation11_spill] sm:$0xff] }
  0x8a   : > { %v5849_v55 = vcombine.low %v2383_v19, %v2386_v0  ;;  %v4250_v44 = vcombine.low %v5976_v56, %v5979_v31  ;;  %v6656_v0 = vld [vmem:[#allocation9_spill] sm:$0xff]  ;;  %v3244_v43 = vrot.slane %v5979_v31, 5 }
  0x8b   : > { %4238 = vmatmul.mubr.msk.bf16.gmra.mrb[20].mxu0 %vm723_vm3, %v5685_v18  ;;  %v3263_v19 = vsel %vm772_vm0, %v4294_v61, 0 }
  0x8c   : > { %2498 = vmatprep.mubr.bf16.mxu0 %v6637_v9 }
  0x8f   : > { %4096 = vmatmul.mubr.msk.bf16.gmra.mrb[56].mxu1 %vm723_vm3, %v5699_v62 }
  0x90   : > { %961 = vmatprep.mubr.bf16.mxu1 %v6637_v9 }
  0x93   : > { %4239 = vmatmul.mubr.msk.bf16.gmra.mrb[24].mxu0 %vm723_vm3, %v5713_v20 }
  0x94   : > { %2508 = vmatprep.mubr.bf16.mxu0 %v6637_v9 }
  0x97   : > { %4097 = vmatmul.mubr.msk.bf16.gmra.mrb[60].mxu1 %vm723_vm3, %v5724_v30 }
  0x98   : > { %1143 = vmatprep.mubr.bf16.mxu1 %v6637_v9 }
  0x9b   : > { %4240 = vmatmul.mubr.msk.bf16.gmra.mrb[28].mxu0 %vm723_vm3, %v5737_v52 }
  0x9c   : > { %2518 = vmatprep.mubr.bf16.mxu0 %v6637_v9 }
  0x9f   : > { %4117 = vmatmul.mubr.msk.bf16.vlgmr.msra.gmra.mrb[0].mxu1 %vm723_vm3, %v4098_v23  ;;  %v1328_v23 = vrot.slane %v5010_v45, 5  ;;  %v6662_v45 = vld [vmem:[#allocation15_spill] sm:$0xff] }
  0xa0   : > { %1545 = vmatpush1.bf16.msra.mxu1 %v1539_v39  ;;  %1153 = vmatprep.mubr.bf16.mxu1 %v6637_v9  ;;  %v4133_v39 = vrot.slane %v5745_v36, 9  ;;  %v1817_v36 = vsel %vm772_vm0, %v4187_v34, 0 }
  0xa1   : > { %4189 = vmatprep.subr.msk.bf16.mxu1 %vm772_vm0, %v4188_v60  ;;  %v1327_v60 = vrot.slane %v1325_v16, 4 }
  0xa2   : > { %v1326_v7 = vsel %vm5316_vm7, %v4133_v39, %v1325_v16  ;;  %v6661_v16 = vld [vmem:[#allocation14_spill] sm:$0xff]  ;;  %v6664_v39 = vld [vmem:[#allocation3_spill] sm:$0xff] }
  0xa3   : > { %4241 = vmatmul.mubr.msk.bf16.gmra.mrb[32].mxu0 %vm723_vm3, %v5516_v5  ;;  %v1329_v48 = vsel %vm5316_vm7, %v1327_v60, %v1328_v23  ;;  %v6663_v23 = vld [vmem:[#allocation18_spill] sm:$0xff]  ;;  %v6665_v60 = vld [vmem:[#allocation20_spill] sm:$0xff] }
  0xa4   : > { %2528 = vmatprep.mubr.bf16.mxu0 %v6637_v9  ;;  %v4150_v37 = vcombine.low %v1326_v7, %v1329_v48  ;;  %v2093_v7 = vshrl.u32 %v5815_v51, 16 }
  0xa7   : > { %4118 = vmatmul.mubr.msk.bf16.gmra.mrb[4].mxu1 %vm723_vm3, %v5768_v21 }
  0xa8   : > { %1163 = vmatprep.mubr.bf16.mxu1 %v6637_v9 }
  0xab   : > { %4242 = vmatmul.mubr.msk.bf16.gmra.mrb[36].mxu0 %vm723_vm3, %v5538_v13 }
  0xac   : > { %2538 = vmatprep.mubr.bf16.mxu0 %v6637_v9 }
  0xaf   : > { %4119 = vmatmul.mubr.msk.bf16.gmra.mrb[8].mxu1 %vm723_vm3, %v5778_v22 }
  0xb0   : > { %1173 = vmatprep.mubr.bf16.mxu1 %v6637_v9 }
  0xb3   : > { %4243 = vmatmul.mubr.msk.bf16.gmra.mrb[40].mxu0 %vm723_vm3, %v5552_v59 }
  0xb4   : > { %2548 = vmatprep.mubr.bf16.mxu0 %v6637_v9 }
  0xb7   : > { %4120 = vmatmul.mubr.msk.bf16.gmra.mrb[12].mxu1 %vm723_vm3, %v5788_v41 }
  0xb8   : > { %1183 = vmatprep.mubr.bf16.mxu1 %v6637_v9 }
  0xbb   : > { %4244 = vmatmul.mubr.msk.bf16.gmra.mrb[44].mxu0 %vm723_vm3, %v5575_v47 }
  0xbc   : > { %2558 = vmatprep.mubr.bf16.mxu0 %v6637_v9 }
  0xbf   : > { %4121 = vmatmul.mubr.msk.bf16.gmra.mrb[16].mxu1 %vm723_vm3, %v5798_v25 }
  0xc0   : > { %1193 = vmatprep.mubr.bf16.mxu1 %v6637_v9 }
  0xc3   : > { %4245 = vmatmul.mubr.msk.bf16.gmra.mrb[48].mxu0 %vm723_vm3, %v6651_v63 }
  0xc4   : > { %2568 = vmatprep.mubr.bf16.mxu0 %v6637_v9 }
  0xc7   : > { %4122 = vmatmul.mubr.msk.bf16.gmra.mrb[20].mxu1 %vm723_vm3, %v5808_v2 }
  0xc8   : > { %1203 = vmatprep.mubr.bf16.mxu1 %v6637_v9 }
  0xcb   : > { %4246 = vmatmul.mubr.msk.bf16.gmra.mrb[52].mxu0 %vm723_vm3, %v5609_v33 }
  0xcc   : > { %2578 = vmatprep.mubr.bf16.mxu0 %v6637_v9 }
  0xcf   : > { %4123 = vmatmul.mubr.msk.bf16.gmra.mrb[24].mxu1 %vm723_vm3, %v5821_v24 }
  0xd0   : > { %1213 = vmatprep.mubr.bf16.mxu1 %v6637_v9 }
  0xd3   : > { %4247 = vmatmul.mubr.msk.bf16.gmra.mrb[56].mxu0 %vm723_vm3, %v5617_v32 }
  0xd4   : > { %2588 = vmatprep.mubr.bf16.mxu0 %v6637_v9 }
  0xd7   : > { %4124 = vmatmul.mubr.msk.bf16.gmra.mrb[28].mxu1 %vm723_vm3, %v5840_v17 }
  0xd8   : > { %1223 = vmatprep.mubr.bf16.mxu1 %v6637_v9 }
  0xdb   : > { %4248 = vmatmul.mubr.msk.bf16.gmra.mrb[60].mxu0 %vm723_vm3, %v5849_v55 }
  0xdc   : > { %2716 = vmatprep.mubr.bf16.mxu0 %v6637_v9 }
  0xdf   : > { %4125 = vmatmul.mubr.msk.bf16.gmra.mrb[32].mxu1 %vm723_vm3, %v5856_v40 }
  0xe0   : > { %1233 = vmatprep.mubr.bf16.mxu1 %v6637_v9 }
  0xe3   : > { %4254 = vmatmul.mubr.msk.bf16.vlgmr.msra.gmra.mrb[0].mxu0 %vm723_vm3, %v5778_v22 }
  0xe4   : > { %2985 = vmatpush1.bf16.msra.mxu0 %v2979_v29  ;;  %2726 = vmatprep.mubr.bf16.mxu0 %v6637_v9  ;;  %v6659_v29 = vld [vmem:[#allocation12_spill] sm:$0xff] }
  0xe5   : > { %4296 = vmatprep.subr.msk.bf16.mxu0 %vm772_vm0, %v4295_v10  ;;  %v6660_v10 = vld [vmem:[#allocation13_spill] sm:$0xff] }
  0xe7   : > { %4126 = vmatmul.mubr.msk.bf16.gmra.mrb[36].mxu1 %vm723_vm3, %v5622_v54 }
  0xe8   : > { %1243 = vmatprep.mubr.bf16.mxu1 %v6637_v9 }
  0xeb   : > { %4255 = vmatmul.mubr.msk.bf16.gmra.mrb[4].mxu0 %vm723_vm3, %v5788_v41 }
  0xec   : > { %2736 = vmatprep.mubr.bf16.mxu0 %v6637_v9 }
  0xef   : > { %4127 = vmatmul.mubr.msk.bf16.gmra.mrb[40].mxu1 %vm723_vm3, %v5627_v46 }
  0xf0   : > { %1253 = vmatprep.mubr.bf16.mxu1 %v6637_v9 }
  0xf3   : > { %4256 = vmatmul.mubr.msk.bf16.gmra.mrb[8].mxu0 %vm723_vm3, %v5798_v25 }
  0xf4   : > { %2746 = vmatprep.mubr.bf16.mxu0 %v6637_v9 }
  0xf7   : > { %4128 = vmatmul.mubr.msk.bf16.gmra.mrb[44].mxu1 %vm723_vm3, %v5631_v53 }
  0xf8   : > { %1263 = vmatprep.mubr.bf16.mxu1 %v6637_v9 }
  0xfb   : > { %4257 = vmatmul.mubr.msk.bf16.gmra.mrb[12].mxu0 %vm723_vm3, %v5808_v2 }
  0xfc   : > { %2756 = vmatprep.mubr.bf16.mxu0 %v6637_v9 }
  0xff   : > { %4129 = vmatmul.mubr.msk.bf16.gmra.mrb[48].mxu1 %vm723_vm3, %v5652_v8 }
 0x100   : > { %1273 = vmatprep.mubr.bf16.mxu1 %v6637_v9 }
 0x103   : > { %4258 = vmatmul.mubr.msk.bf16.gmra.mrb[16].mxu0 %vm723_vm3, %v5821_v24 }
 0x104   : > { %2766 = vmatprep.mubr.bf16.mxu0 %v6637_v9 }
 0x107   : > { %4130 = vmatmul.mubr.msk.bf16.gmra.mrb[52].mxu1 %vm723_vm3, %v5683_v38 }
 0x108   : > { %1283 = vmatprep.mubr.bf16.mxu1 %v6637_v9 }
 0x10b   : > { %4259 = vmatmul.mubr.msk.bf16.gmra.mrb[20].mxu0 %vm723_vm3, %v5840_v17 }
 0x10c   : > { %2776 = vmatprep.mubr.bf16.mxu0 %v6637_v9 }
 0x10f   : > { %4131 = vmatmul.mubr.msk.bf16.gmra.mrb[56].mxu1 %vm723_vm3, %v5709_v28 }
 0x110   : > { %1293 = vmatprep.mubr.bf16.mxu1 %v6637_v9 }
 0x113   : > { %4260 = vmatmul.mubr.msk.bf16.gmra.mrb[24].mxu0 %vm723_vm3, %v5856_v40 }
 0x114   : > { %2786 = vmatprep.mubr.bf16.mxu0 %v6637_v9 }
 0x117   : > { %4132 = vmatmul.mubr.msk.bf16.gmra.mrb[60].mxu1 %vm723_vm3, %v5733_v26 }
 0x118   : > { %1576 = vmatprep.mubr.bf16.mxu1 %v6637_v9 }
 0x11b   : > { %4261 = vmatmul.mubr.msk.bf16.gmra.mrb[28].mxu0 %vm723_vm3, %v5622_v54 }
 0x11c   : > { %2796 = vmatprep.mubr.bf16.mxu0 %v6637_v9 }
 0x11f   : > { %4169 = vmatmul.mubr.msk.bf16.vlgmr.msra.gmra.mrb[0].mxu1 %vm723_vm3, %v4150_v37  ;;  %v2095_v37 = vrot.slane %v2093_v7, 4 }
 0x120   : > { %1823 = vmatpush1.bf16.msra.mxu1 %v1817_v36  ;;  %1586 = vmatprep.mubr.bf16.mxu1 %v6637_v9 }
 0x121   : > { %4318 = vmatprep.subr.msk.bf16.mxu1 %vm772_vm0, %v6652_v14  ;;  %v2099_v14 = vshll.u32 %v5829_v35, 16 }
 0x123   : > { %4262 = vmatmul.mubr.msk.bf16.gmra.mrb[32].mxu0 %vm723_vm3, %v5627_v46 }
 0x124   : > { %2806 = vmatprep.mubr.bf16.mxu0 %v6637_v9 }
 0x127   : > { %4170 = vmatmul.mubr.msk.bf16.gmra.mrb[4].mxu1 %vm723_vm3, %v6653_v49  ;;  %v2945_v49 = vshll.u32 %v5976_v56, 16 }
 0x128   : > { %1596 = vmatprep.mubr.bf16.mxu1 %v6637_v9 }
 0x129   : > { %v2947_v35 = vrot.slane %v2945_v49, 5 }
 0x12b   : > { %4263 = vmatmul.mubr.msk.bf16.gmra.mrb[36].mxu0 %vm723_vm3, %v5631_v53 }
 0x12c   : > { %2816 = vmatprep.mubr.bf16.mxu0 %v6637_v9 }
 0x12f   : > { %4171 = vmatmul.mubr.msk.bf16.gmra.mrb[8].mxu1 %vm723_vm3, %v6654_v4 }
 0x130   : > { %1606 = vmatprep.mubr.bf16.mxu1 %v6637_v9 }
 0x133   : > { %4264 = vmatmul.mubr.msk.bf16.gmra.mrb[40].mxu0 %vm723_vm3, %v5652_v8 }
 0x134   : > { %2826 = vmatprep.mubr.bf16.mxu0 %v6637_v9 }
 0x137   : > { %4172 = vmatmul.mubr.msk.bf16.gmra.mrb[12].mxu1 %vm723_vm3, %v6655_v42 }
 0x138   : > { %1616 = vmatprep.mubr.bf16.mxu1 %v6637_v9 }
 0x13b   : > { %4265 = vmatmul.mubr.msk.bf16.gmra.mrb[44].mxu0 %vm723_vm3, %v5683_v38 }
 0x13c   : > { %2836 = vmatprep.mubr.bf16.mxu0 %v6637_v9 }
 0x13f   : > { %4173 = vmatmul.mubr.msk.bf16.gmra.mrb[16].mxu1 %vm723_vm3, %v5474_v1 }
 0x140   : > { %1626 = vmatprep.mubr.bf16.mxu1 %v6637_v9 }
 0x143   : > { %4266 = vmatmul.mubr.msk.bf16.gmra.mrb[48].mxu0 %vm723_vm3, %v5709_v28 }
 0x144   : > { %2846 = vmatprep.mubr.bf16.mxu0 %v6637_v9 }
 0x147   : > { %4174 = vmatmul.mubr.msk.bf16.gmra.mrb[20].mxu1 %vm723_vm3, %v5654_v11 }
 0x148   : > { %1636 = vmatprep.mubr.bf16.mxu1 %v6637_v9 }
 0x14b   : > { %4267 = vmatmul.mubr.msk.bf16.gmra.mrb[52].mxu0 %vm723_vm3, %v5733_v26 }
 0x14c   : > { %2856 = vmatprep.mubr.bf16.mxu0 %v6637_v9 }
 0x14f   : > { %4175 = vmatmul.mubr.msk.bf16.gmra.mrb[24].mxu1 %vm723_vm3, %v5685_v18 }
 0x150   : > { %1646 = vmatprep.mubr.bf16.mxu1 %v6637_v9 }
 0x153   : > { %4268 = vmatmul.mubr.msk.bf16.gmra.mrb[56].mxu0 %vm723_vm3, %v5969_v3 }
 0x154   : > { %2866 = vmatprep.mubr.bf16.mxu0 %v6637_v9 }
 0x157   : > { %4176 = vmatmul.mubr.msk.bf16.gmra.mrb[28].mxu1 %vm723_vm3, %v5713_v20 }
 0x158   : > { %1656 = vmatprep.mubr.bf16.mxu1 %v6637_v9 }
 0x15b   : > { %4269 = vmatmul.mubr.msk.bf16.gmra.mrb[60].mxu0 %vm723_vm3, %v4250_v44  ;;  %v2951_v44 = vshll.u32 %v5979_v31, 16 }
 0x15c   : > { %3016 = vmatprep.mubr.bf16.mxu0 %v6637_v9 }
 0x15f   : > { %4177 = vmatmul.mubr.msk.bf16.gmra.mrb[32].mxu1 %vm723_vm3, %v5737_v52 }
 0x160   : > { %1666 = vmatprep.mubr.bf16.mxu1 %v6637_v9 }
 0x163   : > { %4275 = vmatmul.mubr.msk.bf16.vlgmr.msra.gmra.mrb[0].mxu0 %vm723_vm3, %v6656_v0  ;;  %v2101_v0 = vrot.slane %v2099_v14, 5 }
 0x164   : > { %3269 = vmatpush1.bf16.msra.mxu0 %v3263_v19  ;;  %3026 = vmatprep.mubr.bf16.mxu0 %v6637_v9 }
 0x167   : > { %4178 = vmatmul.mubr.msk.bf16.gmra.mrb[36].mxu1 %vm723_vm3, %v5516_v5 }
 0x168   : > { %1676 = vmatprep.mubr.bf16.mxu1 %v6637_v9 }
 0x16b   : > { %4276 = vmatmul.mubr.msk.bf16.gmra.mrb[4].mxu0 %vm723_vm3, %v6657_v50 }
 0x16c   : > { %3036 = vmatprep.mubr.bf16.mxu0 %v6637_v9 }
 0x16f   : > { %4179 = vmatmul.mubr.msk.bf16.gmra.mrb[40].mxu1 %vm723_vm3, %v5538_v13 }
 0x170   : > { %1686 = vmatprep.mubr.bf16.mxu1 %v6637_v9 }
 0x173   : > { %4277 = vmatmul.mubr.msk.bf16.gmra.mrb[8].mxu0 %vm723_vm3, %v6658_v57  ;;  %v2953_v57 = vrot.slane %v2951_v44, 5 }
 0x174   : > { %3046 = vmatprep.mubr.bf16.mxu0 %v6637_v9 }
 0x177   : > { %4180 = vmatmul.mubr.msk.bf16.gmra.mrb[44].mxu1 %vm723_vm3, %v5552_v59 }
 0x178   : > { %1696 = vmatprep.mubr.bf16.mxu1 %v6637_v9 }
 0x17b   : > { %4278 = vmatmul.mubr.msk.bf16.gmra.mrb[12].mxu0 %vm723_vm3, %v6659_v29 }
 0x17c   : > { %3056 = vmatprep.mubr.bf16.mxu0 %v6637_v9 }
 0x17f   : > { %4181 = vmatmul.mubr.msk.bf16.gmra.mrb[48].mxu1 %vm723_vm3, %v5575_v47 }
 0x180   : > { %1706 = vmatprep.mubr.bf16.mxu1 %v6637_v9 }
 0x183   : > { %4279 = vmatmul.mubr.msk.bf16.gmra.mrb[16].mxu0 %vm723_vm3, %v6660_v10  ;;  %v6083_v10 = vld [vmem:[%s5092_s6 + $0xd4] sm:$0x1] }
 0x184   : > { %3066 = vmatprep.mubr.bf16.mxu0 %v6637_v9 }
 0x187   : > { %4182 = vmatmul.mubr.msk.bf16.gmra.mrb[52].mxu1 %vm723_vm3, %v6651_v63 }
 0x188   : > { %1716 = vmatprep.mubr.bf16.mxu1 %v6637_v9 }
 0x18b   : > { %4280 = vmatmul.mubr.msk.bf16.gmra.mrb[20].mxu0 %vm723_vm3, %v6661_v16 }
 0x18c   : > { %3076 = vmatprep.mubr.bf16.mxu0 %v6637_v9 }
 0x18f   : > { %4183 = vmatmul.mubr.msk.bf16.gmra.mrb[56].mxu1 %vm723_vm3, %v5609_v33 }
 0x190   : > { %1726 = vmatprep.mubr.bf16.mxu1 %v6637_v9 }
 0x193   : > { %4281 = vmatmul.mubr.msk.bf16.gmra.mrb[24].mxu0 %vm723_vm3, %v6662_v45 }
 0x194   : > { %3086 = vmatprep.mubr.bf16.mxu0 %v6637_v9 }
 0x197   : > { %4184 = vmatmul.mubr.msk.bf16.gmra.mrb[60].mxu1 %vm723_vm3, %v5617_v32 }
 0x198   : > { %1854 = vmatprep.mubr.bf16.mxu1 %v6637_v9 }
 0x19b   : > { %4282 = vmatmul.mubr.msk.bf16.gmra.mrb[28].mxu0 %vm723_vm3, %v6663_v23 }
 0x19c   : > { %3096 = vmatprep.mubr.bf16.mxu0 %v6637_v9 }
 0x19f   : > { %4190 = vmatmul.mubr.msk.bf16.vlgmr.msra.gmra.mrb[0].mxu1 %vm723_vm3, %v5768_v21  ;;  %v2080_v21 = vshrl.u32 %v5826_v27, 16 }
 0x1a0   : > { %4319 = vmatpush1.bf16.msra.mxu1 %v6664_v39  ;;  %1864 = vmatprep.mubr.bf16.mxu1 %v6637_v9 }
 0x1a1   : > { %v2082_v48 = vrot.slane %v2080_v21, 4  ;;  %v2961_v21 = vshll.u32 %v6083_v10, 16 }
 0x1a3   : > { %4283 = vmatmul.mubr.msk.bf16.gmra.mrb[32].mxu0 %vm723_vm3, %v6665_v60 }
 0x1a4   : > { %3106 = vmatprep.mubr.bf16.mxu0 %v6637_v9 }
 0x1a7   : > { %4191 = vmatmul.mubr.msk.bf16.gmra.mrb[4].mxu1 %vm723_vm3, %v5778_v22  ;;  %v2083_v22 = vshll.u32 %v5826_v27, 16 }
 0x1a8   : > { %1874 = vmatprep.mubr.bf16.mxu1 %v6637_v9 }
 0x1ab   : > { %4284 = vmatmul.mubr.msk.bf16.gmra.mrb[36].mxu0 %vm723_vm3, %v5472_v15 }
 0x1ac   : > { %3116 = vmatprep.mubr.bf16.mxu0 %v6637_v9 }
 0x1af   : > { %4192 = vmatmul.mubr.msk.bf16.gmra.mrb[8].mxu1 %vm723_vm3, %v5788_v41  ;;  %v2089_v41 = vshll.u32 %v5815_v51, 16  ;;  %v2942_v51 = vshrl.u32 %v5976_v56, 16 }
 0x1b0   : > { %1884 = vmatprep.mubr.bf16.mxu1 %v6637_v9 }
 0x1b1   : > { %v2091_v34 = vrot.slane %v2089_v41, 5  ;;  %v2944_v50 = vrot.slane %v2942_v51, 4 }
 0x1b3   : > { %4285 = vmatmul.mubr.msk.bf16.gmra.mrb[40].mxu0 %vm723_vm3, %v5633_v12  ;;  %v2096_v27 = vor.u32 %v2095_v37, %v2091_v34  ;;  %v2948_v45 = vor.u32 %v2947_v35, %v2944_v50  ;;  %v3527_v37 = vlaneseq }
 0x1b4   : > { %3126 = vmatprep.mubr.bf16.mxu0 %v6637_v9 }
 0x1b5   : > { %v2097_v19 = vrot.slane %v2096_v27, 4  ;;  %v2949_v41 = vrot.slane %v2948_v45, 4  ;;  %v3528_v51 = vshrl.u32 %v3527_v37, 7 }
 0x1b7   : > { %4193 = vmatmul.mubr.msk.bf16.gmra.mrb[12].mxu1 %vm723_vm3, %v5798_v25  ;;  %v2085_v25 = vrot.slane %v2083_v22, 5  ;;  %v3533_v49 = vsub.s32 1, %v3528_v51 }
 0x1b8   : > { %1894 = vmatprep.mubr.bf16.mxu1 %v6637_v9 }
 0x1b9   : > { %v2086_v36 = vor.u32 %v2085_v25, %v2082_v48  ;;  %v2963_v48 = vrot.slane %v2961_v21, 5  ;;  %v2954_v25 = vsel %vm5126_vm4, %v2949_v41, %v2953_v57 }
 0x1bb   : > { %4286 = vmatmul.mubr.msk.bf16.gmra.mrb[44].mxu0 %vm723_vm3, %v5671_v58  ;;  %v2087_v61 = vrot.slane %v2086_v36, 4 }
 0x1bc   : > { %3136 = vmatprep.mubr.bf16.mxu0 %v6637_v9 }
 0x1bd   : > { %v2092_v16 = vsel %vm5126_vm4, %v2087_v61, %v2091_v34 }
 0x1bf   : > { %4194 = vmatmul.mubr.msk.bf16.gmra.mrb[16].mxu1 %vm723_vm3, %v5808_v2  ;;  %v2955_v2 = vshrl.u32 %v5979_v31, 16 }
 0x1c0   : > { %1904 = vmatprep.mubr.bf16.mxu1 %v6637_v9 }
 0x1c1   : > { %v2957_v29 = vrot.slane %v2955_v2, 4  ;;  %v3525_v2 = vld [vmem:[%s6587_s2] sm:$0x3] }
 0x1c2   : > { %v6259_v61 = vrot.slane %v3525_v2, %v3533_v49 }
 0x1c3   : > { %4287 = vmatmul.mubr.msk.bf16.gmra.mrb[48].mxu0 %vm723_vm3, %v5699_v62  ;;  %v2958_v39 = vor.u32 %v2957_v29, %v2953_v57 }
 0x1c4   : > { %3146 = vmatprep.mubr.bf16.mxu0 %v6637_v9 }
 0x1c5   : > { %v2959_v7 = vrot.slane %v2958_v39, 4 }
 0x1c7   : > { %4195 = vmatmul.mubr.msk.bf16.gmra.mrb[20].mxu1 %vm723_vm3, %v5821_v24  ;;  %v2102_v24 = vsel %vm5126_vm4, %v2097_v19, %v2101_v0  ;;  %v2964_v34 = vsel %vm5126_vm4, %v2959_v7, %v2963_v48 }
 0x1c8   : > { %1914 = vmatprep.mubr.bf16.mxu1 %v6637_v9  ;;  %v6095_v22 = vcombine.low %v2092_v16, %v2102_v24 }
 0x1cb   : > { %4288 = vmatmul.mubr.msk.bf16.gmra.mrb[52].mxu0 %vm723_vm3, %v5724_v30 }
 0x1cc   : > { %3156 = vmatprep.mubr.bf16.mxu0 %v6637_v9 }
 0x1cf   : > { %4196 = vmatmul.mubr.msk.bf16.gmra.mrb[24].mxu1 %vm723_vm3, %v5840_v17  ;;  %v4271_v17 = vcombine.low %v2954_v25, %v2964_v34 }
 0x1d0   : > { %1924 = vmatprep.mubr.bf16.mxu1 %v6637_v9 }
 0x1d3   : > { %4289 = vmatmul.mubr.msk.bf16.gmra.mrb[56].mxu0 %vm723_vm3, %v6095_v22 }
 0x1d4   : > { %3166 = vmatprep.mubr.bf16.mxu0 %v6637_v9 }
 0x1d7   : > { %4197 = vmatmul.mubr.msk.bf16.gmra.mrb[28].mxu1 %vm723_vm3, %v5856_v40 }
 0x1d8   : > { %1934 = vmatprep.mubr.bf16.mxu1 %v6637_v9 }
 0x1db   : > { %4290 = vmatmul.mubr.msk.bf16.gmra.mrb[60].mxu0 %vm723_vm3, %v4271_v17 }
 0x1dc   : > { %3300 = vmatprep.mubr.bf16.mxu0 %v6637_v9 }
 0x1df   : > { %4198 = vmatmul.mubr.msk.bf16.gmra.mrb[32].mxu1 %vm723_vm3, %v5622_v54 }
 0x1e0   : > { %1944 = vmatprep.mubr.bf16.mxu1 %v6637_v9 }
 0x1e3   : > { %4297 = vmatmul.mubr.msk.bf16.vlgmr.msra.gmra.mrb[0].mxu0 %vm723_vm3, %v6654_v4 }
 0x1e4   : > { %3310 = vmatprep.mubr.bf16.mxu0 %v6637_v9 }
 0x1e7   : > { %4199 = vmatmul.mubr.msk.bf16.gmra.mrb[36].mxu1 %vm723_vm3, %v5627_v46 }
 0x1e8   : > { %1954 = vmatprep.mubr.bf16.mxu1 %v6637_v9 }
 0x1eb   : > { %4298 = vmatmul.mubr.msk.bf16.gmra.mrb[4].mxu0 %vm723_vm3, %v6655_v42 }
 0x1ec   : > { %3320 = vmatprep.mubr.bf16.mxu0 %v6637_v9 }
 0x1ef   : > { %4200 = vmatmul.mubr.msk.bf16.gmra.mrb[40].mxu1 %vm723_vm3, %v5631_v53 }
 0x1f0   : > { %1964 = vmatprep.mubr.bf16.mxu1 %v6637_v9 }
 0x1f3   : > { %4299 = vmatmul.mubr.msk.bf16.gmra.mrb[8].mxu0 %vm723_vm3, %v5474_v1  ;;  %v3247_v1 = vrot.slane %v6083_v10, 5 }
 0x1f4   : > { %3330 = vmatprep.mubr.bf16.mxu0 %v6637_v9 }
 0x1f7   : > { %4201 = vmatmul.mubr.msk.bf16.gmra.mrb[44].mxu1 %vm723_vm3, %v5652_v8 }
 0x1f8   : > { %1974 = vmatprep.mubr.bf16.mxu1 %v6637_v9 }
 0x1fb   : > { %4300 = vmatmul.mubr.msk.bf16.gmra.mrb[12].mxu0 %vm723_vm3, %v5654_v11 }
 0x1fc   : > { %3340 = vmatprep.mubr.bf16.mxu0 %v6637_v9 }
 0x1ff   : > { %4202 = vmatmul.mubr.msk.bf16.gmra.mrb[48].mxu1 %vm723_vm3, %v5683_v38 }
 0x200   : > { %1984 = vmatprep.mubr.bf16.mxu1 %v6637_v9 }
 0x203   : > { %4301 = vmatmul.mubr.msk.bf16.gmra.mrb[16].mxu0 %vm723_vm3, %v5685_v18 }
 0x204   : > { %3350 = vmatprep.mubr.bf16.mxu0 %v6637_v9 }
 0x207   : > { %4203 = vmatmul.mubr.msk.bf16.gmra.mrb[52].mxu1 %vm723_vm3, %v5709_v28 }
 0x208   : > { %1994 = vmatprep.mubr.bf16.mxu1 %v6637_v9 }
 0x20b   : > { %4302 = vmatmul.mubr.msk.bf16.gmra.mrb[20].mxu0 %vm723_vm3, %v5713_v20 }
 0x20c   : > { %3360 = vmatprep.mubr.bf16.mxu0 %v6637_v9 }
 0x20f   : > { %4204 = vmatmul.mubr.msk.bf16.gmra.mrb[56].mxu1 %vm723_vm3, %v5733_v26 }
 0x210   : > { %2004 = vmatprep.mubr.bf16.mxu1 %v6637_v9 }
 0x213   : > { %4303 = vmatmul.mubr.msk.bf16.gmra.mrb[24].mxu0 %vm723_vm3, %v5737_v52 }
 0x214   : > { %3370 = vmatprep.mubr.bf16.mxu0 %v6637_v9 }
 0x217   : > { %4205 = vmatmul.mubr.msk.bf16.gmra.mrb[60].mxu1 %vm723_vm3, %v5969_v3 }
 0x218   : > { %2234 = vmatprep.mubr.bf16.mxu1 %v6637_v9 }
 0x21b   : > { %4304 = vmatmul.mubr.msk.bf16.gmra.mrb[28].mxu0 %vm723_vm3, %v5516_v5 }
 0x21c   : > { %3380 = vmatprep.mubr.bf16.mxu0 %v6637_v9 }
 0x21f   : > { %4219 = vmatmul.mubr.msk.bf16.vlgmr.msra.gmra.mrb[32].mxu1 %vm723_vm3, %v6663_v23 }
 0x220   : > { %2244 = vmatprep.mubr.bf16.mxu1 %v6637_v9 }
 0x223   : > { %4305 = vmatmul.mubr.msk.bf16.gmra.mrb[32].mxu0 %vm723_vm3, %v5538_v13 }
 0x224   : > { %3390 = vmatprep.mubr.bf16.mxu0 %v6637_v9 }
 0x227   : > { %4220 = vmatmul.mubr.msk.bf16.gmra.mrb[36].mxu1 %vm723_vm3, %v6665_v60 }
 0x228   : > { %2254 = vmatprep.mubr.bf16.mxu1 %v6637_v9 }
 0x22b   : > { %4306 = vmatmul.mubr.msk.bf16.gmra.mrb[36].mxu0 %vm723_vm3, %v5552_v59 }
 0x22c   : > { %3400 = vmatprep.mubr.bf16.mxu0 %v6637_v9 }
 0x22f   : > { %4221 = vmatmul.mubr.msk.bf16.gmra.mrb[40].mxu1 %vm723_vm3, %v5472_v15  ;;  %v3246_v15 = vrot.slane %v3244_v43, 4 }
 0x230   : > { %2264 = vmatprep.mubr.bf16.mxu1 %v6637_v9 }
 0x231   : > { %v3248_v13 = vsel %vm5316_vm7, %v3246_v15, %v3247_v1 }
 0x233   : > { %4307 = vmatmul.mubr.msk.bf16.gmra.mrb[40].mxu0 %vm723_vm3, %v5575_v47  ;;  %v4291_v47 = vrot.slane %v5976_v56, 9 }
 0x234   : > { %3410 = vmatprep.mubr.bf16.mxu0 %v6637_v9 }
 0x235   : > { %v3245_v5 = vsel %vm5316_vm7, %v4291_v47, %v3244_v43 }
 0x236   : > { %v4293_v59 = vcombine.low %v3245_v5, %v3248_v13 }
 0x237   : > { %4222 = vmatmul.mubr.msk.bf16.gmra.mrb[44].mxu1 %vm723_vm3, %v5633_v12 }
 0x238   : > { %2274 = vmatprep.mubr.bf16.mxu1 %v6637_v9 }
 0x23b   : > { %4308 = vmatmul.mubr.msk.bf16.gmra.mrb[44].mxu0 %vm723_vm3, %v6651_v63 }
 0x23c   : > { %3420 = vmatprep.mubr.bf16.mxu0 %v6637_v9 }
 0x23f   : > { %4223 = vmatmul.mubr.msk.bf16.gmra.mrb[48].mxu1 %vm723_vm3, %v5671_v58 }
 0x240   : > { %2284 = vmatprep.mubr.bf16.mxu1 %v6637_v9 }
 0x243   : > { %4309 = vmatmul.mubr.msk.bf16.gmra.mrb[48].mxu0 %vm723_vm3, %v5609_v33 }
 0x244   : > { %3430 = vmatprep.mubr.bf16.mxu0 %v6637_v9 }
 0x247   : > { %4224 = vmatmul.mubr.msk.bf16.gmra.mrb[52].mxu1 %vm723_vm3, %v5699_v62 }
 0x248   : > { %2294 = vmatprep.mubr.bf16.mxu1 %v6637_v9 }
 0x24b   : > { %4310 = vmatmul.mubr.msk.bf16.gmra.mrb[52].mxu0 %vm723_vm3, %v5617_v32 }
 0x24c   : > { %3440 = vmatprep.mubr.bf16.mxu0 %v6637_v9 }
 0x24f   : > { %4225 = vmatmul.mubr.msk.bf16.gmra.mrb[56].mxu1 %vm723_vm3, %v5724_v30 }
 0x250   : > { %2304 = vmatprep.mubr.bf16.mxu1 %v6637_v9 }
 0x253   : > { %4311 = vmatmul.mubr.msk.bf16.gmra.mrb[56].mxu0 %vm723_vm3, %v5849_v55 }
 0x254   : > { %3450 = vmatprep.mubr.bf16.mxu0 %v6637_v9 }
 0x257   : > { %4226 = vmatmul.mubr.msk.bf16.gmra.mrb[60].mxu1 %vm723_vm3, %v6095_v22 }
 0x25b   : > { %4312 = vmatmul.mubr.msk.bf16.gmra.mrb[60].mxu0 %vm723_vm3, %v4293_v59 }
 0x272   : > { %v1856_v33 = vpop.f32.mrb[0].mxu1 }
 0x273   : > { %v1858_v32 = vpop.f32.mrb[1].mxu1 }
 0x274   : > { %v1860_v54 = vpop.f32.mrb[2].mxu1 }
 0x275   : > { %v1862_v46 = vpop.f32.mrb[3].mxu1 }
 0x27a   : > { %v1866_v53 = vpop.f32.mrb[4].mxu1 }
 0x27b   : > { %v1868_v12 = vpop.f32.mrb[5].mxu1 }
 0x27c   : > { %v1870_v8 = vpop.f32.mrb[6].mxu1 }
 0x27d   : > { %v1872_v9 = vpop.f32.mrb[7].mxu1 }
 0x282   : > { %v1876_v11 = vpop.f32.mrb[8].mxu1 }
 0x283   : > { %v6210_v58 = vpop.f32.mrb[9].mxu1 }
 0x284   : > { %v6212_v38 = vpop.f32.mrb[10].mxu1 }
 0x285   : > { %v6214_v6 = vpop.f32.mrb[11].mxu1 }
 0x28a   : > { %v6216_v18 = vpop.f32.mrb[12].mxu1 }
 0x28b   : > { %v6218_v62 = vpop.f32.mrb[13].mxu1 }
 0x28c   : > { %v6220_v28 = vpop.f32.mrb[14].mxu1 }
 0x28d   : > { %v6222_v20 = vpop.f32.mrb[15].mxu1 }
 0x292   : > { %v6224_v30 = vpop.f32.mrb[16].mxu1 }
 0x293   : > { %v6226_v26 = vpop.f32.mrb[17].mxu1 }
 0x294   : > { %v6228_v52 = vpop.f32.mrb[18].mxu1 }
 0x295   : > { %v6230_v63 = vpop.f32.mrb[19].mxu1 }
 0x29a   : > { %v6232_v55 = vpop.f32.mrb[20].mxu1 }
 0x29b   : > { %v6234_v40 = vpop.f32.mrb[21].mxu1 }
 0x29c   : > { %v6236_v4 = vpop.f32.mrb[22].mxu1 }
 0x29d   : > { %v6238_v42 = vpop.f32.mrb[23].mxu1 }
 0x2a2   : > { %v6240_v3 = vpop.f32.mrb[24].mxu1 }
 0x2a3   : > { %v6242_v56 = vpop.f32.mrb[25].mxu1 }
 0x2a4   : > { %v6244_v31 = vpop.f32.mrb[26].mxu1 }
 0x2a5   : > { %v6246_v23 = vpop.f32.mrb[27].mxu1 }
 0x2aa   : > { %v6248_v60 = vpop.f32.mrb[28].mxu1 }
 0x2ab   : > { %v6250_v36 = vpop.f32.mrb[29].mxu1 }
 0x2ac   : > { %v6252_v27 = vpop.f32.mrb[30].mxu1 }
 0x2ad   : > { %v6254_v14 = vpop.f32.mrb[31].mxu1 }
 0x2b6   : > { %v3302_v44 = vpop.f32.mrb[0].mxu0 }
 0x2b7   : > { %v4320_v19 = vadd.f32 %v3302_v44, %v1856_v33  ;;  %v3304_v0 = vpop.f32.mrb[1].mxu0 }
 0x2b8   : > { %v4321_v50 = vadd.f32 %v3304_v0, %v1858_v32  ;;  %v3306_v35 = vpop.f32.mrb[2].mxu0  ;;  %v3529_v32 = vsub.s32 0, %v3528_v51 }
 0x2b9   : > { %v4322_v57 = vadd.f32 %v3306_v35, %v1860_v54  ;;  %v3308_v29 = vpop.f32.mrb[3].mxu0 }
 0x2ba   : > { %v3538_v10 = vadd.f32 %v4321_v50, %v6259_v61  ;;  %v4323_v16 = vadd.f32 %v3308_v29, %v1862_v46  ;;  %v6275_v50 = vrot.slane %v3525_v2, %v3529_v32 }
 0x2bc   : > { %v3697_v24 = vsub.f32 0.0, %v3538_v10  ;;  %v3540_v45 = vadd.f32 %v4323_v16, %v6259_v61 }
 0x2be   : > { %v3729_v39 = vmul.f32 1.442695, %v3697_v24  ;;  %v3698_v21 = vsub.f32 0.0, %v3540_v45  ;;  %v3312_v22 = vpop.f32.mrb[4].mxu0  ;;  %v3537_v24 = vadd.f32 %v4320_v19, %v6275_v50 }
 0x2bf   : > { %v4324_v41 = vadd.f32 %v3312_v22, %v1866_v53  ;;  %v3314_v7 = vpop.f32.mrb[5].mxu0 }
 0x2c0   : > { %4878 = vpow2.f32 %v3729_v39  ;;  %v3731_v48 = vmul.f32 1.442695, %v3698_v21  ;;  %v4325_v25 = vadd.f32 %v3314_v7, %v1868_v12  ;;  %v3316_v34 = vpop.f32.mrb[6].mxu0  ;;  %vm3601_vm8 = vcmp.ge.f32.partialorder %v3537_v24, 0.0 }
 0x2c1   : > { %v6263_v17 = vadd.f32 %v3316_v34, %v1870_v8  ;;  %v3318_v43 = vpop.f32.mrb[7].mxu0 }
 0x2c2   : > { %4880 = vpow2.f32 %v3731_v48  ;;  %v3542_v47 = vadd.f32 %v4325_v25, %v6259_v61  ;;  %v4327_v15 = vadd.f32 %v3318_v43, %v1872_v9 }
 0x2c4   : > { %v3699_v1 = vsub.f32 0.0, %v3542_v47  ;;  %v3544_v5 = vadd.f32 %v4327_v15, %v6259_v61 }
 0x2c6   : > { %v3733_v13 = vmul.f32 1.442695, %v3699_v1  ;;  %v3700_v59 = vsub.f32 0.0, %v3544_v5  ;;  %v3322_v33 = vpop.f32.mrb[8].mxu0 }
 0x2c7   : > { %v6267_v54 = vadd.f32 %v3322_v33, %v1876_v11  ;;  %v3324_v46 = vpop.f32.mrb[9].mxu0 }
 0x2c8   : > { %4882 = vpow2.f32 %v3733_v13  ;;  %v3735_v53 = vmul.f32 1.442695, %v3700_v59  ;;  %v4329_v12 = vadd.f32 %v3324_v46, %v6210_v58  ;;  %v3326_v8 = vpop.f32.mrb[10].mxu0 }
 0x2c9   : > { %v6271_v37 = vadd.f32 %v3326_v8, %v6212_v38  ;;  %v3328_v49 = vpop.f32.mrb[11].mxu0 }
 0x2ca   : > { %v4879_v9 = vpop.eup %4878  ;;  %4884 = vpow2.f32 %v3735_v53  ;;  %v3546_v44 = vadd.f32 %v4329_v12, %v6259_v61  ;;  %v4331_v0 = vadd.f32 %v3328_v49, %v6214_v6  ;;  %v3539_v6 = vadd.f32 %v4322_v57, %v6275_v50 }
 0x2cb   : > { %v3793_v11 = vadd.f32 1.0, %v4879_v9 }
 0x2cc   : > { %v4881_v51 = vpop.eup %4880  ;;  %v3701_v35 = vsub.f32 0.0, %v3546_v44  ;;  %v3548_v29 = vadd.f32 %v4331_v0, %v6259_v61  ;;  %v3634_v57 = vmul.f32 0.2, %v3539_v6  ;;  %vm3602_vm9 = vcmp.ge.f32.partialorder %v3539_v6, 0.0  ;;  %v6303_v44 = vld [vmem:[%s6589_s4] ss:$0 sm:$0xff] }
 0x2cd   : > { %4886 = vrcp.f32 %v3793_v11  ;;  %v3794_v58 = vadd.f32 1.0, %v4881_v51  ;;  %v3543_v11 = vadd.f32 %v6263_v17, %v6275_v50 }
 0x2ce   : > { %v3737_v10 = vmul.f32 1.442695, %v3701_v35  ;;  %v3702_v16 = vsub.f32 0.0, %v3548_v29  ;;  %v3332_v38 = vpop.f32.mrb[12].mxu0 }
 0x2cf   : > { %4888 = vrcp.f32 %v3794_v58  ;;  %v6280_v45 = vadd.f32 %v3332_v38, %v6216_v18  ;;  %v3334_v39 = vpop.f32.mrb[13].mxu0  ;;  %v3633_v18 = vmul.f32 0.2, %v3537_v24  ;;  %vm3604_vm11 = vcmp.ge.f32.partialorder %v3543_v11, 0.0 }
 0x2d0   : > { %4890 = vpow2.f32 %v3737_v10  ;;  %v3739_v2 = vmul.f32 1.442695, %v3702_v16  ;;  %v4333_v21 = vadd.f32 %v3334_v39, %v6218_v62  ;;  %v3336_v22 = vpop.f32.mrb[14].mxu0 }
 0x2d1   : > { %v6285_v7 = vadd.f32 %v3336_v22, %v6220_v28  ;;  %v3338_v48 = vpop.f32.mrb[15].mxu0  ;;  %v3541_v28 = vadd.f32 %v4324_v41, %v6275_v50  ;;  %v3665_v32 = vsel %vm3601_vm8, %v3537_v24, %v3633_v18  ;;  %v3666_v41 = vsel %vm3602_vm9, %v3539_v6, %v3634_v57 }
 0x2d2   : > { %v4883_v25 = vpop.eup %4882  ;;  %4892 = vpow2.f32 %v3739_v2  ;;  %v3550_v19 = vadd.f32 %v4333_v21, %v6259_v61  ;;  %v4335_v34 = vadd.f32 %v3338_v48, %v6222_v20  ;;  %v6294_v20 = vld [vmem:[%s6588_s3] ss:$0 sm:$0xff]  ;;  %v3636_v6 = vmul.f32 0.2, %v3543_v11 }
 0x2d3   : > { %v3795_v43 = vadd.f32 1.0, %v4883_v25  ;;  %v3635_v0 = vmul.f32 0.2, %v3541_v28  ;;  %vm3603_vm10 = vcmp.ge.f32.partialorder %v3541_v28, 0.0 }
 0x2d4   : > { %v4885_v47 = vpop.eup %4884  ;;  %v3703_v15 = vsub.f32 0.0, %v3550_v19  ;;  %v3552_v62 = vadd.f32 %v4335_v34, %v6259_v61  ;;  %v3545_v34 = vadd.f32 %v6267_v54, %v6275_v50 }
 0x2d5   : > { %4894 = vrcp.f32 %v3795_v43  ;;  %v3796_v1 = vadd.f32 1.0, %v4885_v47  ;;  %v3667_v22 = vsel %vm3603_vm10, %v3541_v28, %v3635_v0  ;;  %v3549_v0 = vadd.f32 %v6280_v45, %v6275_v50 }
 0x2d6   : > { %v3741_v5 = vmul.f32 1.442695, %v3703_v15  ;;  %v3704_v13 = vsub.f32 0.0, %v3552_v62  ;;  %v3342_v59 = vpop.f32.mrb[16].mxu0  ;;  %vm3605_vm12 = vcmp.ge.f32.partialorder %v3545_v34, 0.0 }
 0x2d7   : > { %v4887_v33 = vpop.eup %4886  ;;  %4896 = vrcp.f32 %v3796_v1  ;;  %v6297_v46 = vadd.f32 %v3342_v59, %v6224_v30  ;;  %v3344_v53 = vpop.f32.mrb[17].mxu0  ;;  %vm3607_vm14 = vcmp.ge.f32.partialorder %v3549_v0, 0.0 }
 0x2d8   : > { %v3857_v12 = vmul.f32 %v4887_v33, %v3665_v32  ;;  %4898 = vpow2.f32 %v3741_v5  ;;  %v3743_v8 = vmul.f32 1.442695, %v3704_v13  ;;  %v3346_v49 = vpop.f32.mrb[18].mxu0  ;;  %v4337_v30 = vadd.f32 %v3344_v53, %v6226_v26 }
 0x2d9   : > { %v4889_v9 = vpop.eup %4888  ;;  %v6309_v51 = vadd.f32 %v3346_v49, %v6228_v52  ;;  %v3348_v35 = vpop.f32.mrb[19].mxu0  ;;  %v3668_v5 = vsel %vm3604_vm11, %v3543_v11, %v3636_v6  ;;  %v3547_v13 = vadd.f32 %v6271_v37, %v6275_v50  ;;  %v3639_v6 = vmul.f32 0.2, %v3549_v0 }
 0x2da   : > { %v4891_v29 = vpop.eup %4890  ;;  %v3896_v58 = vmul.f32 %v6294_v20, %v3857_v12  ;;  %v3858_v10 = vmul.f32 %v4889_v9, %v3666_v41  ;;  %4900 = vpow2.f32 %v3743_v8  ;;  %v4339_v16 = vadd.f32 %v3348_v35, %v6230_v63 }
 0x2db   : > { %v3797_v17 = vadd.f32 1.0, %v4891_v29  ;;  %v3554_v26 = vadd.f32 %v4337_v30, %v6259_v61  ;;  %v3638_v9 = vmul.f32 0.2, %v3547_v13  ;;  %vm3606_vm13 = vcmp.ge.f32.partialorder %v3547_v13, 0.0 }
 0x2dc   : > { %v4893_v52 = vpop.eup %4892  ;;  %v3935_v38 = vadd.f32 %v6303_v44, %v3896_v58  ;;  %v3897_v24 = vmul.f32 %v6294_v20, %v3858_v10  ;;  %v3556_v39 = vadd.f32 %v4339_v16, %v6259_v61 }
 0x2dd   : > { %4902 = vrcp.f32 %v3797_v17  ;;  %v3798_v63 = vadd.f32 1.0, %v4893_v52  ;;  %v3705_v2 = vsub.f32 0.0, %v3554_v26 }
 0x2de   : > { %3967 = vst [vmem:[%s6316_s27] sm:$0xff] %v3935_v38  ;;  %v3936_v21 = vadd.f32 %v6303_v44, %v3897_v24  ;;  %v3706_v48 = vsub.f32 0.0, %v3556_v39  ;;  %v3352_v25 = vpop.f32.mrb[20].mxu0  ;;  %v3670_v39 = vsel %vm3606_vm13, %v3547_v13, %v3638_v9 }
 0x2df   : > { %v4895_v19 = vpop.eup %4894  ;;  %4904 = vrcp.f32 %v3798_v63  ;;  %v3745_v18 = vmul.f32 1.442695, %v3705_v2  ;;  %v6327_v43 = vadd.f32 %v3352_v25, %v6232_v55  ;;  %v3354_v47 = vpop.f32.mrb[21].mxu0 }
 0x2e0   : > { %3968 = vst [vmem:[%s6316_s27 + $0x8] sm:$0xff] %v3936_v21  ;;  %v3859_v57 = vmul.f32 %v4895_v19, %v3667_v22  ;;  %v3747_v15 = vmul.f32 1.442695, %v3706_v48  ;;  %v4341_v62 = vadd.f32 %v3354_v47, %v6234_v40  ;;  %v3356_v1 = vpop.f32.mrb[22].mxu0  ;;  %v3637_v40 = vmul.f32 0.2, %v3545_v34 }
 0x2e1   : > { %v4897_v28 = vpop.eup %4896  ;;  %4906 = vpow2.f32 %v3745_v18  ;;  %v6334_v54 = vadd.f32 %v3356_v1, %v6236_v4  ;;  %v3358_v59 = vpop.f32.mrb[23].mxu0  ;;  %v3671_v1 = vsel %vm3607_vm14, %v3549_v0, %v3639_v6 }
 0x2e2   : > { %v4899_v33 = vpop.eup %4898  ;;  %v3898_v55 = vmul.f32 %v6294_v20, %v3859_v57  ;;  %v3860_v32 = vmul.f32 %v4897_v28, %v3668_v5  ;;  %4908 = vpow2.f32 %v3747_v15  ;;  %v3558_v53 = vadd.f32 %v4341_v62, %v6259_v61 }
 0x2e3   : > { %v3799_v12 = vadd.f32 1.0, %v4899_v33  ;;  %v4343_v4 = vadd.f32 %v3358_v59, %v6238_v42  ;;  %v3669_v16 = vsel %vm3605_vm12, %v3545_v34, %v3637_v40  ;;  %v3551_v42 = vadd.f32 %v6285_v7, %v6275_v50 }
 0x2e4   : > { %v4901_v41 = vpop.eup %4900  ;;  %v3937_v8 = vadd.f32 %v6303_v44, %v3898_v55  ;;  %v3899_v37 = vmul.f32 %v6294_v20, %v3860_v32  ;;  %v3707_v49 = vsub.f32 0.0, %v3558_v53  ;;  %v3553_v57 = vadd.f32 %v6297_v46, %v6275_v50 }
 0x2e5   : > { %4910 = vrcp.f32 %v3799_v12  ;;  %v3800_v11 = vadd.f32 1.0, %v4901_v41  ;;  %v3560_v29 = vadd.f32 %v4343_v4, %v6259_v61  ;;  %v3640_v19 = vmul.f32 0.2, %v3551_v42 }
 0x2e6   : > { %3969 = vst [vmem:[%s6316_s27 + $0x10] sm:$0xff] %v3937_v8  ;;  %v3938_v30 = vadd.f32 %v6303_v44, %v3899_v37  ;;  %v3749_v35 = vmul.f32 1.442695, %v3707_v49  ;;  %v3362_v58 = vpop.f32.mrb[24].mxu0  ;;  %vm3608_vm15 = vcmp.ge.f32.partialorder %v3551_v42, 0.0  ;;  %v3555_v59 = vadd.f32 %v6309_v51, %v6275_v50 }
 0x2e7   : > { %v4903_v10 = vpop.eup %4902  ;;  %4912 = vrcp.f32 %v3800_v11  ;;  %v6350_v17 = vadd.f32 %v3362_v58, %v6240_v3  ;;  %v3364_v45 = vpop.f32.mrb[25].mxu0  ;;  %v3708_v52 = vsub.f32 0.0, %v3560_v29  ;;  %v3672_v53 = vsel %vm3608_vm15, %v3551_v42, %v3640_v19 }
 0x2e8   : > { %3970 = vst [vmem:[%s6316_s27 + $0x18] sm:$0xff] %v3938_v30  ;;  %v3861_v26 = vmul.f32 %v4903_v10, %v3669_v16  ;;  %4914 = vpow2.f32 %v3749_v35  ;;  %v3366_v38 = vpop.f32.mrb[26].mxu0  ;;  %v4345_v63 = vadd.f32 %v3364_v45, %v6242_v56  ;;  %vm3609_vm0 = vcmp.ge.f32.partialorder %v3553_v57, 0.0 }
 0x2e9   : > { %v4905_v24 = vpop.eup %4904  ;;  %v6356_v2 = vadd.f32 %v3366_v38, %v6244_v31  ;;  %v3368_v7 = vpop.f32.mrb[27].mxu0  ;;  %v3751_v22 = vmul.f32 1.442695, %v3708_v52  ;;  %v3641_v37 = vmul.f32 0.2, %v3553_v57  ;;  %vm3610_vm1 = vcmp.ge.f32.partialorder %v3555_v59, 0.0 }
 0x2ea   : > { %v3900_v21 = vmul.f32 %v6294_v20, %v3861_v26  ;;  %v3862_v3 = vmul.f32 %v4905_v24, %v3670_v39  ;;  %v4347_v48 = vadd.f32 %v3368_v7, %v6246_v23  ;;  %v3562_v34 = vadd.f32 %v4345_v63, %v6259_v61 }
 0x2eb   : > { %v4907_v25 = vpop.eup %4906  ;;  %4916 = vpow2.f32 %v3751_v22  ;;  %v3557_v35 = vadd.f32 %v6327_v43, %v6275_v50  ;;  %v3673_v38 = vsel %vm3609_vm0, %v3553_v57, %v3641_v37 }
 0x2ec   : > { %v4909_v18 = vpop.eup %4908  ;;  %v3939_v47 = vadd.f32 %v6303_v44, %v3900_v21  ;;  %v3901_v56 = vmul.f32 %v6294_v20, %v3862_v3  ;;  %v3801_v31 = vadd.f32 1.0, %v4907_v25  ;;  %v3709_v62 = vsub.f32 0.0, %v3562_v34 }
 0x2ed   : > { %v3802_v15 = vadd.f32 1.0, %v4909_v18  ;;  %v3564_v28 = vadd.f32 %v4347_v48, %v6259_v61  ;;  %vm3611_vm2 = vcmp.ge.f32.partialorder %v3557_v35, 0.0  ;;  %v3643_v22 = vmul.f32 0.2, %v3557_v35 }
 0x2ee   : > { %3971 = vst [vmem:[%s6316_s27 + $0x20] sm:$0xff] %v3939_v47  ;;  %v3940_v23 = vadd.f32 %v6303_v44, %v3901_v56  ;;  %4918 = vrcp.f32 %v3801_v31  ;;  %v3372_v5 = vpop.f32.mrb[28].mxu0  ;;  %v3753_v33 = vmul.f32 1.442695, %v3709_v62 }
 0x2ef   : > { %v4911_v13 = vpop.eup %4910  ;;  %4920 = vrcp.f32 %v3802_v15  ;;  %v6371_v55 = vadd.f32 %v3372_v5, %v6248_v60  ;;  %v3374_v46 = vpop.f32.mrb[29].mxu0  ;;  %v3710_v40 = vsub.f32 0.0, %v3564_v28  ;;  %v3561_v5 = vadd.f32 %v6350_v17, %v6275_v50 }
 0x2f0   : > { %3972 = vst [vmem:[%s6316_s27 + $0x28] sm:$0xff] %v3940_v23  ;;  %v3863_v32 = vmul.f32 %v4911_v13, %v3671_v1  ;;  %v4349_v12 = vadd.f32 %v3374_v46, %v6250_v36  ;;  %v3376_v41 = vpop.f32.mrb[30].mxu0  ;;  %4922 = vpow2.f32 %v3753_v33  ;;  %v3642_v36 = vmul.f32 0.2, %v3555_v59 }
 0x2f1   : > { %v4913_v8 = vpop.eup %4912  ;;  %v6377_v51 = vadd.f32 %v3376_v41, %v6252_v27  ;;  %v3378_v49 = vpop.f32.mrb[31].mxu0  ;;  %v3755_v0 = vmul.f32 1.442695, %v3710_v40  ;;  %v3675_v40 = vsel %vm3611_vm2, %v3557_v35, %v3643_v22  ;;  %vm3613_vm4 = vcmp.ge.f32.partialorder %v3561_v5, 0.0 }
 0x2f2   : > { %v4915_v4 = vpop.eup %4914  ;;  %v3902_v60 = vmul.f32 %v6294_v20, %v3863_v32  ;;  %v3864_v9 = vmul.f32 %v4913_v8, %v3672_v53  ;;  %v3566_v11 = vadd.f32 %v4349_v12, %v6259_v61  ;;  %v2236_v30 = vpop.f32.mrb[32].mxu1  ;;  %v4351_v43 = vadd.f32 %v3378_v49, %v6254_v14 }
 0x2f3   : > { %v3803_v29 = vadd.f32 1.0, %v4915_v4  ;;  %v2238_v58 = vpop.f32.mrb[33].mxu1  ;;  %4924 = vpow2.f32 %v3755_v0  ;;  %v3674_v6 = vsel %vm3610_vm1, %v3555_v59, %v3642_v36  ;;  %v3559_v14 = vadd.f32 %v6334_v54, %v6275_v50 }
 0x2f4   : > { %v3941_v27 = vadd.f32 %v6303_v44, %v3902_v60  ;;  %v3903_v10 = vmul.f32 %v6294_v20, %v3864_v9  ;;  %v3711_v16 = vsub.f32 0.0, %v3566_v11  ;;  %v2240_v42 = vpop.f32.mrb[34].mxu1  ;;  %v3568_v48 = vadd.f32 %v4351_v43, %v6259_v61 }
 0x2f5   : > { %4926 = vrcp.f32 %v3803_v29  ;;  %v2242_v45 = vpop.f32.mrb[35].mxu1  ;;  %v4917_v26 = vpop.eup %4916  ;;  %vm3612_vm3 = vcmp.ge.f32.partialorder %v3559_v14, 0.0  ;;  %v3644_v12 = vmul.f32 0.2, %v3559_v14 }
 0x2f6   : > { %3973 = vst [vmem:[%s6316_s27 + $0x30] sm:$0xff] %v3941_v27  ;;  %v3942_v52 = vadd.f32 %v6303_v44, %v3903_v10  ;;  %v3757_v24 = vmul.f32 1.442695, %v3711_v16  ;;  %v3382_v39 = vpop.f32.mrb[32].mxu0  ;;  %v3804_v63 = vadd.f32 1.0, %v4917_v26  ;;  %v3712_v57 = vsub.f32 0.0, %v3568_v48 }
 0x2f7   : > { %v6390_v7 = vadd.f32 %v3382_v39, %v2236_v30  ;;  %v3384_v21 = vpop.f32.mrb[33].mxu0  ;;  %v3563_v27 = vadd.f32 %v6356_v2, %v6275_v50  ;;  %v3676_v39 = vsel %vm3612_vm3, %v3559_v14, %v3644_v12 }
 0x2f8   : > { %v4919_v3 = vpop.eup %4918  ;;  %3974 = vst [vmem:[%s6316_s27 + $0x38] sm:$0xff] %v3942_v52  ;;  %4928 = vpow2.f32 %v3757_v24  ;;  %v4353_v25 = vadd.f32 %v3384_v21, %v2238_v58  ;;  %v3386_v19 = vpop.f32.mrb[34].mxu0  ;;  %v3759_v33 = vmul.f32 1.442695, %v3712_v57  ;;  %v3645_v58 = vmul.f32 0.2, %v3561_v5 }
 0x2f9   : > { %v4921_v34 = vpop.eup %4920  ;;  %v3865_v18 = vmul.f32 %v4919_v3, %v3673_v38  ;;  %4930 = vrcp.f32 %v3804_v63  ;;  %v6396_v47 = vadd.f32 %v3386_v19, %v2240_v42  ;;  %v3388_v56 = vpop.f32.mrb[35].mxu0  ;;  %vm3614_vm5 = vcmp.ge.f32.partialorder %v3563_v27, 0.0 }
 0x2fa   : > { %v3866_v31 = vmul.f32 %v4921_v34, %v3674_v6  ;;  %v3570_v15 = vadd.f32 %v4353_v25, %v6259_v61  ;;  %v4355_v62 = vadd.f32 %v3388_v56, %v2242_v45  ;;  %v2246_v23 = vpop.f32.mrb[36].mxu1  ;;  %v4923_v1 = vpop.eup %4922  ;;  %v3565_v6 = vadd.f32 %v6371_v55, %v6275_v50 }
 0x2fb   : > { %v3904_v28 = vmul.f32 %v6294_v20, %v3865_v18  ;;  %v2248_v13 = vpop.f32.mrb[37].mxu1  ;;  %v3805_v54 = vadd.f32 1.0, %v4923_v1  ;;  %v3677_v25 = vsel %vm3613_vm4, %v3561_v5, %v3645_v58  ;;  %v3646_v18 = vmul.f32 0.2, %v3563_v27 }
 0x2fc   : > { %v3905_v59 = vmul.f32 %v6294_v20, %v3866_v31  ;;  %v3713_v46 = vsub.f32 0.0, %v3570_v15  ;;  %v2250_v32 = vpop.f32.mrb[38].mxu1  ;;  %v3572_v49 = vadd.f32 %v4355_v62, %v6259_v61  ;;  %vm3615_vm6 = vcmp.ge.f32.partialorder %v3565_v6, 0.0 }
 0x2fd   : > { %v3943_v53 = vadd.f32 %v6303_v44, %v3904_v28  ;;  %v2252_v41 = vpop.f32.mrb[39].mxu1  ;;  %v4925_v8 = vpop.eup %4924  ;;  %4932 = vrcp.f32 %v3805_v54  ;;  %v3647_v31 = vmul.f32 0.2, %v3565_v6  ;;  %v6427_v57 = vadd.f32 %v6377_v51, %v6275_v50 }
 0x2fe   : > { %v3944_v37 = vadd.f32 %v6303_v44, %v3905_v59  ;;  %v3761_v17 = vmul.f32 1.442695, %v3713_v46  ;;  %v3392_v4 = vpop.f32.mrb[36].mxu0  ;;  %v3806_v9 = vadd.f32 1.0, %v4925_v8  ;;  %4934 = vpow2.f32 %v3759_v33 }
 0x2ff   : > { %v4927_v60 = vpop.eup %4926  ;;  %3975 = vst [vmem:[%s6316_s27 + $0x40] sm:$0xff] %v3943_v53  ;;  %v6408_v0 = vadd.f32 %v3392_v4, %v2246_v23  ;;  %v3394_v11 = vpop.f32.mrb[37].mxu0  ;;  %v3714_v36 = vsub.f32 0.0, %v3572_v49  ;;  %v3679_v49 = vsel %vm3615_vm6, %v3565_v6, %v3647_v31  ;;  %vm3616_vm7 = vcmp.ge.f32.partialorder %v6427_v57, 0.0 }
 0x300   : > { %3976 = vst [vmem:[%s6316_s27 + $0x48] sm:$0xff] %v3944_v37  ;;  %v3867_v30 = vmul.f32 %v4927_v60, %v3675_v40  ;;  %4936 = vpow2.f32 %v3761_v17  ;;  %v4357_v35 = vadd.f32 %v3394_v11, %v2248_v13  ;;  %v3396_v29 = vpop.f32.mrb[38].mxu0  ;;  %v3678_v17 = vsel %vm3614_vm5, %v3563_v27, %v3646_v18 }
 0x301   : > { %4938 = vrcp.f32 %v3806_v9  ;;  %v6413_v10 = vadd.f32 %v3396_v29, %v2250_v32  ;;  %v3398_v16 = vpop.f32.mrb[39].mxu0  ;;  %v3763_v26 = vmul.f32 1.442695, %v3714_v36 }
 0x302   : > { %v4929_v42 = vpop.eup %4928  ;;  %v3906_v45 = vmul.f32 %v6294_v20, %v3867_v30  ;;  %v3574_v52 = vadd.f32 %v4357_v35, %v6259_v61  ;;  %v4359_v38 = vadd.f32 %v3398_v16, %v2252_v41  ;;  %v2256_v24 = vpop.f32.mrb[40].mxu1  ;;  %v3569_v35 = vadd.f32 %v6390_v7, %v6275_v50 }
 0x303   : > { %v4931_v43 = vpop.eup %4930  ;;  %v3807_v2 = vadd.f32 1.0, %v4929_v42  ;;  %v2258_v63 = vpop.f32.mrb[41].mxu1  ;;  %4940 = vpow2.f32 %v3763_v26  ;;  %v3648_v42 = vmul.f32 0.2, %v6427_v57 }
 0x304   : > { %v3945_v21 = vadd.f32 %v6303_v44, %v3906_v45  ;;  %v3868_v3 = vmul.f32 %v4931_v43, %v3676_v39  ;;  %v3715_v22 = vsub.f32 0.0, %v3574_v52  ;;  %v2260_v48 = vpop.f32.mrb[42].mxu1  ;;  %v3576_v55 = vadd.f32 %v4359_v38, %v6259_v61 }
 0x305   : > { %4942 = vrcp.f32 %v3807_v2  ;;  %v2262_v19 = vpop.f32.mrb[43].mxu1  ;;  %v3571_v38 = vadd.f32 %v6396_v47, %v6275_v50  ;;  %vm3617_vm8 = vcmp.ge.f32.partialorder %v3569_v35, 0.0 }
 0x306   : > { %3977 = vst [vmem:[%s6316_s27 + $0x50] sm:$0xff] %v3945_v21  ;;  %v3907_v34 = vmul.f32 %v6294_v20, %v3868_v3  ;;  %v3765_v14 = vmul.f32 1.442695, %v3715_v22  ;;  %v3402_v56 = vpop.f32.mrb[40].mxu0  ;;  %v3716_v28 = vsub.f32 0.0, %v3576_v55 }
 0x307   : > { %v6429_v15 = vadd.f32 %v3402_v56, %v2256_v24  ;;  %v3404_v62 = vpop.f32.mrb[41].mxu0  ;;  %v4933_v23 = vpop.eup %4932  ;;  %v3649_v3 = vmul.f32 0.2, %v3569_v35  ;;  %v3650_v55 = vmul.f32 0.2, %v3571_v38  ;;  %v3573_v56 = vadd.f32 %v6408_v0, %v6275_v50 }
 0x308   : > { %v3946_v1 = vadd.f32 %v6303_v44, %v3907_v34  ;;  %4944 = vpow2.f32 %v3765_v14  ;;  %v4361_v5 = vadd.f32 %v3404_v62, %v2258_v63  ;;  %v3406_v13 = vpop.f32.mrb[42].mxu0  ;;  %v4935_v59 = vpop.eup %4934  ;;  %v3869_v54 = vmul.f32 %v4933_v23, %v3677_v25 }
 0x309   : > { %v6432_v33 = vadd.f32 %v3406_v13, %v2260_v48  ;;  %v3408_v46 = vpop.f32.mrb[43].mxu0  ;;  %v3808_v53 = vadd.f32 1.0, %v4935_v59  ;;  %v3767_v51 = vmul.f32 1.442695, %v3716_v28  ;;  %vm3618_vm9 = vcmp.ge.f32.partialorder %v3571_v38, 0.0 }
 0x30a   : > { %v4937_v32 = vpop.eup %4936  ;;  %3978 = vst [vmem:[%s6316_s27 + $0x58] sm:$0xff] %v3946_v1  ;;  %v3578_v40 = vadd.f32 %v4361_v5, %v6259_v61  ;;  %v4363_v12 = vadd.f32 %v3408_v46, %v2262_v19  ;;  %v2266_v41 = vpop.f32.mrb[44].mxu1  ;;  %v3908_v37 = vmul.f32 %v6294_v20, %v3869_v54  ;;  %v3680_v54 = vsel %vm3616_vm7, %v6427_v57, %v3648_v42 }
 0x30b   : > { %v4939_v8 = vpop.eup %4938  ;;  %v3809_v4 = vadd.f32 1.0, %v4937_v32  ;;  %v2268_v60 = vpop.f32.mrb[45].mxu1  ;;  %4946 = vrcp.f32 %v3808_v53  ;;  %vm3619_vm10 = vcmp.ge.f32.partialorder %v3573_v56, 0.0 }
 0x30c   : > { %v3870_v9 = vmul.f32 %v4939_v8, %v3678_v17  ;;  %v3717_v11 = vsub.f32 0.0, %v3578_v40  ;;  %v2270_v30 = vpop.f32.mrb[46].mxu1  ;;  %v3947_v36 = vadd.f32 %v6303_v44, %v3908_v37  ;;  %v3580_v29 = vadd.f32 %v4363_v12, %v6259_v61 }
 0x30d   : > { %4948 = vrcp.f32 %v3809_v4  ;;  %v2272_v58 = vpop.f32.mrb[47].mxu1  ;;  %v4941_v27 = vpop.eup %4940  ;;  %v3682_v40 = vsel %vm3618_vm9, %v3571_v38, %v3650_v55  ;;  %v3651_v37 = vmul.f32 0.2, %v3573_v56 }
 0x30e   : > { %v3909_v16 = vmul.f32 %v6294_v20, %v3870_v9  ;;  %4950 = vpow2.f32 %v3767_v51  ;;  %v3769_v45 = vmul.f32 1.442695, %v3717_v11  ;;  %v3412_v26 = vpop.f32.mrb[44].mxu0  ;;  %3979 = vst [vmem:[%s6316_s27 + $0x60] sm:$0xff] %v3947_v36  ;;  %v3810_v24 = vadd.f32 1.0, %v4941_v27 }
 0x30f   : > { %v4943_v52 = vpop.eup %4942  ;;  %v3718_v7 = vsub.f32 0.0, %v3580_v29  ;;  %v6449_v43 = vadd.f32 %v3412_v26, %v2266_v41  ;;  %v3414_v39 = vpop.f32.mrb[45].mxu0  ;;  %v3681_v51 = vsel %vm3617_vm8, %v3569_v35, %v3649_v3  ;;  %v3575_v35 = vadd.f32 %v6413_v10, %v6275_v50 }
 0x310   : > { %v3948_v6 = vadd.f32 %v6303_v44, %v3909_v16  ;;  %v3871_v2 = vmul.f32 %v4943_v52, %v3679_v49  ;;  %4952 = vpow2.f32 %v3769_v45  ;;  %v4365_v63 = vadd.f32 %v3414_v39, %v2268_v60  ;;  %v3416_v21 = vpop.f32.mrb[46].mxu0 }
 0x311   : > { %4954 = vrcp.f32 %v3810_v24  ;;  %v3771_v22 = vmul.f32 1.442695, %v3718_v7  ;;  %v3418_v48 = vpop.f32.mrb[47].mxu0  ;;  %v6455_v34 = vadd.f32 %v3416_v21, %v2270_v30  ;;  %v3577_v45 = vadd.f32 %v6429_v15, %v6275_v50 }
 0x312   : > { %v4945_v25 = vpop.eup %4944  ;;  %3980 = vst [vmem:[%s6316_s27 + $0x68] sm:$0xff] %v3948_v6  ;;  %v3910_v47 = vmul.f32 %v6294_v20, %v3871_v2  ;;  %v3582_v19 = vadd.f32 %v4365_v63, %v6259_v61  ;;  %v4367_v18 = vadd.f32 %v3418_v48, %v2272_v58  ;;  %v2276_v14 = vpop.f32.mrb[48].mxu1  ;;  %v3683_v6 = vsel %vm3619_vm10, %v3573_v56, %v3651_v37 }
 0x313   : > { %v3811_v31 = vadd.f32 1.0, %v4945_v25  ;;  %4956 = vpow2.f32 %v3771_v22  ;;  %v2278_v62 = vpop.f32.mrb[49].mxu1  ;;  %vm3620_vm11 = vcmp.ge.f32.partialorder %v3575_v35, 0.0  ;;  %v3652_v25 = vmul.f32 0.2, %v3575_v35 }
 0x314   : > { %v3949_v23 = vadd.f32 %v6303_v44, %v3910_v47  ;;  %v3719_v1 = vsub.f32 0.0, %v3582_v19  ;;  %v3584_v28 = vadd.f32 %v4367_v18, %v6259_v61  ;;  %v2280_v5 = vpop.f32.mrb[50].mxu1  ;;  %vm3621_vm12 = vcmp.ge.f32.partialorder %v3577_v45, 0.0 }
 0x315   : > { %4958 = vrcp.f32 %v3811_v31  ;;  %v2282_v13 = vpop.f32.mrb[51].mxu1  ;;  %v4947_v59 = vpop.eup %4946 }
 0x316   : > { %3981 = vst [vmem:[%s6316_s27 + $0x70] sm:$0xff] %v3949_v23  ;;  %v3773_v46 = vmul.f32 1.442695, %v3719_v1  ;;  %v3720_v0 = vsub.f32 0.0, %v3584_v28  ;;  %v3872_v53 = vmul.f32 %v4947_v59, %v3680_v54  ;;  %v3422_v12 = vpop.f32.mrb[48].mxu0  ;;  %v3579_v23 = vadd.f32 %v6432_v33, %v6275_v50 }
 0x317   : > { %v4949_v32 = vpop.eup %4948  ;;  %v3424_v49 = vpop.f32.mrb[49].mxu0  ;;  %v6467_v9 = vadd.f32 %v3422_v12, %v2276_v14  ;;  %v3684_v33 = vsel %vm3620_vm11, %v3575_v35, %v3652_v25 }
 0x318   : > { %v4951_v41 = vpop.eup %4950  ;;  %v3873_v8 = vmul.f32 %v4949_v32, %v3681_v51  ;;  %4960 = vpow2.f32 %v3773_v46  ;;  %v3775_v17 = vmul.f32 1.442695, %v3720_v0  ;;  %v3911_v4 = vmul.f32 %v6294_v20, %v3872_v53  ;;  %v3426_v11 = vpop.f32.mrb[50].mxu0 }
 0x319   : > { %v3812_v60 = vadd.f32 1.0, %v4951_v41  ;;  %v4369_v57 = vadd.f32 %v3424_v49, %v2278_v62  ;;  %v6472_v29 = vadd.f32 %v3426_v11, %v2280_v5  ;;  %v3428_v58 = vpop.f32.mrb[51].mxu0  ;;  %v3653_v62 = vmul.f32 0.2, %v3577_v45 }
 0x31a   : > { %v4953_v30 = vpop.eup %4952  ;;  %v3912_v36 = vmul.f32 %v6294_v20, %v3873_v8  ;;  %4962 = vpow2.f32 %v3775_v17  ;;  %v2286_v27 = vpop.f32.mrb[52].mxu1  ;;  %v3950_v42 = vadd.f32 %v6303_v44, %v3911_v4  ;;  %v4371_v2 = vadd.f32 %v3428_v58, %v2282_v13 }
 0x31b   : > { %v4955_v16 = vpop.eup %4954  ;;  %4964 = vrcp.f32 %v3812_v60  ;;  %v3813_v26 = vadd.f32 1.0, %v4953_v30  ;;  %v2288_v52 = vpop.f32.mrb[53].mxu1  ;;  %v3586_v10 = vadd.f32 %v4369_v57, %v6259_v61  ;;  %v3685_v17 = vsel %vm3621_vm12, %v3577_v45, %v3653_v62 }
 0x31c   : > { %v3951_v38 = vadd.f32 %v6303_v44, %v3912_v36  ;;  %v3874_v24 = vmul.f32 %v4955_v16, %v3682_v40  ;;  %v2290_v7 = vpop.f32.mrb[54].mxu1  ;;  %3982 = vst [vmem:[%s6316_s27 + $0x78] sm:$0xff] %v3950_v42  ;;  %v3588_v47 = vadd.f32 %v4371_v2, %v6259_v61  ;;  %v3654_v49 = vmul.f32 0.2, %v3579_v23 }
 0x31d   : > { %v4957_v39 = vpop.eup %4956  ;;  %4966 = vrcp.f32 %v3813_v26  ;;  %v2292_v63 = vpop.f32.mrb[55].mxu1  ;;  %v3721_v3 = vsub.f32 0.0, %v3586_v10  ;;  %vm3622_vm13 = vcmp.ge.f32.partialorder %v3579_v23, 0.0  ;;  %v3581_v58 = vadd.f32 %v6449_v43, %v6275_v50 }
 0x31e   : > { %3983 = vst [vmem:[%s6316_s27 + $0x80] sm:$0xff] %v3951_v38  ;;  %v3913_v21 = vmul.f32 %v6294_v20, %v3874_v24  ;;  %v3814_v15 = vadd.f32 1.0, %v4957_v39  ;;  %v3432_v22 = vpop.f32.mrb[52].mxu0  ;;  %v3722_v1 = vsub.f32 0.0, %v3588_v47  ;;  %v3686_v10 = vsel %vm3622_vm13, %v3579_v23, %v3654_v49 }
 0x31f   : > { %v4959_v48 = vpop.eup %4958  ;;  %v6484_v19 = vadd.f32 %v3432_v22, %v2286_v27  ;;  %v3434_v18 = vpop.f32.mrb[53].mxu0  ;;  %v3777_v56 = vmul.f32 1.442695, %v3721_v3  ;;  %vm3623_vm14 = vcmp.ge.f32.partialorder %v3581_v58, 0.0 }
 0x320   : > { %v3952_v14 = vadd.f32 %v6303_v44, %v3913_v21  ;;  %v3875_v55 = vmul.f32 %v4959_v48, %v3683_v6  ;;  %4968 = vrcp.f32 %v3814_v15  ;;  %v3436_v31 = vpop.f32.mrb[54].mxu0  ;;  %v4373_v28 = vadd.f32 %v3434_v18, %v2288_v52 }
 0x321   : > { %v3438_v5 = vpop.f32.mrb[55].mxu0  ;;  %4970 = vpow2.f32 %v3777_v56  ;;  %v6491_v54 = vadd.f32 %v3436_v31, %v2290_v7  ;;  %v3779_v53 = vmul.f32 1.442695, %v3722_v1  ;;  %v3583_v7 = vadd.f32 %v6455_v34, %v6275_v50 }
 0x322   : > { %v4961_v13 = vpop.eup %4960  ;;  %3984 = vst [vmem:[%s6316_s27 + $0x88] sm:$0xff] %v3952_v14  ;;  %v3914_v59 = vmul.f32 %v6294_v20, %v3875_v55  ;;  %v4375_v46 = vadd.f32 %v3438_v5, %v2292_v63  ;;  %v2296_v0 = vpop.f32.mrb[56].mxu1  ;;  %v3590_v12 = vadd.f32 %v4373_v28, %v6259_v61  ;;  %v3655_v48 = vmul.f32 0.2, %v3581_v58 }
 0x323   : > { %v3815_v32 = vadd.f32 1.0, %v4961_v13  ;;  %v2298_v8 = vpop.f32.mrb[57].mxu1  ;;  %v3656_v31 = vmul.f32 0.2, %v3583_v7  ;;  %vm3624_vm15 = vcmp.ge.f32.partialorder %v3583_v7, 0.0 }
 0x324   : > { %v4963_v51 = vpop.eup %4962  ;;  %v3953_v40 = vadd.f32 %v6303_v44, %v3914_v59  ;;  %v3592_v41 = vadd.f32 %v4375_v46, %v6259_v61  ;;  %v2300_v60 = vpop.f32.mrb[58].mxu1  ;;  %v3723_v11 = vsub.f32 0.0, %v3590_v12  ;;  %v3687_v46 = vsel %vm3623_vm14, %v3581_v58, %v3655_v48 }
 0x325   : > { %v4965_v37 = vpop.eup %4964  ;;  %4972 = vrcp.f32 %v3815_v32  ;;  %v3816_v4 = vadd.f32 1.0, %v4963_v51  ;;  %v2302_v36 = vpop.f32.mrb[59].mxu1 }
 0x326   : > { %3985 = vst [vmem:[%s6316_s27 + $0x90] sm:$0xff] %v3953_v40  ;;  %v3876_v57 = vmul.f32 %v4965_v37, %v3684_v33  ;;  %4974 = vpow2.f32 %v3779_v53  ;;  %v3442_v30 = vpop.f32.mrb[56].mxu0  ;;  %v3724_v27 = vsub.f32 0.0, %v3592_v41  ;;  %v3781_v52 = vmul.f32 1.442695, %v3723_v11 }
 0x327   : > { %v4967_v35 = vpop.eup %4966  ;;  %4976 = vrcp.f32 %v3816_v4  ;;  %v6501_v16 = vadd.f32 %v3442_v30, %v2296_v0  ;;  %v3444_v42 = vpop.f32.mrb[57].mxu0  ;;  %v3585_v40 = vadd.f32 %v6467_v9, %v6275_v50  ;;  %v3587_v9 = vadd.f32 %v6472_v29, %v6275_v50 }
 0x328   : > { %v3915_v45 = vmul.f32 %v6294_v20, %v3876_v57  ;;  %v3877_v26 = vmul.f32 %v4967_v35, %v3685_v17  ;;  %v4377_v38 = vadd.f32 %v3444_v42, %v2298_v8  ;;  %v3446_v24 = vpop.f32.mrb[58].mxu0  ;;  %v3783_v39 = vmul.f32 1.442695, %v3724_v27 }
 0x329   : > { %v6507_v6 = vadd.f32 %v3446_v24, %v2300_v60  ;;  %v3448_v43 = vpop.f32.mrb[59].mxu0  ;;  %4978 = vpow2.f32 %v3781_v52  ;;  %v3688_v8 = vsel %vm3624_vm15, %v3583_v7, %v3656_v31  ;;  %v3657_v42 = vmul.f32 0.2, %v3585_v40 }
 0x32a   : > { %v4969_v2 = vpop.eup %4968  ;;  %v3954_v63 = vadd.f32 %v6303_v44, %v3915_v45  ;;  %v3916_v21 = vmul.f32 %v6294_v20, %v3877_v26  ;;  %v3594_v15 = vadd.f32 %v4377_v38, %v6259_v61  ;;  %v2306_v3 = vpop.f32.mrb[60].mxu1  ;;  %4980 = vpow2.f32 %v3783_v39 }
 0x32b   : > { %v3878_v22 = vmul.f32 %v4969_v2, %v3686_v10  ;;  %v2308_v25 = vpop.f32.mrb[61].mxu1  ;;  %v4971_v47 = vpop.eup %4970  ;;  %v4379_v14 = vadd.f32 %v3448_v43, %v2302_v36  ;;  %vm3625_vm0 = vcmp.ge.f32.partialorder %v3585_v40, 0.0  ;;  %v3589_v2 = vadd.f32 %v6484_v19, %v6275_v50 }
 0x32c   : > { %3986 = vst [vmem:[%s6316_s27 + $0x98] sm:$0xff] %v3954_v63  ;;  %v3955_v34 = vadd.f32 %v6303_v44, %v3916_v21  ;;  %v3725_v18 = vsub.f32 0.0, %v3594_v15  ;;  %v2310_v55 = vpop.f32.mrb[62].mxu1  ;;  %v3817_v62 = vadd.f32 1.0, %v4971_v47  ;;  %v3689_v39 = vsel %vm3625_vm0, %v3585_v40, %v3657_v42 }
 0x32d   : > { %v3917_v56 = vmul.f32 %v6294_v20, %v3878_v22  ;;  %v2312_v23 = vpop.f32.mrb[63].mxu1  ;;  %v3596_v28 = vadd.f32 %v4379_v14, %v6259_v61  ;;  %vm3626_vm1 = vcmp.ge.f32.partialorder %v3587_v9, 0.0  ;;  %vm3627_vm2 = vcmp.ge.f32.partialorder %v3589_v2, 0.0 }
 0x32e   : > { %3987 = vst [vmem:[%s6316_s27 + $0xa0] sm:$0xff] %v3955_v34  ;;  %v3785_v1 = vmul.f32 1.442695, %v3725_v18  ;;  %v3452_v5 = vpop.f32.mrb[60].mxu0  ;;  %4982 = vrcp.f32 %v3817_v62  ;;  %v6549_v34 = vld [vmem:[%s6589_s4] ss:$0 sm:$0xff] }
 0x32f   : > { %v4973_v13 = vpop.eup %4972  ;;  %v3956_v59 = vadd.f32 %v6303_v44, %v3917_v56  ;;  %v6518_v0 = vadd.f32 %v3452_v5, %v2306_v3  ;;  %v3454_v32 = vpop.f32.mrb[61].mxu0  ;;  %v3726_v33 = vsub.f32 0.0, %v3596_v28  ;;  %v6543_v3 = vld [vmem:[%s6588_s3] ss:$0 sm:$0xff] }
 0x330   : > { %v4975_v53 = vpop.eup %4974  ;;  %v3879_v51 = vmul.f32 %v4973_v13, %v3687_v46  ;;  %4984 = vpow2.f32 %v3785_v1  ;;  %v3456_v12 = vpop.f32.mrb[62].mxu0  ;;  %v4381_v17 = vadd.f32 %v3454_v32, %v2308_v25  ;;  %v3659_v25 = vmul.f32 0.2, %v3589_v2 }
 0x331   : > { %v4977_v41 = vpop.eup %4976  ;;  %3988 = vst [vmem:[%s6316_s27 + $0xa8] sm:$0xff] %v3956_v59  ;;  %v3818_v37 = vadd.f32 1.0, %v4975_v53  ;;  %v6524_v49 = vadd.f32 %v3456_v12, %v2310_v55  ;;  %v3458_v4 = vpop.f32.mrb[63].mxu0  ;;  %v3787_v11 = vmul.f32 1.442695, %v3726_v33  ;;  %v3593_v55 = vadd.f32 %v6501_v16, %v6275_v50 }
 0x332   : > { %v3918_v60 = vmul.f32 %v6294_v20, %v3879_v51  ;;  %v3880_v57 = vmul.f32 %v4977_v41, %v3688_v8  ;;  %v4383_v30 = vadd.f32 %v3458_v4, %v2312_v23  ;;  %v3598_v36 = vadd.f32 %v4381_v17, %v6259_v61 }
 0x333   : > { %4986 = vrcp.f32 %v3818_v37  ;;  %v4979_v35 = vpop.eup %4978  ;;  %v3691_v23 = vsel %vm3627_vm2, %v3589_v2, %v3659_v25  ;;  %v3661_v32 = vmul.f32 0.2, %v3593_v55  ;;  %v3595_v53 = vadd.f32 %v6507_v6, %v6275_v50 }
 0x334   : > { %v3957_v58 = vadd.f32 %v6303_v44, %v3918_v60  ;;  %v3919_v27 = vmul.f32 %v6294_v20, %v3880_v57  ;;  %4988 = vpow2.f32 %v3787_v11  ;;  %v4981_v45 = vpop.eup %4980  ;;  %v3819_v26 = vadd.f32 1.0, %v4979_v35 }
 0x335   : > { %v3727_v52 = vsub.f32 0.0, %v3598_v36  ;;  %v3600_v38 = vadd.f32 %v4383_v30, %v6259_v61  ;;  %v3820_v24 = vadd.f32 1.0, %v4981_v45  ;;  %v3658_v20 = vmul.f32 0.2, %v3587_v9 }
 0x336   : > { %3989 = vst [vmem:[%s6316_s27 + $0xb0] sm:$0xff] %v3957_v58  ;;  %v3958_v29 = vadd.f32 %v6303_v44, %v3919_v27  ;;  %4990 = vrcp.f32 %v3819_v26  ;;  %v3591_v61 = vadd.f32 %v6491_v54, %v6275_v50  ;;  %vm3629_vm4 = vcmp.ge.f32.partialorder %v3593_v55, 0.0 }
 0x337   : > { %v3789_v10 = vmul.f32 1.442695, %v3727_v52  ;;  %v3728_v7 = vsub.f32 0.0, %v3600_v38  ;;  %4992 = vrcp.f32 %v3820_v24  ;;  %v3690_v19 = vsel %vm3626_vm1, %v3587_v9, %v3658_v20 }
 0x338   : > { %3990 = vst [vmem:[%s6316_s27 + $0xb8] sm:$0xff] %v3958_v29  ;;  %v4983_v43 = vpop.eup %4982  ;;  %v3660_v14 = vmul.f32 0.2, %v3591_v61  ;;  %vm3628_vm3 = vcmp.ge.f32.partialorder %v3591_v61, 0.0  ;;  %v3693_v17 = vsel %vm3629_vm4, %v3593_v55, %v3661_v32  ;;  %v3662_v4 = vmul.f32 0.2, %v3595_v53 }
 0x339   : > { %4994 = vpow2.f32 %v3789_v10  ;;  %v3791_v63 = vmul.f32 1.442695, %v3728_v7  ;;  %v3881_v15 = vmul.f32 %v4983_v43, %v3689_v39  ;;  %vm3630_vm5 = vcmp.ge.f32.partialorder %v3595_v53, 0.0 }
 0x33a   : > { %v4985_v21 = vpop.eup %4984  ;;  %v3692_v13 = vsel %vm3628_vm3, %v3591_v61, %v3660_v14  ;;  %v3597_v60 = vadd.f32 %v6518_v0, %v6275_v50  ;;  %v3599_v11 = vadd.f32 %v6524_v49, %v6275_v50  ;;  %v3694_v9 = vsel %vm3630_vm5, %v3595_v53, %v3662_v4 }
 0x33b   : > { %v3821_v44 = vadd.f32 1.0, %v4985_v21  ;;  %4996 = vpow2.f32 %v3791_v63  ;;  %v3920_v22 = vmul.f32 %v6543_v3, %v3881_v15 }
 0x33c   : > { %v3663_v58 = vmul.f32 0.2, %v3597_v60  ;;  %vm3631_vm6 = vcmp.ge.f32.partialorder %v3597_v60, 0.0  ;;  %v3664_v0 = vmul.f32 0.2, %v3599_v11  ;;  %vm3632_vm7 = vcmp.ge.f32.partialorder %v3599_v11, 0.0 }
 0x33d   : > { %v4987_v48 = vpop.eup %4986  ;;  %4998 = vrcp.f32 %v3821_v44  ;;  %v3959_v54 = vadd.f32 %v6549_v34, %v3920_v22 }
 0x33e   : > { %v4989_v47 = vpop.eup %4988  ;;  %v3882_v18 = vmul.f32 %v4987_v48, %v3690_v19  ;;  %v3695_v26 = vsel %vm3631_vm6, %v3597_v60, %v3663_v58  ;;  %v3696_v52 = vsel %vm3632_vm7, %v3599_v11, %v3664_v0 }
 0x33f   : > { %v3822_v56 = vadd.f32 1.0, %v4989_v47  ;;  %3991 = vst [vmem:[%s6316_s27 + $0xc0] sm:$0xff] %v3959_v54 }
 0x340   : > { %v3921_v31 = vmul.f32 %v6543_v3, %v3882_v18  ;;  %v4991_v62 = vpop.eup %4990 }
 0x341   : > { %5000 = vrcp.f32 %v3822_v56  ;;  %v4993_v1 = vpop.eup %4992  ;;  %v3883_v5 = vmul.f32 %v4991_v62, %v3691_v23 }
 0x342   : > { %v3960_v28 = vadd.f32 %v6549_v34, %v3921_v31  ;;  %v3884_v46 = vmul.f32 %v4993_v1, %v3692_v13 }
 0x343   : > { %v4995_v59 = vpop.eup %4994  ;;  %v3922_v16 = vmul.f32 %v6543_v3, %v3883_v5 }
 0x344   : > { %3992 = vst [vmem:[%s6316_s27 + $0xc8] sm:$0xff] %v3960_v28  ;;  %v3823_v51 = vadd.f32 1.0, %v4995_v59  ;;  %v3923_v33 = vmul.f32 %v6543_v3, %v3884_v46 }
 0x345   : > { %v4997_v40 = vpop.eup %4996  ;;  %v3961_v12 = vadd.f32 %v6549_v34, %v3922_v16 }
 0x346   : > { %5002 = vrcp.f32 %v3823_v51  ;;  %v3824_v41 = vadd.f32 1.0, %v4997_v40  ;;  %v3962_v37 = vadd.f32 %v6549_v34, %v3923_v33 }
 0x347   : > { %v4999_v8 = vpop.eup %4998  ;;  %3993 = vst [vmem:[%s6316_s27 + $0xd0] sm:$0xff] %v3961_v12 }
 0x348   : > { %v3885_v6 = vmul.f32 %v4999_v8, %v3693_v17  ;;  %5004 = vrcp.f32 %v3824_v41  ;;  %3994 = vst [vmem:[%s6316_s27 + $0xd8] sm:$0xff] %v3962_v37 }
 0x34a   : > { %v3924_v57 = vmul.f32 %v6543_v3, %v3885_v6 }
 0x34b   : > { %v5001_v30 = vpop.eup %5000 }
 0x34c   : > { %v3963_v36 = vadd.f32 %v6549_v34, %v3924_v57  ;;  %v3886_v35 = vmul.f32 %v5001_v30, %v3694_v9 }
 0x34e   : > { %3995 = vst [vmem:[%s6316_s27 + $0xe0] sm:$0xff] %v3963_v36  ;;  %v3925_v27 = vmul.f32 %v6543_v3, %v3886_v35 }
 0x350   : > { %v5003_v42 = vpop.eup %5002  ;;  %v3964_v45 = vadd.f32 %v6549_v34, %v3925_v27 }
 0x351   : > { %v3887_v50 = vmul.f32 %v5003_v42, %v3695_v26 }
 0x352   : > { %v5005_v49 = vpop.eup %5004  ;;  %3996 = vst [vmem:[%s6316_s27 + $0xe8] sm:$0xff] %v3964_v45 }
 0x353   : > { %v3926_v38 = vmul.f32 %v6543_v3, %v3887_v50  ;;  %v3888_v29 = vmul.f32 %v5005_v49, %v3696_v52 }
 0x355   : > { %v3965_v24 = vadd.f32 %v6549_v34, %v3926_v38  ;;  %v3927_v10 = vmul.f32 %v6543_v3, %v3888_v29 }
 0x357   : > { %3997 = vst [vmem:[%s6316_s27 + $0xf0] sm:$0xff] %v3965_v24  ;;  %v3966_v7 = vadd.f32 %v6549_v34, %v3927_v10 }
 0x359   : > { %3998 = vst [vmem:[%s6316_s27 + $0xf8] sm:$0xff] %v3966_v7 }
 0x35a PF: > { %s15_s18 = sadd.s32 1, %s5019_s18  }
 0x35b   : > { %p12_p4 = scmp.ge.s32.totalorder %s15_s18, 4  }
 0x35d   :  { %14 = sbr.rel (!%p12_p4) target bundleno = 1 (0x1), region = 78 }

</bundles_post_ra>
